<compile_context>
chip_gen: v7x
topology: tpu7x:2x2x1
jax: 0.10.0
libtpu: 0.0.40
codegen_flags: <defaults>
</compile_context>

<pallas_src>
import math

import jax
import jax.numpy as jnp
from jax.experimental import pallas as pl
from jax.experimental.pallas import tpu as pltpu


# --------------------------------------------------------------------------------------
# Kernel 1: conv(3x3, stride(2,1), pad 1, no bias) -> GroupNorm -> ReLU -> mean over H
# --------------------------------------------------------------------------------------
def conv_gn_relu_hmean_pair(x_kv, w_kv, gamma_kv, beta_kv, num_groups, h_out, w_out, b_blk):
    """x_kv: (2, n_pad, Hp2, Wp, Cin) bf16 padded NHWC (half 0 = keys, half 1 = values).
    Returns (2, n_pad, w_out*Cout) bf16 = flatten_w(ReLU(GN(conv(x))).mean(H))."""
    _, n_pad, hp2, wp, c_in = x_kv.shape
    c_out = w_kv.shape[-1]
    hw = h_out * w_out
    group_size = c_out // num_groups
    n_blocks = n_pad // b_blk

    gid = jnp.arange(c_out) // group_size
    mavg = (gid[:, None] == gid[None, :]).astype(jnp.float32) / float(hw * group_size)

    def kernel(x_ref, w_ref, gamma_ref, beta_ref, mavg_ref, out_ref):
        f32, bf16 = jnp.float32, jnp.bfloat16
        x = x_ref[0]                                         # (b_blk, hp2, wp, cin) bf16
        xh = x.reshape(b_blk, hp2 // 2, 2, wp, c_in)         # split padded H into (H/2, parity)

        # 3x3 conv, stride (2,1): output row i uses padded rows 2i+dy, cols j+dx.
        acc = None
        for dy in range(3):
            h0, par = dy // 2, dy % 2
            xr = xh[:, h0:h0 + h_out, par]                   # (b_blk, h_out, wp, cin)
            for dx in range(3):
                xt = xr[:, :, dx:dx + w_out, :].reshape(b_blk * hw, c_in)
                d = jnp.dot(xt, w_ref[0, dy * 3 + dx], preferred_element_type=f32)
                acc = d if acc is None else acc + d          # (b_blk*hw, c_out) f32

        # GroupNorm (one-pass stats, f32 accumulation), affine, ReLU.
        y3 = acc.reshape(b_blk, hw, c_out)
        s1 = jnp.sum(y3, axis=1)                             # (b_blk, c_out)
        s2 = jnp.sum(y3 * y3, axis=1)
        gstats = jnp.dot(jnp.concatenate([s1, s2], axis=0), mavg_ref[...],
                         preferred_element_type=f32)         # (2*b_blk, c_out)
        mean_c = gstats[:b_blk]
        var_c = gstats[b_blk:] - mean_c * mean_c
        scale = jax.lax.rsqrt(var_c + 1e-5) * gamma_ref[0]   # (b_blk, c_out)
        shift = beta_ref[0] - mean_c * scale
        yn = jnp.maximum(y3 * scale[:, None, :] + shift[:, None, :], 0.0)

        # mean over H, then flatten (w, c) -> one lane-dense bf16 row per image.
        hm = jnp.sum(yn.reshape(b_blk, h_out, w_out, c_out), axis=1) * (1.0 / h_out)
        out = jnp.concatenate([hm[:, w, :] for w in range(w_out)], axis=-1)
        out_ref[0] = out.astype(bf16)

    return pl.pallas_call(
        kernel,
        out_shape=jax.ShapeDtypeStruct((2, n_pad, w_out * c_out), jnp.bfloat16),
        grid=(2, n_blocks),
        in_specs=[
            pl.BlockSpec((1, b_blk, hp2, wp, c_in), lambda s, i: (s, i, 0, 0, 0)),
            pl.BlockSpec((1, 9, c_in, c_out), lambda s, i: (s, 0, 0, 0)),  # weight resident
            pl.BlockSpec((1, 1, c_out), lambda s, i: (s, 0, 0)),
            pl.BlockSpec((1, 1, c_out), lambda s, i: (s, 0, 0)),
            pl.BlockSpec((c_out, c_out), lambda s, i: (0, 0)),
        ],
        out_specs=pl.BlockSpec((1, b_blk, w_out * c_out), lambda s, i: (s, i, 0)),
        compiler_params=pltpu.CompilerParams(
            dimension_semantics=("parallel", "parallel"),
            vmem_limit_bytes=32 * 1024 * 1024,
        ),
    )(x_kv, w_kv, gamma_kv, beta_kv, mavg)


# --------------------------------------------------------------------------------------
# Kernel 2: fused q/k/v projection (Linear + MHA in_proj folded offline), single-head
# scaled dot-product attention, out_proj, and the eval path normalize(tanh(embedding)).
# --------------------------------------------------------------------------------------
def selfattn_kernel(qf_ref, kf_ref, vf_ref, wq_ref, wk_ref, wv_ref,
                    bq_ref, bk_ref, bv_ref, wo_ref, bo_ref, emb_ref, nor_ref):
    f32, bf16 = jnp.float32, jnp.bfloat16
    # Fused projections; 1/sqrt(E) is already folded into wq/bq.
    q = jnp.dot(qf_ref[...], wq_ref[...], preferred_element_type=f32) + bq_ref[...]
    k = jnp.dot(kf_ref[...], wk_ref[...], preferred_element_type=f32) + bk_ref[...]
    v = jnp.dot(vf_ref[...], wv_ref[...], preferred_element_type=f32) + bv_ref[...]

    s = jax.lax.dot_general(q.astype(bf16), k.astype(bf16),
                            dimension_numbers=(((1,), (1,)), ((), ())),
                            preferred_element_type=f32)      # (N, N) = q @ k^T
    s = s - jnp.max(s, axis=-1, keepdims=True)
    p = jnp.exp(s)
    p = p * pl.reciprocal(jnp.sum(p, axis=-1, keepdims=True), approx=True)

    attn = jnp.dot(p.astype(bf16), v.astype(bf16), preferred_element_type=f32)
    out = jnp.dot(attn.astype(bf16), wo_ref[...], preferred_element_type=f32) + bo_ref[...]
    emb_ref[...] = out

    # AttentionHead eval path: F.normalize(tanh(emb * 1))
    t = jnp.tanh(out)
    nrm = jnp.sqrt(jnp.sum(t * t, axis=-1, keepdims=True))
    nor_ref[...] = t * pl.reciprocal(jnp.maximum(nrm, 1e-12), approx=True)


def self_attention_and_normalize(qf, kf, vf, p):
    n = qf.shape[0]
    e = p["wq_fused"].shape[1]
    # No grid: single invocation, each operand is placed once in VMEM (single-buffered),
    # avoiding the wasted double-buffering of a grid=(1,) pipeline.
    return pl.pallas_call(
        selfattn_kernel,
        out_shape=(jax.ShapeDtypeStruct((n, e), jnp.float32),
                   jax.ShapeDtypeStruct((n, e), jnp.float32)),
        compiler_params=pltpu.CompilerParams(vmem_limit_bytes=48 * 1024 * 1024),
    )(qf, kf, vf, p["wq_fused"], p["wk_fused"], p["wv_fused"],
      p["b_q"], p["b_k"], p["b_v"], p["w_out"], p["b_out"])


# --------------------------------------------------------------------------------------
# Glue: NCHW -> padded NHWC bf16 (pad 1 each side, H padded to even for the in-kernel
# stride-2 row split), image-block sizing, and the forward wrapper.
# --------------------------------------------------------------------------------------
def _pad_nhwc_bf16(x_nchw):
    n, c, h, w = x_nchw.shape
    x = jnp.transpose(x_nchw, (0, 2, 3, 1)).astype(jnp.bfloat16)
    hp = h + 2
    x = jnp.pad(x, ((0, 0), (1, 1 + (hp % 2)), (1, 1), (0, 0)))
    return x, (h - 1) // 2 + 1, w           # padded map, H_out, W_out


def _pick_image_block(n):
    if n <= 16:
        return n, n
    b = 16
    return b, ((n + b - 1) // b) * b


def attention_head_forward(queries, rois, positions, params):
    n, steps, c_in = queries.shape
    keys = rois + positions                  # glue (elementwise)
    xk, h_out, w_out = _pad_nhwc_bf16(keys)
    xv, _, _ = _pad_nhwc_bf16(rois)
    assert w_out == steps

    b_blk, n_pad = _pick_image_block(n)
    if n_pad != n:
        padn = n_pad - n
        xk = jnp.pad(xk, ((0, padn), (0, 0), (0, 0), (0, 0)))
        xv = jnp.pad(xv, ((0, padn), (0, 0), (0, 0), (0, 0)))
    x_kv = jnp.stack([xk, xv], axis=0)       # (2, n_pad, Hp2, Wp, Cin) bf16

    feats = conv_gn_relu_hmean_pair(
        x_kv, params["conv_w_kv"], params["gn_gamma_kv"], params["gn_beta_kv"],
        params["num_groups"], h_out, w_out, b_blk)          # (2, n_pad, w_out*Cout) bf16

    kf = feats[0, :n]                         # already bf16, lane-dense, kernel-2 ready
    vf = feats[1, :n]
    # queries = WordEmbedding before_rnn, (N, steps, C_in); PyTorch .view flattens t*C_in + c.
    qf = queries.reshape(n, steps * c_in).astype(jnp.bfloat16)

    return self_attention_and_normalize(qf, kf, vf, params)


# --------------------------------------------------------------------------------------
# Deterministic synthetic parameters (PyTorch layout) + one-time layout/dtype/fusion prep.
# Real module: in_channels=256, embed_dim=1024, steps=10, GN groups=32.
# Small config: in_channels=64, embed_dim=128, steps=W=8, H=16, GN groups=8, N=4.
# --------------------------------------------------------------------------------------
def make_params(key, c_in, c_out, steps, embed_dim, num_groups):
    ks = jax.random.split(key, 12)
    s = 0.05

    def rnd(k, shape):
        return jax.random.normal(k, shape, jnp.float32) * s

    return {
        "num_groups": num_groups,
        "k_conv_w": rnd(ks[0], (c_out, c_in, 3, 3)),
        "v_conv_w": rnd(ks[1], (c_out, c_in, 3, 3)),
        "k_gn_gamma": jnp.ones((c_out,), jnp.float32),
        "k_gn_beta": jnp.zeros((c_out,), jnp.float32),
        "v_gn_gamma": jnp.ones((c_out,), jnp.float32),
        "v_gn_beta": jnp.zeros((c_out,), jnp.float32),
        # Linear weights stored transposed (in, out) so kernels do y = x @ W
        "wq_proj": rnd(ks[2], (c_in * steps, embed_dim)),
        "wk_proj": rnd(ks[3], (c_out * steps, embed_dim)),   # rows indexed c*steps + w (PyTorch)
        "wv_proj": rnd(ks[4], (c_out * steps, embed_dim)),
        "w_in_q": rnd(ks[5], (embed_dim, embed_dim)),
        "w_in_k": rnd(ks[6], (embed_dim, embed_dim)),
        "w_in_v": rnd(ks[7], (embed_dim, embed_dim)),
        "b_in_q": rnd(ks[8], (1, embed_dim)),
        "b_in_k": rnd(ks[9], (1, embed_dim)),
        "b_in_v": rnd(ks[10], (1, embed_dim)),
        "w_out": rnd(ks[11], (embed_dim, embed_dim)),
        "b_out": jnp.zeros((1, embed_dim), jnp.float32),
    }


def prepare_params(p, c_in, c_out, steps, embed_dim):
    """One-time (offline) prep: conv weights as (2, 9, Cin, Cout) bf16 tap matrices,
    GN affine stacked, and the Linear proj + MHA in_proj fused in f32 (scale folded into q)
    before a single bf16 cast.  wk/wv rows are permuted from PyTorch's (c*W + w) flatten
    order to kernel 1's (w*Cout + c) output order."""
    bf16 = jnp.bfloat16

    def conv_w_taps(w_oihw):                 # (Cout, Cin, 3, 3) -> (9, Cin, Cout), tap = dy*3+dx
        return jnp.transpose(w_oihw, (2, 3, 1, 0)).reshape(9, c_in, c_out)

    def permute_rows(w):                     # rows c*steps + w  ->  rows w*Cout + c
        return jnp.transpose(w.reshape(c_out, steps, embed_dim), (1, 0, 2)).reshape(
            steps * c_out, embed_dim)

    scale = 1.0 / math.sqrt(embed_dim)       # single-head MHA scaling, folded into q weight/bias
    wq_fused = (p["wq_proj"] @ p["w_in_q"]) * scale          # f32 offline fusion
    wk_fused = permute_rows(p["wk_proj"]) @ p["w_in_k"]
    wv_fused = permute_rows(p["wv_proj"]) @ p["w_in_v"]

    return {
        "num_groups": p["num_groups"],
        "conv_w_kv": jnp.stack([conv_w_taps(p["k_conv_w"]),
                                conv_w_taps(p["v_conv_w"])], axis=0).astype(bf16),
        "gn_gamma_kv": jnp.stack([p["k_gn_gamma"], p["v_gn_gamma"]], 0).reshape(2, 1, c_out),
        "gn_beta_kv": jnp.stack([p["k_gn_beta"], p["v_gn_beta"]], 0).reshape(2, 1, c_out),
        "wq_fused": wq_fused.astype(bf16),
        "wk_fused": wk_fused.astype(bf16),
        "wv_fused": wv_fused.astype(bf16),
        "b_q": p["b_in_q"] * scale,
        "b_k": p["b_in_k"],
        "b_v": p["b_in_v"],
        "w_out": p["w_out"].astype(bf16),
        "b_out": p["b_out"],
    }


if __name__ == "__main__":
    N, C_IN, H, W = 4, 64, 16, 8          # W == steps (pooler resolution[1])
    STEPS = W
    C_OUT = C_IN // 2
    EMBED = 128
    GROUPS = 8

    root = jax.random.PRNGKey(0)
    k_par, k_q, k_r, k_p = jax.random.split(root, 4)

    params = prepare_params(make_params(k_par, C_IN, C_OUT, STEPS, EMBED, GROUPS),
                            C_IN, C_OUT, STEPS, EMBED)

    # queries = WordEmbedding `before_rnn` (detached), shape (N, steps, C_in)
    queries = jax.random.normal(k_q, (N, STEPS, C_IN), jnp.float32)
    # rois / positions = Pooler + position-encoding outputs, NCHW (N, C_in, H, W)
    rois = jax.random.normal(k_r, (N, C_IN, H, W), jnp.float32)
    positions = jax.random.normal(k_p, (N, C_IN, H, W), jnp.float32)

    img_embedding, img_embedding_nor = attention_head_forward(queries, rois, positions, params)
    jax.block_until_ready((img_embedding, img_embedding_nor))

    assert img_embedding.shape == (N, EMBED)
    assert img_embedding_nor.shape == (N, EMBED)
    assert bool(jnp.all(jnp.isfinite(img_embedding)))
    assert bool(jnp.all(jnp.isfinite(img_embedding_nor)))
    print("KERNEL_OK")
</pallas_src>

<mosaic_0001>
module attributes {stable_mosaic.version = 11 : i64} {
  func.func @kernel(%arg0: i32, %arg1: i32, %arg2: memref<1x4x18x10x64xbf16, #tpu.memory_space<vmem>>, %arg3: memref<1x9x64x32xbf16, #tpu.memory_space<vmem>>, %arg4: memref<1x1x32xf32, #tpu.memory_space<vmem>>, %arg5: memref<1x1x32xf32, #tpu.memory_space<vmem>>, %arg6: memref<32x32xf32, #tpu.memory_space<vmem>>, %arg7: memref<1x4x256xbf16, #tpu.memory_space<vmem>>) attributes {dimension_semantics = [#tpu.dimension_semantics<parallel>, #tpu.dimension_semantics<parallel>], iteration_bounds = array<i64: 2, 1>, scalar_prefetch = 0 : i64, scratch_operands = 0 : i64, tpu.core_type = #tpu.core_type<tc>, window_params = [{transform_indices = @transform_0, window_bounds = array<i64: 1, 4, 18, 10, 64>}, {transform_indices = @transform_1, window_bounds = array<i64: 1, 9, 64, 32>}, {transform_indices = @transform_2, window_bounds = array<i64: 1, 1, 32>}, {transform_indices = @transform_3, window_bounds = array<i64: 1, 1, 32>}, {pipeline_mode = #tpu.pipeline_mode<synchronous>, transform_indices = @transform_4, window_bounds = array<i64: 32, 32>}, {transform_indices = @transform_5, window_bounds = array<i64: 1, 4, 256>}]} {
    %c0 = arith.constant 0 : index
    %c0_0 = arith.constant 0 : index
    %c0_1 = arith.constant 0 : index
    %c0_2 = arith.constant 0 : index
    %c0_3 = arith.constant 0 : index
    %0 = vector.load %arg2[%c0, %c0_0, %c0_1, %c0_2, %c0_3] : memref<1x4x18x10x64xbf16, #tpu.memory_space<vmem>>, vector<1x4x18x10x64xbf16>
    %1 = vector.shape_cast %0 : vector<1x4x18x10x64xbf16> to vector<4x18x10x64xbf16>
    %2 = vector.shape_cast %1 : vector<4x18x10x64xbf16> to vector<4x9x2x10x64xbf16>
    %3 = vector.extract_strided_slice %2 {offsets = [0, 0, 0, 0, 0], sizes = [4, 8, 1, 10, 64], strides = [1, 1, 1, 1, 1]} : vector<4x9x2x10x64xbf16> to vector<4x8x1x10x64xbf16>
    %4 = vector.shape_cast %3 : vector<4x8x1x10x64xbf16> to vector<4x8x10x64xbf16>
    %5 = vector.extract_strided_slice %4 {offsets = [0, 0, 0, 0], sizes = [4, 8, 8, 64], strides = [1, 1, 1, 1]} : vector<4x8x10x64xbf16> to vector<4x8x8x64xbf16>
    %6 = vector.shape_cast %5 : vector<4x8x8x64xbf16> to vector<256x64xbf16>
    %c0_4 = arith.constant 0 : index
    %c0_5 = arith.constant 0 : index
    %c0_6 = arith.constant 0 : index
    %c0_7 = arith.constant 0 : index
    %7 = vector.load %arg3[%c0_4, %c0_5, %c0_6, %c0_7] : memref<1x9x64x32xbf16, #tpu.memory_space<vmem>>, vector<1x1x64x32xbf16>
    %8 = vector.shape_cast %7 : vector<1x1x64x32xbf16> to vector<64x32xbf16>
    %cst = arith.constant dense<0.000000e+00> : vector<256x32xf32>
    %9 = tpu.matmul %6, %8, %cst {dimension_numbers = #tpu.dot_dimension_numbers<[1], [0], [0], [1], [0, 0, 1, 1], [], []>} : vector<256x64xbf16>, vector<64x32xbf16>, vector<256x32xf32> -> vector<256x32xf32>
    %10 = vector.extract_strided_slice %4 {offsets = [0, 0, 1, 0], sizes = [4, 8, 8, 64], strides = [1, 1, 1, 1]} : vector<4x8x10x64xbf16> to vector<4x8x8x64xbf16>
    %11 = vector.shape_cast %10 : vector<4x8x8x64xbf16> to vector<256x64xbf16>
    %c0_8 = arith.constant 0 : index
    %c1 = arith.constant 1 : index
    %c0_9 = arith.constant 0 : index
    %c0_10 = arith.constant 0 : index
    %12 = vector.load %arg3[%c0_8, %c1, %c0_9, %c0_10] : memref<1x9x64x32xbf16, #tpu.memory_space<vmem>>, vector<1x1x64x32xbf16>
    %13 = vector.shape_cast %12 : vector<1x1x64x32xbf16> to vector<64x32xbf16>
    %cst_11 = arith.constant dense<0.000000e+00> : vector<256x32xf32>
    %14 = tpu.matmul %11, %13, %cst_11 {dimension_numbers = #tpu.dot_dimension_numbers<[1], [0], [0], [1], [0, 0, 1, 1], [], []>} : vector<256x64xbf16>, vector<64x32xbf16>, vector<256x32xf32> -> vector<256x32xf32>
    %15 = arith.addf %9, %14 : vector<256x32xf32>
    %16 = vector.extract_strided_slice %4 {offsets = [0, 0, 2, 0], sizes = [4, 8, 8, 64], strides = [1, 1, 1, 1]} : vector<4x8x10x64xbf16> to vector<4x8x8x64xbf16>
    %17 = vector.shape_cast %16 : vector<4x8x8x64xbf16> to vector<256x64xbf16>
    %c0_12 = arith.constant 0 : index
    %c2 = arith.constant 2 : index
    %c0_13 = arith.constant 0 : index
    %c0_14 = arith.constant 0 : index
    %18 = vector.load %arg3[%c0_12, %c2, %c0_13, %c0_14] : memref<1x9x64x32xbf16, #tpu.memory_space<vmem>>, vector<1x1x64x32xbf16>
    %19 = vector.shape_cast %18 : vector<1x1x64x32xbf16> to vector<64x32xbf16>
    %cst_15 = arith.constant dense<0.000000e+00> : vector<256x32xf32>
    %20 = tpu.matmul %17, %19, %cst_15 {dimension_numbers = #tpu.dot_dimension_numbers<[1], [0], [0], [1], [0, 0, 1, 1], [], []>} : vector<256x64xbf16>, vector<64x32xbf16>, vector<256x32xf32> -> vector<256x32xf32>
    %21 = arith.addf %15, %20 : vector<256x32xf32>
    %22 = vector.extract_strided_slice %2 {offsets = [0, 0, 1, 0, 0], sizes = [4, 8, 1, 10, 64], strides = [1, 1, 1, 1, 1]} : vector<4x9x2x10x64xbf16> to vector<4x8x1x10x64xbf16>
    %23 = vector.shape_cast %22 : vector<4x8x1x10x64xbf16> to vector<4x8x10x64xbf16>
    %24 = vector.extract_strided_slice %23 {offsets = [0, 0, 0, 0], sizes = [4, 8, 8, 64], strides = [1, 1, 1, 1]} : vector<4x8x10x64xbf16> to vector<4x8x8x64xbf16>
    %25 = vector.shape_cast %24 : vector<4x8x8x64xbf16> to vector<256x64xbf16>
    %c0_16 = arith.constant 0 : index
    %c3 = arith.constant 3 : index
    %c0_17 = arith.constant 0 : index
    %c0_18 = arith.constant 0 : index
    %26 = vector.load %arg3[%c0_16, %c3, %c0_17, %c0_18] : memref<1x9x64x32xbf16, #tpu.memory_space<vmem>>, vector<1x1x64x32xbf16>
    %27 = vector.shape_cast %26 : vector<1x1x64x32xbf16> to vector<64x32xbf16>
    %cst_19 = arith.constant dense<0.000000e+00> : vector<256x32xf32>
    %28 = tpu.matmul %25, %27, %cst_19 {dimension_numbers = #tpu.dot_dimension_numbers<[1], [0], [0], [1], [0, 0, 1, 1], [], []>} : vector<256x64xbf16>, vector<64x32xbf16>, vector<256x32xf32> -> vector<256x32xf32>
    %29 = arith.addf %21, %28 : vector<256x32xf32>
    %30 = vector.extract_strided_slice %23 {offsets = [0, 0, 1, 0], sizes = [4, 8, 8, 64], strides = [1, 1, 1, 1]} : vector<4x8x10x64xbf16> to vector<4x8x8x64xbf16>
    %31 = vector.shape_cast %30 : vector<4x8x8x64xbf16> to vector<256x64xbf16>
    %c0_20 = arith.constant 0 : index
    %c4 = arith.constant 4 : index
    %c0_21 = arith.constant 0 : index
    %c0_22 = arith.constant 0 : index
    %32 = vector.load %arg3[%c0_20, %c4, %c0_21, %c0_22] : memref<1x9x64x32xbf16, #tpu.memory_space<vmem>>, vector<1x1x64x32xbf16>
    %33 = vector.shape_cast %32 : vector<1x1x64x32xbf16> to vector<64x32xbf16>
    %cst_23 = arith.constant dense<0.000000e+00> : vector<256x32xf32>
    %34 = tpu.matmul %31, %33, %cst_23 {dimension_numbers = #tpu.dot_dimension_numbers<[1], [0], [0], [1], [0, 0, 1, 1], [], []>} : vector<256x64xbf16>, vector<64x32xbf16>, vector<256x32xf32> -> vector<256x32xf32>
    %35 = arith.addf %29, %34 : vector<256x32xf32>
    %36 = vector.extract_strided_slice %23 {offsets = [0, 0, 2, 0], sizes = [4, 8, 8, 64], strides = [1, 1, 1, 1]} : vector<4x8x10x64xbf16> to vector<4x8x8x64xbf16>
    %37 = vector.shape_cast %36 : vector<4x8x8x64xbf16> to vector<256x64xbf16>
    %c0_24 = arith.constant 0 : index
    %c5 = arith.constant 5 : index
    %c0_25 = arith.constant 0 : index
    %c0_26 = arith.constant 0 : index
    %38 = vector.load %arg3[%c0_24, %c5, %c0_25, %c0_26] : memref<1x9x64x32xbf16, #tpu.memory_space<vmem>>, vector<1x1x64x32xbf16>
    %39 = vector.shape_cast %38 : vector<1x1x64x32xbf16> to vector<64x32xbf16>
    %cst_27 = arith.constant dense<0.000000e+00> : vector<256x32xf32>
    %40 = tpu.matmul %37, %39, %cst_27 {dimension_numbers = #tpu.dot_dimension_numbers<[1], [0], [0], [1], [0, 0, 1, 1], [], []>} : vector<256x64xbf16>, vector<64x32xbf16>, vector<256x32xf32> -> vector<256x32xf32>
    %41 = arith.addf %35, %40 : vector<256x32xf32>
    %42 = vector.extract_strided_slice %2 {offsets = [0, 1, 0, 0, 0], sizes = [4, 8, 1, 10, 64], strides = [1, 1, 1, 1, 1]} : vector<4x9x2x10x64xbf16> to vector<4x8x1x10x64xbf16>
    %43 = vector.shape_cast %42 : vector<4x8x1x10x64xbf16> to vector<4x8x10x64xbf16>
    %44 = vector.extract_strided_slice %43 {offsets = [0, 0, 0, 0], sizes = [4, 8, 8, 64], strides = [1, 1, 1, 1]} : vector<4x8x10x64xbf16> to vector<4x8x8x64xbf16>
    %45 = vector.shape_cast %44 : vector<4x8x8x64xbf16> to vector<256x64xbf16>
    %c0_28 = arith.constant 0 : index
    %c6 = arith.constant 6 : index
    %c0_29 = arith.constant 0 : index
    %c0_30 = arith.constant 0 : index
    %46 = vector.load %arg3[%c0_28, %c6, %c0_29, %c0_30] : memref<1x9x64x32xbf16, #tpu.memory_space<vmem>>, vector<1x1x64x32xbf16>
    %47 = vector.shape_cast %46 : vector<1x1x64x32xbf16> to vector<64x32xbf16>
    %cst_31 = arith.constant dense<0.000000e+00> : vector<256x32xf32>
    %48 = tpu.matmul %45, %47, %cst_31 {dimension_numbers = #tpu.dot_dimension_numbers<[1], [0], [0], [1], [0, 0, 1, 1], [], []>} : vector<256x64xbf16>, vector<64x32xbf16>, vector<256x32xf32> -> vector<256x32xf32>
    %49 = arith.addf %41, %48 : vector<256x32xf32>
    %50 = vector.extract_strided_slice %43 {offsets = [0, 0, 1, 0], sizes = [4, 8, 8, 64], strides = [1, 1, 1, 1]} : vector<4x8x10x64xbf16> to vector<4x8x8x64xbf16>
    %51 = vector.shape_cast %50 : vector<4x8x8x64xbf16> to vector<256x64xbf16>
    %c0_32 = arith.constant 0 : index
    %c7 = arith.constant 7 : index
    %c0_33 = arith.constant 0 : index
    %c0_34 = arith.constant 0 : index
    %52 = vector.load %arg3[%c0_32, %c7, %c0_33, %c0_34] : memref<1x9x64x32xbf16, #tpu.memory_space<vmem>>, vector<1x1x64x32xbf16>
    %53 = vector.shape_cast %52 : vector<1x1x64x32xbf16> to vector<64x32xbf16>
    %cst_35 = arith.constant dense<0.000000e+00> : vector<256x32xf32>
    %54 = tpu.matmul %51, %53, %cst_35 {dimension_numbers = #tpu.dot_dimension_numbers<[1], [0], [0], [1], [0, 0, 1, 1], [], []>} : vector<256x64xbf16>, vector<64x32xbf16>, vector<256x32xf32> -> vector<256x32xf32>
    %55 = arith.addf %49, %54 : vector<256x32xf32>
    %56 = vector.extract_strided_slice %43 {offsets = [0, 0, 2, 0], sizes = [4, 8, 8, 64], strides = [1, 1, 1, 1]} : vector<4x8x10x64xbf16> to vector<4x8x8x64xbf16>
    %57 = vector.shape_cast %56 : vector<4x8x8x64xbf16> to vector<256x64xbf16>
    %c0_36 = arith.constant 0 : index
    %c8 = arith.constant 8 : index
    %c0_37 = arith.constant 0 : index
    %c0_38 = arith.constant 0 : index
    %58 = vector.load %arg3[%c0_36, %c8, %c0_37, %c0_38] : memref<1x9x64x32xbf16, #tpu.memory_space<vmem>>, vector<1x1x64x32xbf16>
    %59 = vector.shape_cast %58 : vector<1x1x64x32xbf16> to vector<64x32xbf16>
    %cst_39 = arith.constant dense<0.000000e+00> : vector<256x32xf32>
    %60 = tpu.matmul %57, %59, %cst_39 {dimension_numbers = #tpu.dot_dimension_numbers<[1], [0], [0], [1], [0, 0, 1, 1], [], []>} : vector<256x64xbf16>, vector<64x32xbf16>, vector<256x32xf32> -> vector<256x32xf32>
    %61 = arith.addf %55, %60 : vector<256x32xf32>
    %62 = vector.shape_cast %61 : vector<256x32xf32> to vector<4x64x32xf32>
    %cst_40 = arith.constant dense<0.000000e+00> : vector<4x32xf32>
    %63 = vector.multi_reduction <add>, %62, %cst_40 [1] : vector<4x64x32xf32> to vector<4x32xf32>
    %64 = arith.mulf %62, %62 : vector<4x64x32xf32>
    %cst_41 = arith.constant dense<0.000000e+00> : vector<4x32xf32>
    %65 = vector.multi_reduction <add>, %64, %cst_41 [1] : vector<4x64x32xf32> to vector<4x32xf32>
    %66 = tpu.concatenate %63, %65 in 0 : vector<4x32xf32>, vector<4x32xf32> -> vector<8x32xf32>
    %c0_42 = arith.constant 0 : index
    %c0_43 = arith.constant 0 : index
    %67 = vector.load %arg6[%c0_42, %c0_43] : memref<32x32xf32, #tpu.memory_space<vmem>>, vector<32x32xf32>
    %cst_44 = arith.constant dense<0.000000e+00> : vector<8x32xf32>
    %68 = tpu.matmul %66, %67, %cst_44 {dimension_numbers = #tpu.dot_dimension_numbers<[1], [0], [0], [1], [0, 0, 1, 1], [], []>} : vector<8x32xf32>, vector<32x32xf32>, vector<8x32xf32> -> vector<8x32xf32>
    %69 = vector.extract_strided_slice %68 {offsets = [0, 0], sizes = [4, 32], strides = [1, 1]} : vector<8x32xf32> to vector<4x32xf32>
    %70 = vector.extract_strided_slice %68 {offsets = [4, 0], sizes = [4, 32], strides = [1, 1]} : vector<8x32xf32> to vector<4x32xf32>
    %71 = arith.mulf %69, %69 : vector<4x32xf32>
    %72 = arith.subf %70, %71 : vector<4x32xf32>
    %cst_45 = arith.constant 9.99999974E-6 : f32
    %73 = vector.broadcast %cst_45 : f32 to vector<4x32xf32>
    %74 = arith.addf %72, %73 : vector<4x32xf32>
    %75 = math.rsqrt %74 : vector<4x32xf32>
    %c0_46 = arith.constant 0 : index
    %c0_47 = arith.constant 0 : index
    %c0_48 = arith.constant 0 : index
    %76 = vector.load %arg4[%c0_46, %c0_47, %c0_48] : memref<1x1x32xf32, #tpu.memory_space<vmem>>, vector<1x1x32xf32>
    %77 = vector.shape_cast %76 : vector<1x1x32xf32> to vector<1x32xf32>
    %78 = vector.broadcast %77 : vector<1x32xf32> to vector<4x32xf32>
    %79 = arith.mulf %75, %78 : vector<4x32xf32>
    %c0_49 = arith.constant 0 : index
    %c0_50 = arith.constant 0 : index
    %c0_51 = arith.constant 0 : index
    %80 = vector.load %arg5[%c0_49, %c0_50, %c0_51] : memref<1x1x32xf32, #tpu.memory_space<vmem>>, vector<1x1x32xf32>
    %81 = vector.shape_cast %80 : vector<1x1x32xf32> to vector<1x32xf32>
    %82 = arith.mulf %69, %79 : vector<4x32xf32>
    %83 = vector.broadcast %81 : vector<1x32xf32> to vector<4x32xf32>
    %84 = arith.subf %83, %82 : vector<4x32xf32>
    %85 = vector.shape_cast %79 : vector<4x32xf32> to vector<4x1x32xf32>
    %86 = vector.broadcast %85 : vector<4x1x32xf32> to vector<4x64x32xf32>
    %87 = arith.mulf %62, %86 : vector<4x64x32xf32>
    %88 = vector.shape_cast %84 : vector<4x32xf32> to vector<4x1x32xf32>
    %89 = vector.broadcast %88 : vector<4x1x32xf32> to vector<4x64x32xf32>
    %90 = arith.addf %87, %89 : vector<4x64x32xf32>
    %cst_52 = arith.constant 0.000000e+00 : f32
    %91 = vector.broadcast %cst_52 : f32 to vector<4x64x32xf32>
    %92 = arith.maximumf %90, %91 : vector<4x64x32xf32>
    %93 = vector.shape_cast %92 : vector<4x64x32xf32> to vector<4x8x8x32xf32>
    %cst_53 = arith.constant dense<0.000000e+00> : vector<4x8x32xf32>
    %94 = vector.multi_reduction <add>, %93, %cst_53 [1] : vector<4x8x8x32xf32> to vector<4x8x32xf32>
    %cst_54 = arith.constant 1.250000e-01 : f32
    %95 = vector.broadcast %cst_54 : f32 to vector<4x8x32xf32>
    %96 = arith.mulf %94, %95 : vector<4x8x32xf32>
    %97 = vector.extract_strided_slice %96 {offsets = [0, 0, 0], sizes = [4, 1, 32], strides = [1, 1, 1]} : vector<4x8x32xf32> to vector<4x1x32xf32>
    %98 = vector.shape_cast %97 : vector<4x1x32xf32> to vector<4x32xf32>
    %99 = vector.extract_strided_slice %96 {offsets = [0, 1, 0], sizes = [4, 1, 32], strides = [1, 1, 1]} : vector<4x8x32xf32> to vector<4x1x32xf32>
    %100 = vector.shape_cast %99 : vector<4x1x32xf32> to vector<4x32xf32>
    %101 = vector.extract_strided_slice %96 {offsets = [0, 2, 0], sizes = [4, 1, 32], strides = [1, 1, 1]} : vector<4x8x32xf32> to vector<4x1x32xf32>
    %102 = vector.shape_cast %101 : vector<4x1x32xf32> to vector<4x32xf32>
    %103 = vector.extract_strided_slice %96 {offsets = [0, 3, 0], sizes = [4, 1, 32], strides = [1, 1, 1]} : vector<4x8x32xf32> to vector<4x1x32xf32>
    %104 = vector.shape_cast %103 : vector<4x1x32xf32> to vector<4x32xf32>
    %105 = vector.extract_strided_slice %96 {offsets = [0, 4, 0], sizes = [4, 1, 32], strides = [1, 1, 1]} : vector<4x8x32xf32> to vector<4x1x32xf32>
    %106 = vector.shape_cast %105 : vector<4x1x32xf32> to vector<4x32xf32>
    %107 = vector.extract_strided_slice %96 {offsets = [0, 5, 0], sizes = [4, 1, 32], strides = [1, 1, 1]} : vector<4x8x32xf32> to vector<4x1x32xf32>
    %108 = vector.shape_cast %107 : vector<4x1x32xf32> to vector<4x32xf32>
    %109 = vector.extract_strided_slice %96 {offsets = [0, 6, 0], sizes = [4, 1, 32], strides = [1, 1, 1]} : vector<4x8x32xf32> to vector<4x1x32xf32>
    %110 = vector.shape_cast %109 : vector<4x1x32xf32> to vector<4x32xf32>
    %111 = vector.extract_strided_slice %96 {offsets = [0, 7, 0], sizes = [4, 1, 32], strides = [1, 1, 1]} : vector<4x8x32xf32> to vector<4x1x32xf32>
    %112 = vector.shape_cast %111 : vector<4x1x32xf32> to vector<4x32xf32>
    %113 = tpu.concatenate %98, %100, %102, %104, %106, %108, %110, %112 in 1 : vector<4x32xf32>, vector<4x32xf32>, vector<4x32xf32>, vector<4x32xf32>, vector<4x32xf32>, vector<4x32xf32>, vector<4x32xf32>, vector<4x32xf32> -> vector<4x256xf32>
    %114 = arith.truncf %113 : vector<4x256xf32> to vector<4x256xbf16>
    %c0_55 = arith.constant 0 : index
    %c0_56 = arith.constant 0 : index
    %c0_57 = arith.constant 0 : index
    %115 = vector.load %arg7[%c0_55, %c0_56, %c0_57] : memref<1x4x256xbf16, #tpu.memory_space<vmem>>, vector<1x4x256xbf16>
    %116 = vector.shape_cast %115 : vector<1x4x256xbf16> to vector<4x256xbf16>
    %117 = vector.shape_cast %114 : vector<4x256xbf16> to vector<1x4x256xbf16>
    tpu.vector_store %arg7[%c0_55, %c0_56, %c0_57], %117 {strides = array<i32>} : memref<1x4x256xbf16, #tpu.memory_space<vmem>>, vector<1x4x256xbf16>,
    return
  }
  func.func @transform_0(%arg0: i32, %arg1: i32) -> (i32, i32, i32, i32, i32) {
    %c0_i32 = arith.constant 0 : i32
    %c0_i32_0 = arith.constant 0 : i32
    %c0_i32_1 = arith.constant 0 : i32
    %c0_i32_2 = arith.constant 0 : i32
    return %arg0, %arg1, %c0_i32, %c0_i32_0, %c0_i32_1 : i32, i32, i32, i32, i32
  }
  func.func @transform_1(%arg0: i32, %arg1: i32) -> (i32, i32, i32, i32) {
    %c0_i32 = arith.constant 0 : i32
    %c0_i32_0 = arith.constant 0 : i32
    %c0_i32_1 = arith.constant 0 : i32
    %c0_i32_2 = arith.constant 0 : i32
    return %arg0, %c0_i32, %c0_i32_0, %c0_i32_1 : i32, i32, i32, i32
  }
  func.func @transform_2(%arg0: i32, %arg1: i32) -> (i32, i32, i32) {
    %c0_i32 = arith.constant 0 : i32
    %c0_i32_0 = arith.constant 0 : i32
    %c0_i32_1 = arith.constant 0 : i32
    return %arg0, %c0_i32, %c0_i32_0 : i32, i32, i32
  }
  func.func @transform_3(%arg0: i32, %arg1: i32) -> (i32, i32, i32) {
    %c0_i32 = arith.constant 0 : i32
    %c0_i32_0 = arith.constant 0 : i32
    %c0_i32_1 = arith.constant 0 : i32
    return %arg0, %c0_i32, %c0_i32_0 : i32, i32, i32
  }
  func.func @transform_4(%arg0: i32, %arg1: i32) -> (i32, i32) {
    %c0_i32 = arith.constant 0 : i32
    %c0_i32_0 = arith.constant 0 : i32
    %c0_i32_1 = arith.constant 0 : i32
    return %c0_i32, %c0_i32_0 : i32, i32
  }
  func.func @transform_5(%arg0: i32, %arg1: i32) -> (i32, i32, i32) {
    %c0_i32 = arith.constant 0 : i32
    %c0_i32_0 = arith.constant 0 : i32
    return %arg0, %arg1, %c0_i32 : i32, i32, i32
  }
}

</mosaic_0001>

<bundles_post_ra>
// kernel: tpu_custom_call.1
= control target key start
LH: loop header
LB: loop body
LE: loop exit
PB: predicated region body
PF: predicated region fallthrough
CT: control target
= control target key end

     0   :  { %10 = vsyncpa [#allocation3], 0  ;;  %s9173_s0 = inlined_call_operand.vmem [shape: bf16[2,4,18,10,64], index: 0, kind: input, shape index: {}]   ;;  %s9174_s1 = inlined_call_operand.vmem [shape: bf16[2,9,64,32], index: 1, kind: input, shape index: {}]   ;;  %s9175_s2 = inlined_call_operand.vmem [shape: f32[2,1,32], index: 2, kind: input, shape index: {}]   ;;  %s9176_s3 = inlined_call_operand.vmem [shape: f32[2,1,32], index: 3, kind: input, shape index: {}]   ;;  %s9177_s4 = inlined_call_operand.vmem [shape: f32[32,32], index: 4, kind: input, shape index: {}]   ;;  %s9178_s5 = inlined_call_operand.hbm [shape: bf16[2,4,256], index: 5, kind: output, shape index: {}]  }
   0x1   :  { %12 = vsyncpa [#allocation3 + $0x1], 0  ;;  %s7018_s18 = smov 0   ;;  %s7020_s19 = smov 0  }
   0x2   :  { %s7022_s20 = smov 0   ;;  %s7024_s21 = smov 0  }
   0x3   :  { %s7026_s22 = smov 0   ;;  %s7028_s23 = smov 0  }
   0x4 LB: > { %s5359_s24 = sadd.s32 4294967295, %s6978_s23   ;;  %s5360_s25 = sadd.s32 4294967294, %s6978_s23   ;;  %s6978_s23 = sphi %s7028_s23, %s18_s23   ;;  %s6974_s22 = sphi %s7026_s22, %s9421_s22   ;;  %s6970_s21 = sphi %s7024_s21, %s9420_s21   ;;  %s6966_s20 = sphi %s7022_s20, %s9419_s20   ;;  %s6962_s19 = sphi %s7020_s19, %s9418_s19   ;;  %s6958_s18 = sphi %s7018_s18, %s9417_s18  }
   0x5   : > { %s30_s26 = sadd.s32 1, %s6974_s22  ;;  %s166_s27 = sadd.s32 1, %s6966_s20 }
   0x6   : > { %p32_p0 = scmp.ge.s32.totalorder %s30_s26, 2  ;;  %p176_p1 = scmp.ne.s32.totalorder %s6966_s20, %s6962_s19 }
   0x7   : > { %p177_p2 = scmp.eq.s32.totalorder %s5359_s24, 1  ;;  %p182_p3 = scmp.ne.s32.totalorder %s6962_s19, %s6958_s18 }
   0x8   : > { %s9423_s26 = smov (%p32_p0, %s30_s26), 0  ;;  %p183_p5 = scmp.eq.s32.totalorder %s5360_s25, 1 }
   0x9   : > { %p7058_p4 = por %p177_p2, %p176_p1  ;;  %s161_s29 = ssub.s32 %s6974_s22, %s9423_s26 }
   0xa   : > { %p5363_p6 = scmp.ge.s32.totalorder %s6978_s23, 1  ;;  %p164_p7 = scmp.eq.s32.totalorder %s161_s29, 0 }
   0xb   : > { %p7065_p8 = por %p183_p5, %p182_p3  ;;  %p238_p9 = scmp.lt.s32.totalorder %s6978_s23, 3 }
   0xc   : > { %s7071_s6 = scalar_select %p164_p7, %s6966_s20, %s166_s27  }
   0xd   : > { %p239_p10 = pnand %p5363_p6, %p238_p9 }
   0xf   : > { %242 = sbr.rel (%p239_p10) target bundleno = 1078 (0x436), region = 40 }
  0x16   : > { %p283_p11 = scmp.lt.s32.totalorder %s6970_s21, 1  ;;  %vm449_vm0 = vsmask.f32 3328  ;;  %vm450_vm1 = vsmask.f32 7440  ;;  %vm981_vm3 = vcmask 523264  }
  0x17   : > { %vm7109_vm2 = vmor %vm449_vm0, %vm450_vm1  ;;  %vm1536_vm4 = vcmask 1042432   ;;  %vm1537_vm5 = vcmask 1046532   ;;  %vm6981_vm7 = vmmov 0   ;;  %vm4557_vm8 = vcmask 261120   ;;  %s6985_s16 = smov 32   ;;  %s6986_s17 = smov 64  }
  0x18   : > { %s7075_s7 = scalar_select %p283_p11, %s6970_s21, 1  ;;  %vm7523_vm6 = vmor %vm1536_vm4, %vm1537_vm5  ;;  %vm4762_vm9 = vcmask 1041409   ;;  %vm4773_vm10 = vcmask 1045509   ;;  %vm4764_vm11 = vcmask 1042434   ;;  %vm4775_vm12 = vcmask 1046534  }
  0x19   : > { %vm4766_vm13 = vcmask 1043459   ;;  %vm4777_vm14 = vcmask 1047559   ;;  %vm4780_vm15 = vcmask 1043456   ;;  %s279_s24 = sand.u32 1, %s6962_s19   ;;  %vm5214_vm0 = vcmask 785408   ;;  %s5833_s27 = sshll.u32 %s6970_s21, 6 }
  0x1a   : > { %s6660_s8 = smul.u32 576, %s7075_s7  ;;  %s5364_s25 = sshll.u32 %s279_s24, 2 }
  0x1b   : > { %s6661_s9 = smul.u32 288, %s7075_s7  ;;  %s281_s29 = scalar_lea.vmem [#allocation2], %s5364_s25 }
  0x1c   : > { %s7082_s12 = scalar_lea.vmem %s9173_s0, %s6660_s8  ;;  %s5250_s8 = sshll.u32 %s281_s29, 4  ;;  %s9128_s8 = int_to_ptr.vmem [resolvable:$true] %s5250_s8 }
  0x1d   : > { %s7087_s15 = scalar_lea.vmem %s9174_s1, %s6661_s9  ;;  %v305_v0 = vld [vmem:[%s7082_s12] sm:$0xf]  ;;  %v306_v2 = vld [vmem:[%s7082_s12 + $0x4] sm:$0x1]  ;;  %v309_v5 = vld [vmem:[%s7082_s12 + $0x10] sm:$0xf]  ;;  %s9126_s11 = scalar_lea.hbm %s9178_s5, %s5833_s27 }
  0x1e   : > { %v6739_v1 = vld [vmem:[%s7087_s15 + $0x20] sm:$0xff]   ;;  %v453_v3 = vshrl.u32 %v305_v0, 16  ;;  %v456_v6 = vshll.u32 %v305_v0, 16  ;;  %v6741_v7 = vld [vmem:[%s7087_s15 + $0x28] sm:$0xff]   ;;  %v6743_v10 = vld [vmem:[%s7087_s15 + $0x30] sm:$0xff]   ;;  %v462_v13 = vshll.u32 %v306_v2, 16 }
  0x1f   : > { %v6740_v4 = vld [vmem:[%s7087_s15 + $0x80] sm:$0xff]   ;;  %6019 = vmatprep.subr.bf16.mxu1 %v6739_v1  ;;  %v6742_v8 = vld [vmem:[%s7087_s15 + $0x88] sm:$0xff]   ;;  %v6744_v12 = vld [vmem:[%s7087_s15 + $0x90] sm:$0xff]   ;;  %v467_v14 = vshrl.u32 %v309_v5, 16  ;;  %v470_v25 = vshll.u32 %v309_v5, 16  ;;  %s5234_s21 = scalar_lea.sflag [#allocation3], %s279_s24 }
  0x20   : > { %6179 = vmatprep.subr.bf16.mxu0 %v6740_v4  ;;  %6020 = vmatpush3.bf16.msra.mxu1 %v6739_v1  ;;  %v455_v9 = vrot.slane %v453_v3, 4  ;;  %v458_v11 = vrot.slane %v456_v6, 5  ;;  %v6745_v15 = vld [vmem:[%s7087_s15 + $0x38] sm:$0xff]   ;;  %v310_v16 = vld [vmem:[%s7082_s12 + $0x14] sm:$0x1]  ;;  %v464_v23 = vrot.slane %v462_v13, 5 }
  0x21   : > { %6180 = vmatpush3.bf16.msra.mxu0 %v6740_v4  ;;  %6021 = vmatprep.subr.bf16.mxu1 %v6741_v7  ;;  %v313_v17 = vld [vmem:[%s7082_s12 + $0x20] sm:$0xf]  ;;  %v314_v18 = vld [vmem:[%s7082_s12 + $0x24] sm:$0x1]  ;;  %v6746_v20 = vld [vmem:[%s7087_s15 + $0x98] sm:$0xff]   ;;  %v469_v24 = vrot.slane %v467_v14, 4 }
  0x22   : > { %6181 = vmatprep.subr.bf16.mxu0 %v6742_v8  ;;  %v459_v19 = vor.u32 %v458_v11, %v455_v9  ;;  %v317_v21 = vld [vmem:[%s7082_s12 + $0x30] sm:$0xf]  ;;  %v318_v22 = vld [vmem:[%s7082_s12 + $0x34] sm:$0x1]  ;;  %v476_v26 = vshll.u32 %v310_v16, 16  ;;  %v481_v27 = vshrl.u32 %v313_v17, 16 }
  0x23   : > { %v321_v28 = vld [vmem:[%s7082_s12 + $0x40] sm:$0xf]  ;;  %v484_v29 = vshll.u32 %v313_v17, 16  ;;  %v490_v30 = vshll.u32 %v314_v18, 16  ;;  %v495_v31 = vshrl.u32 %v317_v21, 16  ;;  %v498_v32 = vshll.u32 %v317_v21, 16 }
  0x24   : > { %6022 = vmatpush3.bf16.msra.mxu1 %v6741_v7  ;;  %v322_v33 = vld [vmem:[%s7082_s12 + $0x44] sm:$0x1]  ;;  %v460_v34 = vrot.slane %v459_v19, 4  ;;  %v472_v35 = vrot.slane %v470_v25, 5  ;;  %v483_v36 = vrot.slane %v481_v27, 4  ;;  %v504_v37 = vshll.u32 %v318_v22, 16 }
  0x25   : > { %6182 = vmatpush3.bf16.msra.mxu0 %v6742_v8  ;;  %6023 = vmatprep.subr.bf16.mxu1 %v6743_v10  ;;  %v478_v39 = vrot.slane %v476_v26, 5  ;;  %v486_v40 = vrot.slane %v484_v29, 5  ;;  %v497_v41 = vrot.slane %v495_v31, 4  ;;  %v500_v42 = vrot.slane %v498_v32, 5  ;;  %v7114_v47 = vld [vmem:[%s7087_s15 + $0xa0] sm:$0xff]   ;;  %s6987_s13 = smov [#allocation2]  }
  0x26   : > { %6183 = vmatprep.subr.bf16.mxu0 %v6744_v12  ;;  %v473_v43 = vor.u32 %v472_v35, %v469_v24  ;;  %v492_v44 = vrot.slane %v490_v30, 5  ;;  %v509_v45 = vshrl.u32 %v321_v28, 16  ;;  %v512_v46 = vshll.u32 %v321_v28, 16  ;;  %v7119_v58 = vld [vmem:[%s7082_s12 + $0x8] sm:$0xf]  ;;  %v6749_v6 = vld [vmem:[%s7087_s15] sm:$0xff]  }
  0x27   : > { %v487_v48 = vor.u32 %v486_v40, %v483_v36  ;;  %v501_v49 = vor.u32 %v500_v42, %v497_v41  ;;  %v506_v50 = vrot.slane %v504_v37, 5  ;;  %v518_v51 = vshll.u32 %v322_v33, 16  ;;  %v7122_v59 = vld [vmem:[%s7082_s12 + $0xc] sm:$0x1]  ;;  %v7139_v2 = vld [vmem:[%s7082_s12 + $0x18] sm:$0xf] }
  0x28   : > { %6024 = vmatpush3.bf16.msra.mxu1 %v6743_v10  ;;  %v465_v52 = vsel %vm7109_vm2, %v460_v34, %v464_v23  ;;  %v474_v53 = vrot.slane %v473_v43, 4  ;;  %v511_v54 = vrot.slane %v509_v45, 4  ;;  %v514_v55 = vrot.slane %v512_v46, 5  ;;  %v7148_v7 = vld [vmem:[%s7082_s12 + $0x1c] sm:$0x1]  ;;  %v6752_v30 = vld [vmem:[%s7087_s15 + $0x8] sm:$0xff]  }
  0x29   : > { %6184 = vmatpush3.bf16.msra.mxu0 %v6744_v12  ;;  %6025 = vmatprep.subr.bf16.mxu1 %v6745_v15  ;;  %v488_v56 = vrot.slane %v487_v48, 4  ;;  %v502_v57 = vrot.slane %v501_v49, 4  ;;  %v520_v62 = vrot.slane %v518_v51, 5  ;;  %v2344_v8 = vshrl.u32 %v7119_v58, 16  ;;  %v7161_v14 = vld [vmem:[%s7082_s12 + $0x28] sm:$0xf] }
  0x2a   : > { %6185 = vmatprep.subr.bf16.mxu0 %v6746_v20  ;;  %v7127_v60 = vsel %vm7109_vm2, %v474_v53, %v478_v39  ;;  %v515_v61 = vor.u32 %v514_v55, %v511_v54  ;;  %v2347_v9 = vshll.u32 %v7119_v58, 16  ;;  %v2353_v10 = vshll.u32 %v7122_v59, 16  ;;  %v7175_v27 = vld [vmem:[%s7082_s12 + $0x3c] sm:$0x1]  ;;  %v325_v35 = vld [vmem:[%s7082_s12 + $0x50] sm:$0xf] }
  0x2b   : > { %9260 = vst [vmem:[#allocation5_spill] sm:$0xff] %v7127_v60  ;;  %v7131_v63 = vsel %vm7109_vm2, %v488_v56, %v492_v44  ;;  %v7135_v0 = vsel %vm7109_vm2, %v502_v57, %v506_v50  ;;  %v5375_v1 = vcombine.low %v465_v52, %v7127_v60  ;;  %v2358_v12 = vshrl.u32 %v7139_v2, 16  ;;  %v326_v41 = vld [vmem:[%s7082_s12 + $0x54] sm:$0x1]  ;;  %v7187_v46 = vld [vmem:[%s7082_s12 + $0x48] sm:$0xf] }
  0x2c   : > { %6026 = vmatpush3.bf16.msra.mxu1 %v6745_v15  ;;  %9261 = vst [vmem:[#allocation6_spill] sm:$0xff] %v7131_v63  ;;  %9262 = vst [vmem:[#allocation7_spill] sm:$0xff] %v7135_v0  ;;  %v516_v3 = vrot.slane %v515_v61, 4  ;;  %v5376_v4 = vcombine.low %v7131_v63, %v7135_v0  ;;  %v2361_v13 = vshll.u32 %v7139_v2, 16  ;;  %v7164_v15 = vld [vmem:[%s7082_s12 + $0x2c] sm:$0x1] }
  0x2d   : > { %6186 = vmatpush3.bf16.msra.mxu0 %v6746_v20  ;;  %6027 = vmatprep.mubr.msk.bf16.mxu1 %vm981_vm3, %v5375_v1  ;;  %v2346_v17 = vrot.slane %v2344_v8, 4  ;;  %v2349_v18 = vrot.slane %v2347_v9, 5  ;;  %v2355_v19 = vrot.slane %v2353_v10, 5  ;;  %v7169_v20 = vld [vmem:[%s7082_s12 + $0x38] sm:$0xf]  ;;  %v2360_v21 = vrot.slane %v2358_v12, 4 }
  0x2e   : > { %6219 = vmatprep.subr.bf16.mxu0 %v7114_v47  ;;  %v7155_v11 = vsel %vm7109_vm2, %v516_v3, %v520_v62  ;;  %6059 = vmatprep.subr.bf16.mxu1 %v6749_v6  ;;  %v2363_v22 = vrot.slane %v2361_v13, 5  ;;  %v2367_v23 = vshll.u32 %v7148_v7, 16  ;;  %v2372_v28 = vshrl.u32 %v7161_v14, 16  ;;  %v7193_v52 = vld [vmem:[%s7082_s12 + $0x4c] sm:$0x1]  ;;  %v6754_v57 = vld [vmem:[%s7087_s15 + $0x10] sm:$0xff]  }
  0x2f   : > { %9263 = vst [vmem:[#allocation8_spill] sm:$0xff] %v7155_v11  ;;  %6028 = vmatmul.mubr.msk.bf16.vlgmr.msra.gmra.mrb[0].mxu1 %vm981_vm3, %v5376_v4  ;;  %v2350_v25 = vor.u32 %v2349_v18, %v2346_v17  ;;  %v2375_v29 = vshll.u32 %v7161_v14, 16  ;;  %v2381_v33 = vshll.u32 %v7164_v15, 16  ;;  %v2386_v34 = vshrl.u32 %v7169_v20, 16  ;;  %v7200_v4 = vld [vmem:[%s7082_s12 + $0x58] sm:$0xf] }
  0x30   : > { %6060 = vmatpush3.bf16.msra.mxu1 %v6749_v6  ;;  %v2364_v31 = vor.u32 %v2363_v22, %v2360_v21  ;;  %v2369_v32 = vrot.slane %v2367_v23, 5  ;;  %v2374_v37 = vrot.slane %v2372_v28, 4  ;;  %v2389_v40 = vshll.u32 %v7169_v20, 16  ;;  %v7208_v18 = vld [vmem:[%s7082_s12 + $0x5c] sm:$0x1]  ;;  %s6904_s14 = sshll.u32 %s6987_s13, 4  ;;  %s6905_s14 = int_to_ptr.vmem [resolvable:$false] %s6904_s14 }
  0x31   : > { %v2351_v36 = vrot.slane %v2350_v25, 4  ;;  %v2377_v39 = vrot.slane %v2375_v29, 5  ;;  %6061 = vmatprep.subr.bf16.mxu1 %v6752_v30  ;;  %v2383_v43 = vrot.slane %v2381_v33, 5  ;;  %v2388_v44 = vrot.slane %v2386_v34, 4  ;;  %v329_v28 = vld [vmem:[%s7082_s12 + $0x60] sm:$0xf]  ;;  %p6907_p1 = scmp.lt.s32.totalorder %s9128_s8, %s6905_s14 }
  0x32   : > { %v2365_v42 = vrot.slane %v2364_v31, 4  ;;  %v2395_v45 = vshll.u32 %v7175_v27, 16  ;;  %v2391_v50 = vrot.slane %v2389_v40, 5  ;;  %v523_v56 = vshrl.u32 %v325_v35, 16  ;;  %v330_v33 = vld [vmem:[%s7082_s12 + $0x64] sm:$0x1] }
  0x33   : > { %v2356_v48 = vsel %vm7109_vm2, %v2351_v36, %v2355_v19  ;;  %v2378_v49 = vor.u32 %v2377_v39, %v2374_v37  ;;  %v526_v3 = vshll.u32 %v325_v35, 16  ;;  %v532_v8 = vshll.u32 %v326_v41, 16  ;;  %v333_v34 = vld [vmem:[%s7082_s12 + $0x70] sm:$0xf]  ;;  %v334_v40 = vld [vmem:[%s7082_s12 + $0x74] sm:$0x1] }
  0x34   : > { %6062 = vmatpush3.bf16.msra.mxu1 %v6752_v30  ;;  %v2370_v53 = vsel %vm7109_vm2, %v2365_v42, %v2369_v32  ;;  %v2397_v54 = vrot.slane %v2395_v45, 5  ;;  %v2392_v1 = vor.u32 %v2391_v50, %v2388_v44  ;;  %v525_v6 = vrot.slane %v523_v56, 4  ;;  %v6748_v41 = vld [vmem:[%s7087_s15 + $0xa8] sm:$0xff]   ;;  %v367_v26 = vld [vmem:[%s7082_s12 + $0x100] sm:$0xf] }
  0x35   : > { %v5575_v61 = vcombine.low %v2356_v48, %v2370_v53  ;;  %v2379_v62 = vrot.slane %v2378_v49, 4  ;;  %v2400_v9 = vshrl.u32 %v7187_v46, 16  ;;  %v2403_v10 = vshll.u32 %v7187_v46, 16  ;;  %6063 = vmatprep.subr.bf16.mxu1 %v6754_v57  ;;  %v7222_v48 = vld [vmem:[%s7082_s12 + $0x68] sm:$0xf] }
  0x36   : > { %v2393_v13 = vrot.slane %v2392_v1, 4  ;;  %v528_v17 = vrot.slane %v526_v3, 5  ;;  %v2409_v19 = vshll.u32 %v7193_v52, 16  ;;  %v534_v21 = vrot.slane %v532_v8, 5  ;;  %v7226_v56 = vld [vmem:[%s7082_s12 + $0x6c] sm:$0x1] }
  0x37   : > { %6187 = vmatprep.mubr.msk.bf16.mxu0 %vm981_vm3, %v5575_v61  ;;  %v2384_v12 = vsel %vm7109_vm2, %v2379_v62, %v2383_v43  ;;  %v2402_v22 = vrot.slane %v2400_v9, 4  ;;  %v2405_v23 = vrot.slane %v2403_v10, 5  ;;  %v2414_v25 = vshrl.u32 %v7200_v4, 16  ;;  %v7234_v3 = vld [vmem:[%s7082_s12 + $0x78] sm:$0xf]  ;;  %v6750_v10 = vld [vmem:[%s7087_s15 + $0xb0] sm:$0xff]  }
  0x38   : > { %6064 = vmatpush3.bf16.msra.mxu1 %v6754_v57  ;;  %v2398_v29 = vsel %vm7109_vm2, %v2393_v13, %v2397_v54  ;;  %v529_v30 = vor.u32 %v528_v17, %v525_v6  ;;  %v2411_v31 = vrot.slane %v2409_v19, 5  ;;  %v2417_v32 = vshll.u32 %v7200_v4, 16  ;;  %v7460_v63 = vld [vmem:[%s7082_s12 + $0x150] sm:$0xf] }
  0x39   : > { %v5576_v35 = vcombine.low %v2384_v12, %v2398_v29  ;;  %v2406_v36 = vor.u32 %v2405_v23, %v2402_v22  ;;  %v2416_v37 = vrot.slane %v2414_v25, 4  ;;  %v2423_v39 = vshll.u32 %v7208_v18, 16  ;;  %v339_v22 = vld [vmem:[%s7082_s12 + $0x90] sm:$0xf]  ;;  %v6756_v23 = vld [vmem:[%s7087_s15 + $0x18] sm:$0xff]   ;;  %9280 = vst [vmem:[#allocation25_spill] sm:$0xff] %v7460_v63 }
  0x3a   : > { %v530_v42 = vrot.slane %v529_v30, 4  ;;  %v2419_v43 = vrot.slane %v2417_v32, 5  ;;  %v537_v44 = vshrl.u32 %v329_v28, 16  ;;  %v540_v45 = vshll.u32 %v329_v28, 16  ;;  %6065 = vmatprep.subr.bf16.mxu1 %v6756_v23 }
  0x3b   : > { %6188 = vmatmul.mubr.msk.bf16.vlgmr.msra.gmra.mrb[0].mxu0 %vm981_vm3, %v5576_v35  ;;  %v2407_v49 = vrot.slane %v2406_v36, 4  ;;  %v2425_v50 = vrot.slane %v2423_v39, 5  ;;  %v546_v53 = vshll.u32 %v330_v33, 16  ;;  %v551_v54 = vshrl.u32 %v333_v34, 16  ;;  %v343_v36 = vld [vmem:[%s7082_s12 + $0xa0] sm:$0xf] }
  0x3c   : > { %6220 = vmatpush3.bf16.msra.mxu0 %v7114_v47  ;;  %v7231_v57 = vsel %vm7109_vm2, %v530_v42, %v534_v21  ;;  %v2420_v61 = vor.u32 %v2419_v43, %v2416_v37  ;;  %v539_v62 = vrot.slane %v537_v44, 4  ;;  %v542_v1 = vrot.slane %v540_v45, 5  ;;  %v7242_v21 = vld [vmem:[%s7082_s12 + $0x7c] sm:$0x1]  ;;  %6066 = vmatpush3.bf16.msra.mxu1 %v6756_v23 }
  0x3d   : > { %9264 = vst [vmem:[#allocation9_spill] sm:$0xff] %v7231_v57  ;;  %v5377_v6 = vcombine.low %v7155_v11, %v7231_v57  ;;  %v2412_v8 = vsel %vm7109_vm2, %v2407_v49, %v2411_v31  ;;  %v548_v9 = vrot.slane %v546_v53, 5  ;;  %v553_v47 = vrot.slane %v551_v54, 4  ;;  %6221 = vmatprep.subr.bf16.mxu0 %v6748_v41  ;;  %v340_v31 = vld [vmem:[%s7082_s12 + $0x94] sm:$0x1]  ;;  %v6751_v43 = vld [vmem:[%s7087_s15 + $0xb8] sm:$0xff]  }
  0x3e   : > { %v2421_v12 = vrot.slane %v2420_v61, 4  ;;  %v543_v13 = vor.u32 %v542_v1, %v539_v62  ;;  %v554_v17 = vshll.u32 %v333_v34, 16  ;;  %v560_v19 = vshll.u32 %v334_v40, 16  ;;  %v7264_v62 = vld [vmem:[%s7087_s15 + $0xc0] sm:$0xff]   ;;  %v7398_v11 = vld [vmem:[%s7082_s12 + $0x10c] sm:$0x1] }
  0x3f   : > { %6031 = vmatprep.mubr.msk.bf16.mxu1 %vm981_vm3, %v5377_v6  ;;  %v2428_v25 = vshrl.u32 %v7222_v48, 16  ;;  %v2431_v28 = vshll.u32 %v7222_v48, 16  ;;  %v2437_v29 = vshll.u32 %v7226_v56, 16  ;;  %v2442_v30 = vshrl.u32 %v7234_v3, 16  ;;  %v6764_v1 = vld [vmem:[%s7087_s15 + $0x40] sm:$0xff]  }
  0x40   : > { %v2426_v32 = vsel %vm7109_vm2, %v2421_v12, %v2425_v50  ;;  %v544_v33 = vrot.slane %v543_v13, 4  ;;  %v556_v34 = vrot.slane %v554_v17, 5  ;;  %v562_v35 = vrot.slane %v560_v19, 5  ;;  %6222 = vmatpush3.bf16.msra.mxu0 %v6748_v41  ;;  %6099 = vmatprep.subr.bf16.mxu1 %v6764_v1 }
  0x41   : > { %v5577_v37 = vcombine.low %v2412_v8, %v2426_v32  ;;  %v2430_v39 = vrot.slane %v2428_v25, 4  ;;  %v2433_v40 = vrot.slane %v2431_v28, 5  ;;  %v2439_v42 = vrot.slane %v2437_v29, 5  ;;  %6223 = vmatprep.subr.bf16.mxu0 %v6750_v10  ;;  %v7269_v25 = vld [vmem:[%s7082_s12 + $0x98] sm:$0xf] }
  0x42   : > { %v7258_v44 = vsel %vm7109_vm2, %v544_v33, %v548_v9  ;;  %v557_v45 = vor.u32 %v556_v34, %v553_v47  ;;  %v2444_v49 = vrot.slane %v2442_v30, 4  ;;  %v2445_v41 = vshll.u32 %v7234_v3, 16  ;;  %v344_v9 = vld [vmem:[%s7082_s12 + $0xa4] sm:$0x1]  ;;  %v7276_v32 = vld [vmem:[%s7082_s12 + $0x9c] sm:$0x1] }
  0x43   : > { %9265 = vst [vmem:[#allocation10_spill] sm:$0xff] %v7258_v44  ;;  %6191 = vmatprep.mubr.msk.bf16.mxu0 %vm981_vm3, %v5577_v37  ;;  %v2434_v50 = vor.u32 %v2433_v40, %v2430_v39  ;;  %v2451_v53 = vshll.u32 %v7242_v21, 16  ;;  %v565_v54 = vshrl.u32 %v339_v22, 16  ;;  %v568_v61 = vshll.u32 %v339_v22, 16 }
  0x44   : > { %v558_v6 = vrot.slane %v557_v45, 4  ;;  %v2447_v8 = vrot.slane %v2445_v41, 5  ;;  %v574_v47 = vshll.u32 %v340_v31, 16  ;;  %v579_v12 = vshrl.u32 %v343_v36, 16  ;;  %6224 = vmatpush3.bf16.msra.mxu0 %v6750_v10  ;;  %v7279_v31 = vld [vmem:[%s7082_s12 + $0xa8] sm:$0xf] }
  0x45   : > { %v2435_v13 = vrot.slane %v2434_v50, 4  ;;  %v2453_v17 = vrot.slane %v2451_v53, 5  ;;  %v567_v19 = vrot.slane %v565_v54, 4  ;;  %v570_v23 = vrot.slane %v568_v61, 5  ;;  %6225 = vmatprep.subr.bf16.mxu0 %v6751_v43 }
  0x46   : > { %v7273_v22 = vsel %vm7109_vm2, %v558_v6, %v562_v35  ;;  %v2448_v28 = vor.u32 %v2447_v8, %v2444_v49  ;;  %v576_v29 = vrot.slane %v574_v47, 5  ;;  %v581_v30 = vrot.slane %v579_v12, 4  ;;  %v7286_v35 = vld [vmem:[%s7082_s12 + $0xac] sm:$0x1]  ;;  %v348_v6 = vld [vmem:[%s7082_s12 + $0xb4] sm:$0x1] }
  0x47   : > { %9266 = vst [vmem:[#allocation11_spill] sm:$0xff] %v7273_v22  ;;  %v5378_v10 = vcombine.low %v7258_v44, %v7273_v22  ;;  %v2440_v33 = vsel %vm7109_vm2, %v2435_v13, %v2439_v42  ;;  %v571_v34 = vor.u32 %v570_v23, %v567_v19  ;;  %v582_v37 = vshll.u32 %v343_v36, 16  ;;  %v347_v36 = vld [vmem:[%s7082_s12 + $0xb0] sm:$0xf]  ;;  %v351_v13 = vld [vmem:[%s7082_s12 + $0xc0] sm:$0xf] }
  0x48   : > { %v2449_v39 = vrot.slane %v2448_v28, 4  ;;  %v588_v40 = vshll.u32 %v344_v9, 16  ;;  %v2456_v45 = vshrl.u32 %v7269_v25, 16  ;;  %v2459_v49 = vshll.u32 %v7269_v25, 16  ;;  %6226 = vmatpush3.bf16.msra.mxu0 %v6751_v43 }
  0x49   : > { %6032 = vmatmul.mubr.msk.bf16.gmra.mrb[4].mxu1 %vm981_vm3, %v5378_v10  ;;  %v572_v41 = vrot.slane %v571_v34, 4  ;;  %v584_v50 = vrot.slane %v582_v37, 5  ;;  %v2465_v53 = vshll.u32 %v7276_v32, 16  ;;  %v2470_v42 = vshrl.u32 %v7279_v31, 16  ;;  %6259 = vmatprep.subr.bf16.mxu0 %v7264_v62  ;;  %v7305_v34 = vld [vmem:[%s7082_s12 + $0xb8] sm:$0xf] }
  0x4a   : > { %v2454_v54 = vsel %vm7109_vm2, %v2449_v39, %v2453_v17  ;;  %v590_v61 = vrot.slane %v588_v40, 5  ;;  %v2458_v1 = vrot.slane %v2456_v45, 4  ;;  %v2461_v43 = vrot.slane %v2459_v49, 5  ;;  %v352_v17 = vld [vmem:[%s7082_s12 + $0xc4] sm:$0x1] }
  0x4b   : > { %v5578_v8 = vcombine.low %v2440_v33, %v2454_v54  ;;  %v577_v9 = vsel %vm7109_vm2, %v572_v41, %v576_v29  ;;  %v585_v47 = vor.u32 %v584_v50, %v581_v30  ;;  %v2467_v12 = vrot.slane %v2465_v53, 5  ;;  %v7309_v29 = vld [vmem:[%s7082_s12 + $0xbc] sm:$0x1]  ;;  %v7312_v50 = vld [vmem:[%s7082_s12 + $0xc8] sm:$0xf] }
  0x4c   : > { %v2462_v19 = vor.u32 %v2461_v43, %v2458_v1  ;;  %v2472_v23 = vrot.slane %v2470_v42, 4  ;;  %v2473_v28 = vshll.u32 %v7279_v31, 16  ;;  %v2479_v10 = vshll.u32 %v7286_v35, 16 }
  0x4d   : > { %6192 = vmatmul.mubr.msk.bf16.gmra.mrb[4].mxu0 %vm981_vm3, %v5578_v8  ;;  %v586_v33 = vrot.slane %v585_v47, 4  ;;  %v593_v37 = vshrl.u32 %v347_v36, 16  ;;  %v596_v39 = vshll.u32 %v347_v36, 16  ;;  %v602_v40 = vshll.u32 %v348_v6, 16 }
  0x4e   : > { %v2463_v30 = vrot.slane %v2462_v19, 4  ;;  %v2475_v45 = vrot.slane %v2473_v28, 5  ;;  %v2481_v49 = vrot.slane %v2479_v10, 5  ;;  %v607_v41 = vshrl.u32 %v351_v13, 16  ;;  %v7322_v10 = vld [vmem:[%s7082_s12 + $0xcc] sm:$0x1] }
  0x4f   : > { %v7316_v53 = vsel %vm7109_vm2, %v586_v33, %v590_v61  ;;  %v595_v42 = vrot.slane %v593_v37, 4  ;;  %v598_v54 = vrot.slane %v596_v39, 5  ;;  %v604_v1 = vrot.slane %v602_v40, 5 }
  0x50   : > { %9267 = vst [vmem:[#allocation12_spill] sm:$0xff] %v7316_v53  ;;  %v5379_v36 = vcombine.low %v577_v9, %v7316_v53  ;;  %v2468_v43 = vsel %vm7109_vm2, %v2463_v30, %v2467_v12  ;;  %v2476_v6 = vor.u32 %v2475_v45, %v2472_v23  ;;  %v609_v8 = vrot.slane %v607_v41, 4  ;;  %v355_v23 = vld [vmem:[%s7082_s12 + $0xd0] sm:$0xf] }
  0x51   : > { %v599_v47 = vor.u32 %v598_v54, %v595_v42  ;;  %v610_v19 = vshll.u32 %v351_v13, 16  ;;  %v616_v28 = vshll.u32 %v352_v17, 16  ;;  %v2484_v61 = vshrl.u32 %v7305_v34, 16  ;;  %v356_v17 = vld [vmem:[%s7082_s12 + $0xd4] sm:$0x1] }
  0x52   : > { %6035 = vmatprep.mubr.msk.bf16.mxu1 %vm981_vm3, %v5379_v36  ;;  %v2477_v33 = vrot.slane %v2476_v6, 4  ;;  %v2487_v37 = vshll.u32 %v7305_v34, 16  ;;  %v2493_v9 = vshll.u32 %v7309_v29, 16  ;;  %v2498_v12 = vshrl.u32 %v7312_v50, 16  ;;  %v359_v36 = vld [vmem:[%s7082_s12 + $0xe0] sm:$0xf] }
  0x53   : > { %v600_v39 = vrot.slane %v599_v47, 4  ;;  %v612_v40 = vrot.slane %v610_v19, 5  ;;  %v618_v30 = vrot.slane %v616_v28, 5  ;;  %v2486_v13 = vrot.slane %v2484_v61, 4 }
  0x54   : > { %v2482_v45 = vsel %vm7109_vm2, %v2477_v33, %v2481_v49  ;;  %v2489_v41 = vrot.slane %v2487_v37, 5  ;;  %v2495_v42 = vrot.slane %v2493_v9, 5  ;;  %v2500_v54 = vrot.slane %v2498_v12, 4 }
  0x55   : > { %v5579_v6 = vcombine.low %v2468_v43, %v2482_v45  ;;  %v7336_v16 = vsel %vm7109_vm2, %v600_v39, %v604_v1  ;;  %v613_v5 = vor.u32 %v612_v40, %v609_v8  ;;  %v2501_v47 = vshll.u32 %v7312_v50, 16  ;;  %v360_v43 = vld [vmem:[%s7082_s12 + $0xe4] sm:$0x1]  ;;  %v7343_v40 = vld [vmem:[%s7082_s12 + $0xd8] sm:$0xf] }
  0x56   : > { %9268 = vst [vmem:[#allocation13_spill] sm:$0xff] %v7336_v16  ;;  %v2490_v19 = vor.u32 %v2489_v41, %v2486_v13  ;;  %v2507_v28 = vshll.u32 %v7322_v10, 16  ;;  %v621_v61 = vshrl.u32 %v355_v23, 16  ;;  %v624_v55 = vshll.u32 %v355_v23, 16 }
  0x57   : > { %6195 = vmatprep.mubr.msk.bf16.mxu0 %vm981_vm3, %v5579_v6  ;;  %v614_v49 = vrot.slane %v613_v5, 4  ;;  %v2503_v33 = vrot.slane %v2501_v47, 5  ;;  %v630_v37 = vshll.u32 %v356_v17, 16  ;;  %v635_v9 = vshrl.u32 %v359_v36, 16  ;;  %v7350_v6 = vld [vmem:[%s7082_s12 + $0xdc] sm:$0x1] }
  0x58   : > { %v2491_v1 = vrot.slane %v2490_v19, 4  ;;  %v2509_v12 = vrot.slane %v2507_v28, 5  ;;  %v623_v8 = vrot.slane %v621_v61, 4  ;;  %v626_v39 = vrot.slane %v624_v55, 5  ;;  %v7353_v5 = vld [vmem:[%s7082_s12 + $0xe8] sm:$0xf] }
  0x59   : > { %v7347_v13 = vsel %vm7109_vm2, %v614_v49, %v618_v30  ;;  %v2504_v23 = vor.u32 %v2503_v33, %v2500_v54  ;;  %v632_v45 = vrot.slane %v630_v37, 5  ;;  %v637_v41 = vrot.slane %v635_v9, 4  ;;  %v7360_v61 = vld [vmem:[%s7082_s12 + $0xec] sm:$0x1] }
  0x5a   : > { %9269 = vst [vmem:[#allocation14_spill] sm:$0xff] %v7347_v13  ;;  %v5380_v17 = vcombine.low %v7336_v16, %v7347_v13  ;;  %v2496_v55 = vsel %vm7109_vm2, %v2491_v1, %v2495_v42  ;;  %v627_v47 = vor.u32 %v626_v39, %v623_v8  ;;  %v638_v19 = vshll.u32 %v359_v36, 16  ;;  %v363_v36 = vld [vmem:[%s7082_s12 + $0xf0] sm:$0xf] }
  0x5b   : > { %v2505_v28 = vrot.slane %v2504_v23, 4  ;;  %v644_v30 = vshll.u32 %v360_v43, 16  ;;  %v2512_v54 = vshrl.u32 %v7343_v40, 16  ;;  %v2515_v49 = vshll.u32 %v7343_v40, 16  ;;  %v364_v23 = vld [vmem:[%s7082_s12 + $0xf4] sm:$0x1] }
  0x5c   : > { %6036 = vmatmul.mubr.msk.bf16.gmra.mrb[8].mxu1 %vm981_vm3, %v5380_v17  ;;  %v628_v33 = vrot.slane %v627_v47, 4  ;;  %v640_v37 = vrot.slane %v638_v19, 5  ;;  %v2521_v9 = vshll.u32 %v7350_v6, 16  ;;  %v2526_v42 = vshrl.u32 %v7353_v5, 16 }
  0x5d   : > { %v2510_v43 = vsel %vm7109_vm2, %v2505_v28, %v2509_v12  ;;  %v646_v1 = vrot.slane %v644_v30, 5  ;;  %v2514_v8 = vrot.slane %v2512_v54, 4  ;;  %v2517_v39 = vrot.slane %v2515_v49, 5  ;;  %v368_v28 = vld [vmem:[%s7082_s12 + $0x104] sm:$0x1] }
  0x5e   : > { %v5580_v51 = vcombine.low %v2496_v55, %v2510_v43  ;;  %v7373_v17 = vsel %vm7109_vm2, %v628_v33, %v632_v45  ;;  %v641_v47 = vor.u32 %v640_v37, %v637_v41  ;;  %v2523_v19 = vrot.slane %v2521_v9, 5  ;;  %v7381_v45 = vld [vmem:[%s7082_s12 + $0xf8] sm:$0xf] }
  0x5f   : > { %9270 = vst [vmem:[#allocation15_spill] sm:$0xff] %v7373_v17  ;;  %v2518_v24 = vor.u32 %v2517_v39, %v2514_v8  ;;  %v2528_v13 = vrot.slane %v2526_v42, 4  ;;  %v2529_v53 = vshll.u32 %v7353_v5, 16  ;;  %v2535_v12 = vshll.u32 %v7360_v61, 16  ;;  %v7384_v42 = vld [vmem:[%s7082_s12 + $0xfc] sm:$0x1] }
  0x60   : > { %6196 = vmatmul.mubr.msk.bf16.gmra.mrb[8].mxu0 %vm981_vm3, %v5580_v51  ;;  %v642_v30 = vrot.slane %v641_v47, 4  ;;  %v649_v55 = vshrl.u32 %v363_v36, 16  ;;  %v652_v54 = vshll.u32 %v363_v36, 16  ;;  %v658_v49 = vshll.u32 %v364_v23, 16  ;;  %v7391_v47 = vld [vmem:[%s7082_s12 + $0x108] sm:$0xf] }
  0x61   : > { %v2519_v41 = vrot.slane %v2518_v24, 4  ;;  %v2531_v33 = vrot.slane %v2529_v53, 5  ;;  %v2537_v37 = vrot.slane %v2535_v12, 5  ;;  %v663_v9 = vshrl.u32 %v367_v26, 16 }
  0x62   : > { %v7388_v43 = vsel %vm7109_vm2, %v642_v30, %v646_v1  ;;  %v651_v8 = vrot.slane %v649_v55, 4  ;;  %v654_v51 = vrot.slane %v652_v54, 5  ;;  %v660_v39 = vrot.slane %v658_v49, 5  ;;  %v7402_v30 = vld [vmem:[%s7082_s12 + $0x120] sm:$0xf] }
  0x63   : > { %9271 = vst [vmem:[#allocation16_spill] sm:$0xff] %v7388_v43  ;;  %v5381_v24 = vcombine.low %v7373_v17, %v7388_v43  ;;  %v2524_v53 = vsel %vm7109_vm2, %v2519_v41, %v2523_v19  ;;  %v2532_v36 = vor.u32 %v2531_v33, %v2528_v13  ;;  %v665_v23 = vrot.slane %v663_v9, 4  ;;  %9272 = vst [vmem:[#allocation17_spill] sm:$0xff] %v7402_v30  ;;  %v374_v19 = vld [vmem:[%s7082_s12 + $0x124] sm:$0x1] }
  0x64   : > { %v655_v12 = vor.u32 %v654_v51, %v651_v8  ;;  %v666_v16 = vshll.u32 %v367_v26, 16  ;;  %v672_v22 = vshll.u32 %v368_v28, 16  ;;  %v2540_v1 = vshrl.u32 %v7381_v45, 16 }
  0x65   : > { %6039 = vmatprep.mubr.msk.bf16.mxu1 %vm981_vm3, %v5381_v24  ;;  %v2533_v55 = vrot.slane %v2532_v36, 4  ;;  %v2543_v54 = vshll.u32 %v7381_v45, 16  ;;  %v2549_v49 = vshll.u32 %v7384_v42, 16  ;;  %v2554_v13 = vshrl.u32 %v7391_v47, 16  ;;  %v7412_v24 = vld [vmem:[%s7082_s12 + $0x130] sm:$0xf] }
  0x66   : > { %v656_v41 = vrot.slane %v655_v12, 4  ;;  %v668_v26 = vrot.slane %v666_v16, 5  ;;  %v674_v28 = vrot.slane %v672_v22, 5  ;;  %v2542_v33 = vrot.slane %v2540_v1, 4  ;;  %9273 = vst [vmem:[#allocation18_spill] sm:$0xff] %v7412_v24 }
  0x67   : > { %v2538_v9 = vsel %vm7109_vm2, %v2533_v55, %v2537_v37  ;;  %v2545_v8 = vrot.slane %v2543_v54, 5  ;;  %v2551_v51 = vrot.slane %v2549_v49, 5  ;;  %v2556_v43 = vrot.slane %v2554_v13, 4  ;;  %v378_v54 = vld [vmem:[%s7082_s12 + $0x134] sm:$0x1] }
  0x68   : > { %v5581_v36 = vcombine.low %v2524_v53, %v2538_v9  ;;  %v7416_v17 = vsel %vm7109_vm2, %v656_v41, %v660_v39  ;;  %v669_v0 = vor.u32 %v668_v26, %v665_v23  ;;  %v2557_v16 = vshll.u32 %v7391_v47, 16 }
  0x69   : > { %9274 = vst [vmem:[#allocation19_spill] sm:$0xff] %v7416_v17  ;;  %v2546_v22 = vor.u32 %v2545_v8, %v2542_v33  ;;  %v2563_v12 = vshll.u32 %v7398_v11, 16  ;;  %v677_v37 = vshrl.u32 %v7402_v30, 16  ;;  %v680_v1 = vshll.u32 %v7402_v30, 16  ;;  %v7426_v33 = vld [vmem:[%s7082_s12 + $0x128] sm:$0xf] }
  0x6a   : > { %6199 = vmatprep.mubr.msk.bf16.mxu0 %vm981_vm3, %v5581_v36  ;;  %v670_v53 = vrot.slane %v669_v0, 4  ;;  %v2559_v55 = vrot.slane %v2557_v16, 5  ;;  %v686_v39 = vshll.u32 %v374_v19, 16  ;;  %v691_v23 = vshrl.u32 %v7412_v24, 16  ;;  %v7433_v0 = vld [vmem:[%s7082_s12 + $0x12c] sm:$0x1] }
  0x6b   : > { %v2547_v49 = vrot.slane %v2546_v22, 4  ;;  %v2565_v13 = vrot.slane %v2563_v12, 5  ;;  %v679_v41 = vrot.slane %v677_v37, 4  ;;  %v682_v26 = vrot.slane %v680_v1, 5  ;;  %9276 = vst [vmem:[#allocation21_spill] sm:$0xff] %v7433_v0 }
  0x6c   : > { %v7430_v9 = vsel %vm7109_vm2, %v670_v53, %v674_v28  ;;  %v2560_v8 = vor.u32 %v2559_v55, %v2556_v43  ;;  %v688_v36 = vrot.slane %v686_v39, 5  ;;  %v693_v57 = vrot.slane %v691_v23, 4  ;;  %v7436_v19 = vld [vmem:[%s7082_s12 + $0x138] sm:$0xf]  ;;  %v7444_v43 = vld [vmem:[%s7082_s12 + $0x13c] sm:$0x1] }
  0x6d   : > { %9275 = vst [vmem:[#allocation20_spill] sm:$0xff] %v7430_v9  ;;  %9277 = vst [vmem:[#allocation22_spill] sm:$0xff] %v7436_v19  ;;  %v5382_v16 = vcombine.low %v7416_v17, %v7430_v9  ;;  %v2552_v22 = vsel %vm7109_vm2, %v2547_v49, %v2551_v51  ;;  %v683_v12 = vor.u32 %v682_v26, %v679_v41  ;;  %v694_v37 = vshll.u32 %v7412_v24, 16  ;;  %v7452_v49 = vld [vmem:[%s7082_s12 + $0x140] sm:$0xf] }
  0x6e   : > { %v2561_v28 = vrot.slane %v2560_v8, 4  ;;  %v700_v1 = vshll.u32 %v378_v54, 16  ;;  %9278 = vst [vmem:[#allocation23_spill] sm:$0xff] %v7444_v43  ;;  %v2568_v53 = vshrl.u32 %v7426_v33, 16  ;;  %v2571_v55 = vshll.u32 %v7426_v33, 16  ;;  %9279 = vst [vmem:[#allocation24_spill] sm:$0xff] %v7452_v49 }
  0x6f   : > { %6040 = vmatmul.mubr.msk.bf16.gmra.mrb[12].mxu1 %vm981_vm3, %v5382_v16  ;;  %v684_v39 = vrot.slane %v683_v12, 4  ;;  %v696_v23 = vrot.slane %v694_v37, 5  ;;  %v2577_v9 = vshll.u32 %v7433_v0, 16  ;;  %v2582_v51 = vshrl.u32 %v7436_v19, 16  ;;  %v382_v17 = vld [vmem:[%s7082_s12 + $0x144] sm:$0x1] }
  0x70   : > { %v2566_v54 = vsel %vm7109_vm2, %v2561_v28, %v2565_v13  ;;  %v702_v41 = vrot.slane %v700_v1, 5  ;;  %v2570_v26 = vrot.slane %v2568_v53, 4  ;;  %v2573_v8 = vrot.slane %v2571_v55, 5  ;;  %v386_v28 = vld [vmem:[%s7082_s12 + $0x154] sm:$0x1] }
  0x71   : > { %v5582_v44 = vcombine.low %v2552_v22, %v2566_v54  ;;  %v689_v16 = vsel %vm7109_vm2, %v684_v39, %v688_v36  ;;  %v697_v12 = vor.u32 %v696_v23, %v693_v57  ;;  %v2579_v37 = vrot.slane %v2577_v9, 5  ;;  %v7466_v1 = vld [vmem:[%s7082_s12 + $0x148] sm:$0xf]  ;;  %v7472_v36 = vld [vmem:[%s7082_s12 + $0x14c] sm:$0x1] }
  0x72   : > { %v2574_v60 = vor.u32 %v2573_v8, %v2570_v26  ;;  %v2584_v30 = vrot.slane %v2582_v51, 4  ;;  %v2585_v24 = vshll.u32 %v7436_v19, 16  ;;  %v2591_v13 = vshll.u32 %v7444_v43, 16  ;;  %9281 = vst [vmem:[#allocation26_spill] sm:$0xff] %v7466_v1  ;;  %9282 = vst [vmem:[#allocation27_spill] sm:$0xff] %v7472_v36 }
  0x73   : > { %6200 = vmatmul.mubr.msk.bf16.gmra.mrb[12].mxu0 %vm981_vm3, %v5582_v44  ;;  %v698_v22 = vrot.slane %v697_v12, 4  ;;  %v705_v53 = vshrl.u32 %v7452_v49, 16  ;;  %v708_v57 = vshll.u32 %v7452_v49, 16  ;;  %v714_v9 = vshll.u32 %v382_v17, 16  ;;  %v7476_v54 = vld [vmem:[%s7082_s12 + $0x158] sm:$0xf] }
  0x74   : > { %v2575_v55 = vrot.slane %v2574_v60, 4  ;;  %v2587_v39 = vrot.slane %v2585_v24, 5  ;;  %v2593_v23 = vrot.slane %v2591_v13, 5  ;;  %v719_v51 = vshrl.u32 %v7460_v63, 16  ;;  %v7487_v0 = vld [vmem:[%s7082_s12 + $0x15c] sm:$0x1] }
  0x75   : > { %v7480_v44 = vsel %vm7109_vm2, %v698_v22, %v702_v41  ;;  %v707_v26 = vrot.slane %v705_v53, 4  ;;  %v710_v8 = vrot.slane %v708_v57, 5  ;;  %v716_v17 = vrot.slane %v714_v9, 5  ;;  %v7491_v22 = vld [vmem:[%s7082_s12 + $0x160] sm:$0xf] }
  0x76   : > { %9283 = vst [vmem:[#allocation28_spill] sm:$0xff] %v7480_v44  ;;  %v5383_v60 = vcombine.low %v689_v16, %v7480_v44  ;;  %v2580_v24 = vsel %vm7109_vm2, %v2575_v55, %v2579_v37  ;;  %v2588_v12 = vor.u32 %v2587_v39, %v2584_v30  ;;  %v721_v13 = vrot.slane %v719_v51, 4  ;;  %9284 = vst [vmem:[#allocation29_spill] sm:$0xff] %v7491_v22  ;;  %v390_v57 = vld [vmem:[%s7082_s12 + $0x164] sm:$0x1] }
  0x77   : > { %v711_v49 = vor.u32 %v710_v8, %v707_v26  ;;  %v722_v43 = vshll.u32 %v7460_v63, 16  ;;  %v728_v19 = vshll.u32 %v386_v28, 16  ;;  %v2596_v41 = vshrl.u32 %v7466_v1, 16 }
  0x78   : > { %6043 = vmatprep.mubr.msk.bf16.mxu1 %vm981_vm3, %v5383_v60  ;;  %v2589_v53 = vrot.slane %v2588_v12, 4  ;;  %v2599_v16 = vshll.u32 %v7466_v1, 16  ;;  %v2605_v37 = vshll.u32 %v7472_v36, 16  ;;  %v2610_v30 = vshrl.u32 %v7476_v54, 16  ;;  %v7501_v60 = vld [vmem:[%s7082_s12 + $0x170] sm:$0xf] }
  0x79   : > { %v712_v9 = vrot.slane %v711_v49, 4  ;;  %v724_v28 = vrot.slane %v722_v43, 5  ;;  %v730_v55 = vrot.slane %v728_v19, 5  ;;  %v2598_v39 = vrot.slane %v2596_v41, 4  ;;  %v394_v43 = vld [vmem:[%s7082_s12 + $0x174] sm:$0x1] }
  0x7a   : > { %v2594_v51 = vsel %vm7109_vm2, %v2589_v53, %v2593_v23  ;;  %v2601_v26 = vrot.slane %v2599_v16, 5  ;;  %v2607_v8 = vrot.slane %v2605_v37, 5  ;;  %v2612_v44 = vrot.slane %v2610_v30, 4 }
  0x7b   : > { %v5583_v12 = vcombine.low %v2580_v24, %v2594_v51  ;;  %v7505_v63 = vsel %vm7109_vm2, %v712_v9, %v716_v17  ;;  %v725_v36 = vor.u32 %v724_v28, %v721_v13  ;;  %v2613_v1 = vshll.u32 %v7476_v54, 16 }
  0x7c   : > { %9285 = vst [vmem:[#allocation30_spill] sm:$0xff] %v7505_v63  ;;  %v2602_v49 = vor.u32 %v2601_v26, %v2598_v39  ;;  %v2619_v19 = vshll.u32 %v7487_v0, 16  ;;  %v733_v23 = vshrl.u32 %v7491_v22, 16  ;;  %v736_v41 = vshll.u32 %v7491_v22, 16  ;;  %v7519_v22 = vld [vmem:[%s7082_s12 + $0x180] sm:$0xf] }
  0x7d   : > { %6203 = vmatprep.mubr.msk.bf16.mxu0 %vm981_vm3, %v5583_v12  ;;  %v726_v53 = vrot.slane %v725_v36, 4  ;;  %v2615_v24 = vrot.slane %v2613_v1, 5  ;;  %v742_v16 = vshll.u32 %v390_v57, 16  ;;  %v747_v17 = vshrl.u32 %v7501_v60, 16 }
  0x7e   : > { %v2603_v37 = vrot.slane %v2602_v49, 4  ;;  %v2621_v13 = vrot.slane %v2619_v19, 5  ;;  %v735_v30 = vrot.slane %v733_v23, 4  ;;  %v738_v9 = vrot.slane %v736_v41, 5  ;;  %v398_v41 = vld [vmem:[%s7082_s12 + $0x184] sm:$0x1] }
  0x7f   : > { %v7516_v28 = vsel %vm7109_vm2, %v726_v53, %v730_v55  ;;  %v2616_v39 = vor.u32 %v2615_v24, %v2612_v44  ;;  %v744_v51 = vrot.slane %v742_v16, 5  ;;  %v749_v26 = vrot.slane %v747_v17, 4  ;;  %v7537_v16 = vld [vmem:[%s7082_s12 + $0x190] sm:$0xf] }
  0x80   : > { %9286 = vst [vmem:[#allocation31_spill] sm:$0xff] %v7516_v28  ;;  %v5384_v36 = vcombine.low %v7505_v63, %v7516_v28  ;;  %v2608_v57 = vsel %vm7109_vm2, %v2603_v37, %v2607_v8  ;;  %v739_v55 = vor.u32 %v738_v9, %v735_v30  ;;  %v750_v44 = vshll.u32 %v7501_v60, 16 }
  0x81   : > { %v2617_v12 = vrot.slane %v2616_v39, 4  ;;  %v756_v49 = vshll.u32 %v394_v43, 16  ;;  %v5611_v19 = vrot.slane %v7119_v58, 9  ;;  %v5612_v23 = vrot.slane %v7139_v2, 9  ;;  %v402_v39 = vld [vmem:[%s7082_s12 + $0x194] sm:$0x1] }
  0x82   : > { %6044 = vmatmul.mubr.msk.bf16.gmra.mrb[16].mxu1 %vm981_vm3, %v5384_v36  ;;  %v740_v53 = vrot.slane %v739_v55, 4  ;;  %v752_v24 = vrot.slane %v750_v44, 5  ;;  %v761_v8 = vshrl.u32 %v7519_v22, 16  ;;  %v764_v17 = vshll.u32 %v7519_v22, 16 }
  0x83   : > { %v2622_v43 = vsel %vm7109_vm2, %v2617_v12, %v2621_v13  ;;  %v758_v37 = vrot.slane %v756_v49, 5  ;;  %v9289_v58 = vrot.slane %v7122_v59, 5  ;;  %v9290_v30 = vrot.slane %v7148_v7, 5  ;;  %v7557_v13 = vld [vmem:[%s7082_s12 + $0x1b0] sm:$0xf] }
  0x84   : > { %v5584_v36 = vcombine.low %v2608_v57, %v2622_v43  ;;  %v7554_v55 = vsel %vm7109_vm2, %v740_v53, %v744_v51  ;;  %v753_v44 = vor.u32 %v752_v24, %v749_v26  ;;  %v763_v12 = vrot.slane %v761_v8, 4  ;;  %v408_v7 = vld [vmem:[%s7082_s12 + $0x1b4] sm:$0x1] }
  0x85   : > { %v3148_v2 = vsel %vm7523_vm6, %v5611_v19, %v9289_v58  ;;  %v3152_v9 = vsel %vm7523_vm6, %v5612_v23, %v9290_v30  ;;  %9291 = vst [vmem:[#allocation32_spill] sm:$0xff] %v7554_v55  ;;  %v766_v59 = vrot.slane %v764_v17, 5  ;;  %v770_v49 = vshll.u32 %v398_v41, 16 }
  0x86   : > { %v5651_v28 = vcombine.low %v3148_v2, %v3152_v9  ;;  %v775_v19 = vshrl.u32 %v7537_v16, 16  ;;  %6204 = vmatmul.mubr.msk.bf16.gmra.mrb[16].mxu0 %vm981_vm3, %v5584_v36  ;;  %v754_v23 = vrot.slane %v753_v44, 4  ;;  %v778_v57 = vshll.u32 %v7537_v16, 16 }
  0x87   : > { %v784_v43 = vshll.u32 %v402_v39, 16  ;;  %v5613_v51 = vrot.slane %v7161_v14, 9  ;;  %v767_v26 = vor.u32 %v766_v59, %v763_v12  ;;  %v772_v53 = vrot.slane %v770_v49, 5  ;;  %v7575_v14 = vld [vmem:[%s7082_s12 + $0x1c0] sm:$0xf] }
  0x88   : > { %6227 = vmatprep.mubr.msk.bf16.mxu0 %vm981_vm3, %v5651_v28  ;;  %v777_v24 = vrot.slane %v775_v19, 4  ;;  %v5614_v41 = vrot.slane %v7169_v20, 9  ;;  %v7568_v8 = vsel %vm7109_vm2, %v754_v23, %v758_v37  ;;  %v780_v17 = vrot.slane %v778_v57, 5  ;;  %v7584_v39 = vld [vmem:[%s7082_s12 + $0x1c4] sm:$0x1]  ;;  %v6755_v57 = vld [vmem:[%s7087_s15 + $0xc8] sm:$0xff]  }
  0x89   : > { %9292 = vst [vmem:[#allocation33_spill] sm:$0xff] %v7568_v8  ;;  %v786_v58 = vrot.slane %v784_v43, 5  ;;  %v9293_v2 = vrot.slane %v7164_v15, 5  ;;  %v5385_v28 = vcombine.low %v7554_v55, %v7568_v8  ;;  %v768_v9 = vrot.slane %v767_v26, 4  ;;  %v7958_v8 = vld [vmem:[%s7082_s12 + $0x21c] sm:$0x1] }
  0x8a   : > { %v9294_v20 = vrot.slane %v7175_v27, 5  ;;  %v789_v15 = vshrl.u32 %v7557_v13, 16  ;;  %v781_v36 = vor.u32 %v780_v17, %v777_v24  ;;  %v792_v12 = vshll.u32 %v7557_v13, 16  ;;  %9328 = vst [vmem:[#allocation57_spill] sm:$0xff] %v7958_v8  ;;  %v6855_v55 = vld [vmem:[%s7082_s12 + $0x74] sm:$0x1] }
  0x8b   : > { %v3156_v30 = vsel %vm7523_vm6, %v5613_v51, %v9293_v2  ;;  %v798_v59 = vshll.u32 %v408_v7, 16  ;;  %6047 = vmatprep.mubr.msk.bf16.mxu1 %vm981_vm3, %v5385_v28  ;;  %v7591_v49 = vsel %vm7109_vm2, %v768_v9, %v772_v53  ;;  %v803_v19 = vshrl.u32 %v7575_v14, 16  ;;  %v7598_v7 = vld [vmem:[%s7082_s12 + $0x1d0] sm:$0xf] }
  0x8c   : > { %v3160_v37 = vsel %vm7523_vm6, %v5614_v41, %v9294_v20  ;;  %9295 = vst [vmem:[#allocation34_spill] sm:$0xff] %v7591_v49  ;;  %v791_v27 = vrot.slane %v789_v15, 4  ;;  %v806_v23 = vshll.u32 %v7575_v14, 16  ;;  %v782_v43 = vrot.slane %v781_v36, 4  ;;  %v7612_v15 = vld [vmem:[%s7082_s12 + $0x1e0] sm:$0xf] }
  0x8d   : > { %v5652_v44 = vcombine.low %v3156_v30, %v3160_v37  ;;  %v794_v51 = vrot.slane %v792_v12, 5  ;;  %v800_v26 = vrot.slane %v798_v59, 5  ;;  %v812_v24 = vshll.u32 %v7584_v39, 16  ;;  %v7603_v30 = vld [vmem:[%s7082_s12 + $0x1d4] sm:$0x1] }
  0x8e   : > { %v805_v41 = vrot.slane %v803_v19, 4  ;;  %v808_v17 = vrot.slane %v806_v23, 5  ;;  %v5615_v53 = vrot.slane %v7187_v46, 9  ;;  %v3163_v2 = vrot.slane %v7193_v52, 5  ;;  %v7621_v12 = vld [vmem:[%s7082_s12 + $0x1e4] sm:$0x1] }
  0x8f   : > { %v7607_v28 = vsel %vm7109_vm2, %v782_v43, %v786_v58  ;;  %6228 = vmatmul.mubr.msk.bf16.vlgmr.msra.gmra.mrb[0].mxu0 %vm981_vm3, %v5652_v44  ;;  %v795_v9 = vor.u32 %v794_v51, %v791_v27  ;;  %v814_v20 = vrot.slane %v812_v24, 5  ;;  %v5616_v37 = vrot.slane %v7200_v4, 9  ;;  %v6761_v44 = vld [vmem:[%s7087_s15 + $0xd0] sm:$0xff]  }
  0x90   : > { %9296 = vst [vmem:[#allocation35_spill] sm:$0xff] %v7607_v28  ;;  %v5386_v36 = vcombine.low %v7591_v49, %v7607_v28  ;;  %6260 = vmatpush3.bf16.msra.mxu0 %v7264_v62  ;;  %v809_v46 = vor.u32 %v808_v17, %v805_v41  ;;  %v3164_v52 = vsel %vm7523_vm6, %v5615_v53, %v3163_v2  ;;  %v3167_v58 = vrot.slane %v7208_v18, 5  ;;  %v7633_v51 = vld [vmem:[%s7082_s12 + $0x1f0] sm:$0xf]  ;;  %v7638_v2 = vld [vmem:[%s7082_s12 + $0x1f4] sm:$0x1] }
  0x91   : > { %v796_v59 = vrot.slane %v795_v9, 4  ;;  %v817_v4 = vshrl.u32 %v7598_v7, 16  ;;  %v820_v27 = vshll.u32 %v7598_v7, 16  ;;  %v826_v19 = vshll.u32 %v7603_v30, 16  ;;  %6261 = vmatprep.subr.bf16.mxu0 %v6755_v57 }
  0x92   : > { %6048 = vmatmul.mubr.msk.bf16.gmra.mrb[20].mxu1 %vm981_vm3, %v5386_v36  ;;  %v810_v62 = vrot.slane %v809_v46, 4  ;;  %v3168_v23 = vsel %vm7523_vm6, %v5616_v37, %v3167_v58  ;;  %v831_v18 = vshrl.u32 %v7612_v15, 16  ;;  %v834_v43 = vshll.u32 %v7612_v15, 16  ;;  %v6767_v58 = vld [vmem:[%s7087_s15 + $0xd8] sm:$0xff]  }
  0x93   : > { %v801_v24 = vsel %vm7109_vm2, %v796_v59, %v800_v26  ;;  %v5653_v41 = vcombine.low %v3164_v52, %v3168_v23  ;;  %v819_v17 = vrot.slane %v817_v4, 4  ;;  %v822_v53 = vrot.slane %v820_v27, 5  ;;  %v7650_v4 = vld [vmem:[%s7082_s12 + $0x200] sm:$0xf] }
  0x94   : > { %v7642_v9 = vsel %vm7109_vm2, %v810_v62, %v814_v20  ;;  %v828_v37 = vrot.slane %v826_v19, 5  ;;  %v833_v36 = vrot.slane %v831_v18, 4  ;;  %v836_v46 = vrot.slane %v834_v43, 5  ;;  %6262 = vmatpush3.bf16.msra.mxu0 %v6755_v57  ;;  %v7656_v62 = vld [vmem:[%s7082_s12 + $0x204] sm:$0x1] }
  0x95   : > { %9297 = vst [vmem:[#allocation36_spill] sm:$0xff] %v7642_v9  ;;  %v5387_v28 = vcombine.low %v801_v24, %v7642_v9  ;;  %6231 = vmatprep.mubr.msk.bf16.mxu0 %vm981_vm3, %v5653_v41  ;;  %v823_v26 = vor.u32 %v822_v53, %v819_v17  ;;  %v840_v52 = vshll.u32 %v7621_v12, 16  ;;  %v5617_v59 = vrot.slane %v7222_v48, 9  ;;  %6263 = vmatprep.subr.bf16.mxu0 %v6761_v44  ;;  %v7662_v24 = vld [vmem:[%s7087_s15 + $0xe0] sm:$0xff]   ;;  %v7670_v17 = vld [vmem:[%s7082_s12 + $0x210] sm:$0xf] }
  0x96   : > { %v837_v20 = vor.u32 %v836_v46, %v833_v36  ;;  %v3171_v27 = vrot.slane %v7226_v56, 5  ;;  %v5618_v57 = vrot.slane %v7234_v3, 9  ;;  %v3175_v19 = vrot.slane %v7242_v21, 5 }
  0x97   : > { %6051 = vmatprep.mubr.msk.bf16.mxu1 %vm981_vm3, %v5387_v28  ;;  %v824_v23 = vrot.slane %v823_v26, 4  ;;  %v842_v18 = vrot.slane %v840_v52, 5  ;;  %v845_v48 = vshrl.u32 %v7633_v51, 16  ;;  %v848_v43 = vshll.u32 %v7633_v51, 16  ;;  %v7677_v26 = vld [vmem:[%s7082_s12 + $0x214] sm:$0x1] }
  0x98   : > { %v838_v41 = vrot.slane %v837_v20, 4  ;;  %v3172_v56 = vsel %vm7523_vm6, %v5617_v59, %v3171_v27  ;;  %v3176_v3 = vsel %vm7523_vm6, %v5618_v57, %v3175_v19  ;;  %v854_v21 = vshll.u32 %v7638_v2, 16  ;;  %6264 = vmatpush3.bf16.msra.mxu0 %v6761_v44 }
  0x99   : > { %v7674_v28 = vsel %vm7109_vm2, %v824_v23, %v828_v37  ;;  %v5654_v53 = vcombine.low %v3172_v56, %v3176_v3  ;;  %v847_v36 = vrot.slane %v845_v48, 4  ;;  %v850_v46 = vrot.slane %v848_v43, 5  ;;  %6265 = vmatprep.subr.bf16.mxu0 %v6767_v58 }
  0x9a   : > { %9298 = vst [vmem:[#allocation37_spill] sm:$0xff] %v7674_v28  ;;  %v7681_v52 = vsel %vm7109_vm2, %v838_v41, %v842_v18  ;;  %v856_v59 = vrot.slane %v854_v21, 5  ;;  %v859_v20 = vshrl.u32 %v7650_v4, 16  ;;  %v862_v44 = vshll.u32 %v7650_v4, 16  ;;  %v7693_v41 = vld [vmem:[%s7082_s12 + $0x220] sm:$0xf] }
  0x9b   : > { %9299 = vst [vmem:[#allocation38_spill] sm:$0xff] %v7681_v52  ;;  %v5388_v37 = vcombine.low %v7674_v28, %v7681_v52  ;;  %6232 = vmatmul.mubr.msk.bf16.gmra.mrb[4].mxu0 %vm981_vm3, %v5654_v53  ;;  %v851_v27 = vor.u32 %v850_v46, %v847_v36  ;;  %v868_v57 = vshll.u32 %v7656_v62, 16  ;;  %v5619_v19 = vrot.slane %v7269_v25, 9 }
  0x9c   : > { %v861_v23 = vrot.slane %v859_v20, 4  ;;  %v864_v48 = vrot.slane %v862_v44, 5  ;;  %v3179_v18 = vrot.slane %v7276_v32, 5  ;;  %v5620_v43 = vrot.slane %v7279_v31, 9  ;;  %6266 = vmatpush3.bf16.msra.mxu0 %v6767_v58  ;;  %v7702_v32 = vld [vmem:[%s7082_s12 + $0x224] sm:$0x1] }
  0x9d   : > { %6052 = vmatmul.mubr.msk.bf16.gmra.mrb[24].mxu1 %vm981_vm3, %v5388_v37  ;;  %v852_v56 = vrot.slane %v851_v27, 4  ;;  %v870_v3 = vrot.slane %v868_v57, 5  ;;  %v3183_v21 = vrot.slane %v7286_v35, 5  ;;  %v873_v53 = vshrl.u32 %v7670_v17, 16  ;;  %6299 = vmatprep.subr.bf16.mxu0 %v7662_v24 }
  0x9e   : > { %v865_v25 = vor.u32 %v864_v48, %v861_v23  ;;  %v3180_v36 = vsel %vm7523_vm6, %v5619_v19, %v3179_v18  ;;  %v876_v31 = vshll.u32 %v7670_v17, 16  ;;  %v882_v58 = vshll.u32 %v7677_v26, 16 }
  0x9f   : > { %v7708_v46 = vsel %vm7109_vm2, %v852_v56, %v856_v59  ;;  %v3184_v35 = vsel %vm7523_vm6, %v5620_v43, %v3183_v21  ;;  %v875_v20 = vrot.slane %v873_v53, 4  ;;  %v887_v44 = vshrl.u32 %v7693_v41, 16 }
  0xa0   : > { %9300 = vst [vmem:[#allocation39_spill] sm:$0xff] %v7708_v46  ;;  %v866_v37 = vrot.slane %v865_v25, 4  ;;  %v5655_v27 = vcombine.low %v3180_v36, %v3184_v35  ;;  %v878_v57 = vrot.slane %v876_v31, 5  ;;  %v884_v19 = vrot.slane %v882_v58, 5 }
  0xa1   : > { %v889_v23 = vrot.slane %v887_v44, 4  ;;  %v890_v48 = vshll.u32 %v7693_v41, 16  ;;  %v896_v18 = vshll.u32 %v7702_v32, 16  ;;  %v5621_v52 = vrot.slane %v7305_v34, 9 }
  0xa2   : > { %v7718_v59 = vsel %vm7109_vm2, %v866_v37, %v870_v3  ;;  %6235 = vmatprep.mubr.msk.bf16.mxu0 %vm981_vm3, %v5655_v27  ;;  %v879_v43 = vor.u32 %v878_v57, %v875_v20  ;;  %v3187_v56 = vrot.slane %v7309_v29, 5  ;;  %v5622_v21 = vrot.slane %v7312_v50, 9 }
  0xa3   : > { %9301 = vst [vmem:[#allocation40_spill] sm:$0xff] %v7718_v59  ;;  %v5389_v53 = vcombine.low %v7708_v46, %v7718_v59  ;;  %v892_v25 = vrot.slane %v890_v48, 5  ;;  %v3191_v36 = vrot.slane %v7322_v10, 5  ;;  %v898_v58 = vrot.slane %v896_v18, 5  ;;  %v7897_v59 = vld [vmem:[%s7082_s12 + $0x1ec] sm:$0x1] }
  0xa4   : > { %v880_v31 = vrot.slane %v879_v43, 4  ;;  %v3188_v34 = vsel %vm7523_vm6, %v5621_v52, %v3187_v56  ;;  %v5623_v3 = vrot.slane %v7343_v40, 9  ;;  %v3195_v35 = vrot.slane %v7350_v6, 5  ;;  %v7745_v6 = vld [vmem:[%s7082_s12] sm:$0xf]  ;;  %9322 = vst [vmem:[#allocation51_spill] sm:$0xff] %v7897_v59 }
  0xa5   : > { %6055 = vmatprep.mubr.msk.bf16.mxu1 %vm981_vm3, %v5389_v53  ;;  %v893_v29 = vor.u32 %v892_v25, %v889_v23  ;;  %v3192_v50 = vsel %vm7523_vm6, %v5622_v21, %v3191_v36  ;;  %v5624_v20 = vrot.slane %v7353_v5, 9  ;;  %v3199_v52 = vrot.slane %v7360_v61, 5  ;;  %v7748_v5 = vld [vmem:[%s7082_s12 + $0x10] sm:$0xf]  ;;  %v7770_v36 = vld [vmem:[%s7082_s12 + $0x168] sm:$0xf] }
  0xa6   : > { %v7736_v10 = vsel %vm7109_vm2, %v880_v31, %v884_v19  ;;  %v5656_v44 = vcombine.low %v3188_v34, %v3192_v50  ;;  %v3196_v40 = vsel %vm7523_vm6, %v5623_v3, %v3195_v35  ;;  %v5625_v27 = vrot.slane %v7381_v45, 9  ;;  %v9307_v31 = vld [vmem:[#allocation23_spill] sm:$0xff]  ;;  %v7775_v34 = vld [vmem:[%s7082_s12 + $0x16c] sm:$0x1]  ;;  %v9310_v50 = vld [vmem:[#allocation26_spill] sm:$0xff] }
  0xa7   : > { %9302 = vst [vmem:[#allocation41_spill] sm:$0xff] %v7736_v10  ;;  %v894_v37 = vrot.slane %v893_v29, 4  ;;  %v3203_v57 = vrot.slane %v7384_v42, 5  ;;  %v5411_v19 = vcombine.low %v7745_v6, %v7748_v5  ;;  %v3200_v61 = vsel %vm7523_vm6, %v5624_v20, %v3199_v52  ;;  %v7778_v3 = vld [vmem:[%s7082_s12 + $0x178] sm:$0xf] }
  0xa8   : > { %6236 = vmatmul.mubr.msk.bf16.gmra.mrb[8].mxu0 %vm981_vm3, %v5656_v44  ;;  %v5626_v23 = vrot.slane %v7391_v47, 9  ;;  %v3207_v45 = vrot.slane %v7398_v11, 5  ;;  %v5657_v48 = vcombine.low %v3196_v40, %v3200_v61  ;;  %v5627_v43 = vrot.slane %v7426_v33, 9  ;;  %v9304_v47 = vld [vmem:[#allocation21_spill] sm:$0xff]  ;;  %v9305_v11 = vld [vmem:[#allocation22_spill] sm:$0xff]  ;;  %9309 = vst [vmem:[#allocation23_spill] sm:$0xff] %v7778_v3 }
  0xa9   : > { %v7758_v42 = vsel %vm7109_vm2, %v894_v37, %v898_v58  ;;  %v3204_v18 = vsel %vm7523_vm6, %v5625_v27, %v3203_v57  ;;  %v3211_v53 = vrot.slane %v9304_v47, 5  ;;  %v5628_v25 = vrot.slane %v9305_v11, 9  ;;  %9306 = vst [vmem:[#allocation21_spill] sm:$0xff] %v7770_v36  ;;  %9308 = vst [vmem:[#allocation22_spill] sm:$0xff] %v7775_v34  ;;  %v7785_v20 = vld [vmem:[%s7082_s12 + $0x17c] sm:$0x1] }
  0xaa   : > { %9303 = vst [vmem:[#allocation42_spill] sm:$0xff] %v7758_v42  ;;  %v5390_v56 = vcombine.low %v7736_v10, %v7758_v42  ;;  %v3208_v21 = vsel %vm7523_vm6, %v5626_v23, %v3207_v45  ;;  %6239 = vmatprep.mubr.msk.bf16.mxu0 %vm981_vm3, %v5657_v48  ;;  %v3215_v58 = vrot.slane %v9307_v31, 5  ;;  %v5629_v35 = vrot.slane %v9310_v50, 9  ;;  %9311 = vst [vmem:[#allocation26_spill] sm:$0xff] %v7785_v20  ;;  %v9312_v52 = vld [vmem:[#allocation27_spill] sm:$0xff] }
  0xab   : > { %v5658_v33 = vcombine.low %v3204_v18, %v3208_v21  ;;  %v3212_v29 = vsel %vm7523_vm6, %v5627_v43, %v3211_v53  ;;  %v3219_v37 = vrot.slane %v9312_v52, 5  ;;  %v5630_v40 = vrot.slane %v7476_v54, 9  ;;  %v7798_v48 = vld [vmem:[%s7082_s12 + $0x20] sm:$0xf]  ;;  %v7801_v18 = vld [vmem:[%s7082_s12 + $0x30] sm:$0xf] }
  0xac   : > { %6056 = vmatmul.mubr.msk.bf16.gmra.mrb[28].mxu1 %vm981_vm3, %v5390_v56  ;;  %v3216_v44 = vsel %vm7523_vm6, %v5628_v25, %v3215_v58  ;;  %v3223_v27 = vrot.slane %v7487_v0, 5  ;;  %v5631_v61 = vrot.slane %v7770_v36, 9  ;;  %v3227_v23 = vrot.slane %v7775_v34, 5  ;;  %v7807_v54 = vld [vmem:[%s7082_s12 + $0x40] sm:$0xf]  ;;  %v6770_v25 = vld [vmem:[%s7087_s15 + $0x48] sm:$0xff]  }
  0xad   : > { %6067 = vmatprep.mubr.msk.bf16.mxu1 %vm981_vm3, %v5411_v19  ;;  %v5659_v57 = vcombine.low %v3212_v29, %v3216_v44  ;;  %v5632_v45 = vrot.slane %v7778_v3, 9  ;;  %v3231_v19 = vrot.slane %v7785_v20, 5  ;;  %v5412_v0 = vcombine.low %v7798_v48, %v7801_v18  ;;  %v7810_v43 = vld [vmem:[%s7082_s12 + $0x50] sm:$0xf]  ;;  %v7820_v53 = vld [vmem:[%s7082_s12 + $0x188] sm:$0xf] }
  0xae   : > { %v5413_v56 = vcombine.low %v7807_v54, %v7810_v43  ;;  %v3220_v21 = vsel %vm7523_vm6, %v5629_v35, %v3219_v37  ;;  %v3224_v47 = vsel %vm7523_vm6, %v5630_v40, %v3223_v27  ;;  %9313 = vst [vmem:[#allocation27_spill] sm:$0xff] %v7820_v53  ;;  %v7823_v11 = vld [vmem:[%s7082_s12 + $0x18c] sm:$0x1]  ;;  %v3228_v31 = vsel %vm7523_vm6, %v5631_v61, %v3227_v23  ;;  %v7834_v29 = vld [vmem:[%s7082_s12 + $0x19c] sm:$0x1] }
  0xaf   : > { %v3232_v58 = vsel %vm7523_vm6, %v5632_v45, %v3231_v19  ;;  %v7837_v50 = vld [vmem:[%s7082_s12 + $0x1b8] sm:$0xf]  ;;  %v7840_v35 = vld [vmem:[%s7082_s12 + $0x1bc] sm:$0x1]  ;;  %v7843_v44 = vld [vmem:[%s7082_s12 + $0x1c8] sm:$0xf]  ;;  %v5660_v37 = vcombine.low %v3220_v21, %v3224_v47 }
  0xb0   : > { %6240 = vmatmul.mubr.msk.bf16.gmra.mrb[12].mxu0 %vm981_vm3, %v5658_v33  ;;  %v7831_v33 = vld [vmem:[%s7082_s12 + $0x198] sm:$0xf]  ;;  %9315 = vst [vmem:[#allocation44_spill] sm:$0xff] %v7837_v50  ;;  %9316 = vst [vmem:[#allocation45_spill] sm:$0xff] %v7840_v35  ;;  %v7846_v52 = vld [vmem:[%s7082_s12 + $0x1cc] sm:$0x1]  ;;  %v5661_v27 = vcombine.low %v3228_v31, %v3232_v58 }
  0xb1   : > { %6243 = vmatprep.mubr.msk.bf16.mxu0 %vm981_vm3, %v5659_v57  ;;  %9314 = vst [vmem:[#allocation43_spill] sm:$0xff] %v7831_v33  ;;  %9317 = vst [vmem:[#allocation46_spill] sm:$0xff] %v7843_v44  ;;  %v5633_v40 = vrot.slane %v7820_v53, 9  ;;  %v3235_v57 = vrot.slane %v7823_v11, 5  ;;  %v5634_v61 = vrot.slane %v7831_v33, 9  ;;  %v3239_v23 = vrot.slane %v7834_v29, 5 }
  0xb2   : > { %9318 = vst [vmem:[#allocation47_spill] sm:$0xff] %v7846_v52  ;;  %v6831_v45 = vld [vmem:[%s7087_s15 + $0x40] sm:$0xff]   ;;  %v5635_v19 = vrot.slane %v7837_v50, 9  ;;  %v5636_v21 = vrot.slane %v7843_v44, 9  ;;  %v6779_v47 = vld [vmem:[%s7087_s15 + $0x50] sm:$0xff]   ;;  %v6786_v36 = vld [vmem:[%s7087_s15 + $0x58] sm:$0xff]  }
  0xb3   : > { %v7861_v31 = vld [vmem:[%s7082_s12 + $0x60] sm:$0xf]  ;;  %v7864_v58 = vld [vmem:[%s7082_s12 + $0x70] sm:$0xf]  ;;  %v3236_v34 = vsel %vm7523_vm6, %v5633_v40, %v3235_v57  ;;  %v3240_v50 = vsel %vm7523_vm6, %v5634_v61, %v3239_v23  ;;  %v7886_v44 = vld [vmem:[%s7082_s12 + $0x1dc] sm:$0x1] }
  0xb4   : > { %6068 = vmatmul.mubr.msk.bf16.vlgmr.msra.gmra.mrb[0].mxu1 %vm981_vm3, %v5412_v0  ;;  %v3243_v0 = vrot.slane %v7840_v35, 5  ;;  %v7870_v35 = vld [vmem:[%s7082_s12 + $0x90] sm:$0xf]  ;;  %v7873_v20 = vld [vmem:[%s7082_s12 + $0xa0] sm:$0xf]  ;;  %9320 = vst [vmem:[#allocation49_spill] sm:$0xff] %v7886_v44 }
  0xb5   : > { %6071 = vmatprep.mubr.msk.bf16.mxu1 %vm981_vm3, %v5413_v56  ;;  %6100 = vmatpush3.bf16.msra.mxu1 %v6831_v45  ;;  %v3247_v56 = vrot.slane %v7846_v52, 5  ;;  %v5414_v45 = vcombine.low %v7861_v31, %v7864_v58  ;;  %v5415_v52 = vcombine.low %v7870_v35, %v7873_v20  ;;  %v7900_v40 = vld [vmem:[%s7082_s12 + $0x1f8] sm:$0xf]  ;;  %v7903_v57 = vld [vmem:[%s7082_s12 + $0x1fc] sm:$0x1]  ;;  %v3255_v9 = vrot.slane %v7897_v59, 5 }
  0xb6   : > { %6101 = vmatprep.subr.bf16.mxu1 %v6770_v25  ;;  %v3244_v3 = vsel %vm7523_vm6, %v5635_v19, %v3243_v0  ;;  %9323 = vst [vmem:[#allocation52_spill] sm:$0xff] %v7900_v40  ;;  %9324 = vst [vmem:[#allocation53_spill] sm:$0xff] %v7903_v57  ;;  %v7906_v61 = vld [vmem:[%s7082_s12 + $0x208] sm:$0xf]  ;;  %v7909_v23 = vld [vmem:[%s7082_s12 + $0x20c] sm:$0x1]  ;;  %v5662_v19 = vcombine.low %v3236_v34, %v3240_v50 }
  0xb7   : > { %v3248_v42 = vsel %vm7523_vm6, %v5636_v21, %v3247_v56  ;;  %9325 = vst [vmem:[#allocation54_spill] sm:$0xff] %v7906_v61  ;;  %9326 = vst [vmem:[#allocation55_spill] sm:$0xff] %v7909_v23  ;;  %v3251_v56 = vrot.slane %v7886_v44, 5  ;;  %v5640_v34 = vrot.slane %v7906_v61, 9  ;;  %v3263_v50 = vrot.slane %v7909_v23, 5 }
  0xb8   : > { %6244 = vmatmul.mubr.msk.bf16.gmra.mrb[16].mxu0 %vm981_vm3, %v5660_v37  ;;  %v7883_v37 = vld [vmem:[%s7082_s12 + $0x1d8] sm:$0xf]  ;;  %v5663_v21 = vcombine.low %v3244_v3, %v3248_v42  ;;  %v7924_v3 = vld [vmem:[%s7087_s15 + $0x60] sm:$0xff]   ;;  %v7927_v44 = vld [vmem:[%s7082_s12 + $0xb0] sm:$0xf]  ;;  %v1569_v63 = vrot.slane %v6855_v55, 5 }
  0xb9   : > { %6247 = vmatprep.mubr.msk.bf16.mxu0 %vm981_vm3, %v5661_v27  ;;  %9319 = vst [vmem:[#allocation48_spill] sm:$0xff] %v7883_v37  ;;  %6102 = vmatpush3.bf16.msra.mxu1 %v6770_v25  ;;  %v7894_v27 = vld [vmem:[%s7082_s12 + $0x1e8] sm:$0xf]  ;;  %v6836_v25 = vld [vmem:[%s7082_s12 + $0x4] sm:$0x1]  ;;  %v5637_v0 = vrot.slane %v7883_v37, 9  ;;  %v3264_v28 = vsel %vm7523_vm6, %v5640_v34, %v3263_v50 }
  0xba   : > { %9321 = vst [vmem:[#allocation50_spill] sm:$0xff] %v7894_v27  ;;  %6103 = vmatprep.subr.bf16.mxu1 %v6779_v47  ;;  %v1541_v10 = vrot.slane %v6836_v25, 5  ;;  %v5638_v46 = vrot.slane %v7894_v27, 9  ;;  %v5639_v25 = vrot.slane %v7900_v40, 9  ;;  %v7930_v59 = vld [vmem:[%s7082_s12 + $0xc0] sm:$0xf] }
  0xbb   : > { %v7937_v23 = vld [vmem:[%s7082_s12 + $0xd0] sm:$0xf]  ;;  %v3252_v61 = vsel %vm7523_vm6, %v5637_v0, %v3251_v56  ;;  %v7950_v27 = vld [vmem:[%s7082_s12 + $0x218] sm:$0xf]  ;;  %v7964_v0 = vld [vmem:[%s7082_s12 + $0x22c] sm:$0x1] }
  0xbc   : > { %6072 = vmatmul.mubr.msk.bf16.gmra.mrb[4].mxu1 %vm981_vm3, %v5414_v45  ;;  %v3259_v45 = vrot.slane %v7903_v57, 5  ;;  %v5416_v57 = vcombine.low %v7927_v44, %v7930_v59  ;;  %v3256_v37 = vsel %vm7523_vm6, %v5638_v46, %v3255_v9  ;;  %9327 = vst [vmem:[#allocation56_spill] sm:$0xff] %v7950_v27  ;;  %9330 = vst [vmem:[#allocation59_spill] sm:$0xff] %v7964_v0  ;;  %v3271_v50 = vrot.slane %v7964_v0, 5 }
  0xbd   : > { %6075 = vmatprep.mubr.msk.bf16.mxu1 %vm981_vm3, %v5415_v52  ;;  %6104 = vmatpush3.bf16.msra.mxu1 %v6779_v47  ;;  %v6837_v52 = vld [vmem:[%s7082_s12 + $0x14] sm:$0x1]  ;;  %v5447_v47 = vrot.slane %v7745_v6, 9  ;;  %v5664_v56 = vcombine.low %v3252_v61, %v3256_v37  ;;  %v9332_v61 = vld [vmem:[#allocation17_spill] sm:$0xff] }
  0xbe   : > { %v1545_v42 = vrot.slane %v6837_v52, 5  ;;  %6105 = vmatprep.subr.bf16.mxu1 %v6786_v36  ;;  %v7940_v52 = vld [vmem:[%s7082_s12 + $0xe0] sm:$0xf]  ;;  %v3260_v6 = vsel %vm7523_vm6, %v5639_v25, %v3259_v45  ;;  %v5641_v25 = vrot.slane %v7950_v27, 9  ;;  %v9333_v45 = vld [vmem:[#allocation25_spill] sm:$0xff] }
  0xbf   : > { %v5417_v40 = vcombine.low %v7937_v23, %v7940_v52  ;;  %v7968_v9 = vsel %vm7523_vm6, %v5447_v47, %v1541_v10  ;;  %v3267_v10 = vrot.slane %v7958_v8, 5  ;;  %v7987_v47 = vld [vmem:[%s7082_s12 + $0x100] sm:$0xf]  ;;  %v8111_v8 = vld [vmem:[%s7082_s12 + $0x130] sm:$0xf] }
  0xc0   : > { %6248 = vmatmul.mubr.msk.bf16.gmra.mrb[20].mxu0 %vm981_vm3, %v5662_v19  ;;  %v5448_v19 = vrot.slane %v7748_v5, 9  ;;  %v8114_v27 = vld [vmem:[%s7082_s12 + $0x140] sm:$0xf] }
  0xc1   : > { %6251 = vmatprep.mubr.msk.bf16.mxu0 %vm981_vm3, %v5663_v21  ;;  %v7961_v21 = vld [vmem:[%s7082_s12 + $0x228] sm:$0xf]  ;;  %6106 = vmatpush3.bf16.msra.mxu1 %v6786_v36  ;;  %v5665_v36 = vcombine.low %v3260_v6, %v3264_v28  ;;  %v3268_v28 = vsel %vm7523_vm6, %v5641_v25, %v3267_v10  ;;  %v5696_v10 = vcombine.low %v7801_v18, %v7807_v54 }
  0xc2   : > { %9329 = vst [vmem:[#allocation58_spill] sm:$0xff] %v7961_v21  ;;  %v7972_v46 = vsel %vm7523_vm6, %v5448_v19, %v1545_v42  ;;  %6139 = vmatprep.subr.bf16.mxu1 %v7924_v3  ;;  %v5642_v34 = vrot.slane %v7961_v21, 9  ;;  %v7984_v42 = vld [vmem:[%s7082_s12 + $0xf0] sm:$0xf]  ;;  %v9335_v25 = vld [vmem:[#allocation29_spill] sm:$0xff] }
  0xc3   : > { %v5418_v37 = vcombine.low %v7984_v42, %v7987_v47 }
  0xc4   : > { %6076 = vmatmul.mubr.msk.bf16.gmra.mrb[8].mxu1 %vm981_vm3, %v5416_v57  ;;  %v9331_v57 = vld [vmem:[#allocation18_spill] sm:$0xff] }
  0xc5   : > { %6079 = vmatprep.mubr.msk.bf16.mxu1 %vm981_vm3, %v5417_v40  ;;  %v5419_v19 = vcombine.low %v9332_v61, %v9331_v57  ;;  %v3272_v40 = vsel %vm7523_vm6, %v5642_v34, %v3271_v50  ;;  %v9334_v57 = vld [vmem:[#allocation24_spill] sm:$0xff]  ;;  %v5422_v34 = vcombine.low %v7519_v22, %v7537_v16 }
  0xc6   : > { %v5666_v6 = vcombine.low %v3268_v28, %v3272_v40  ;;  %v5420_v61 = vcombine.low %v9334_v57, %v9333_v45  ;;  %v6785_v45 = vld [vmem:[%s7087_s15 + $0xe8] sm:$0xff]   ;;  %v8024_v50 = vld [vmem:[%s7082_s12 + $0x80] sm:$0xf]  ;;  %v6797_v40 = vld [vmem:[%s7087_s15 + $0xf8] sm:$0xff]   ;;  %v5450_v57 = vrot.slane %v7801_v18, 9  ;;  %v2666_v18 = vshrl.u32 %v7831_v33, 16 }
  0xc7   : > { %v5698_v16 = vcombine.low %v7864_v58, %v8024_v50 }
  0xc8   : > { %6252 = vmatmul.mubr.msk.bf16.gmra.mrb[24].mxu0 %vm981_vm3, %v5664_v56  ;;  %v5695_v56 = vcombine.low %v7748_v5, %v7798_v48  ;;  %v5697_v5 = vcombine.low %v7810_v43, %v7861_v31 }
  0xc9   : > { %6255 = vmatprep.mubr.msk.bf16.mxu0 %vm981_vm3, %v5665_v36  ;;  %v5421_v36 = vcombine.low %v9335_v25, %v7501_v60  ;;  %v5423_v60 = vcombine.low %v7557_v13, %v7575_v14  ;;  %v5449_v13 = vrot.slane %v7798_v48, 9  ;;  %v5424_v48 = vcombine.low %v7598_v7, %v7612_v15 }
  0xcc   : > { %6080 = vmatmul.mubr.msk.bf16.gmra.mrb[12].mxu1 %vm981_vm3, %v5418_v37  ;;  %v6791_v37 = vld [vmem:[%s7087_s15 + $0xf0] sm:$0xff]  }
  0xcd   : > { %6083 = vmatprep.mubr.msk.bf16.mxu1 %vm981_vm3, %v5419_v19  ;;  %v6844_v19 = vld [vmem:[%s7082_s12 + $0x24] sm:$0x1] }
  0xce   : > { %v1549_v28 = vrot.slane %v6844_v19, 5  ;;  %v8087_v19 = vrot.slane %v2666_v18, 4  ;;  %v6848_v18 = vld [vmem:[%s7082_s12 + $0xa4] sm:$0x1] }
  0xd0   : > { %6256 = vmatmul.mubr.msk.bf16.gmra.mrb[28].mxu0 %vm981_vm3, %v5666_v6  ;;  %v5477_v6 = vrot.slane %v7670_v17, 9 }
  0xd1   : > { %6267 = vmatprep.mubr.msk.bf16.mxu0 %vm981_vm3, %v5695_v56  ;;  %v1661_v56 = vrot.slane %v7677_v26, 5  ;;  %v2655_v26 = vshll.u32 %v7820_v53, 16 }
  0xd4   : > { %6084 = vmatmul.mubr.msk.bf16.gmra.mrb[16].mxu1 %vm981_vm3, %v5420_v61  ;;  %v6845_v61 = vld [vmem:[%s7082_s12 + $0x34] sm:$0x1] }
  0xd5   : > { %6087 = vmatprep.mubr.msk.bf16.mxu1 %vm981_vm3, %v5421_v36  ;;  %v1553_v25 = vrot.slane %v6845_v61, 5  ;;  %v5478_v36 = vrot.slane %v7693_v41, 9 }
  0xd8   : > { %6268 = vmatmul.mubr.msk.bf16.vlgmr.msra.gmra.mrb[0].mxu0 %vm981_vm3, %v5696_v10  ;;  %v1665_v10 = vrot.slane %v7702_v32, 5 }
  0xd9   : > { %6300 = vmatpush3.bf16.msra.mxu0 %v7662_v24  ;;  %6271 = vmatprep.mubr.msk.bf16.mxu0 %vm981_vm3, %v5697_v5  ;;  %v5699_v24 = vcombine.low %v7873_v20, %v7927_v44  ;;  %v2652_v5 = vshrl.u32 %v7820_v53, 16 }
  0xda   : > { %6301 = vmatprep.subr.bf16.mxu0 %v6785_v45  ;;  %v8057_v32 = vsel %vm7523_vm6, %v5478_v36, %v1665_v10  ;;  %v8085_v10 = vrot.slane %v2655_v26, 5 }
  0xdb   : > { %v8075_v61 = vrot.slane %v2652_v5, 4  ;;  %v5426_v5 = vcombine.low %v7670_v17, %v7693_v41 }
  0xdc   : > { %6088 = vmatmul.mubr.msk.bf16.gmra.mrb[20].mxu1 %vm981_vm3, %v5422_v34  ;;  %v5425_v34 = vcombine.low %v7633_v51, %v7650_v4 }
  0xdd   : > { %6091 = vmatprep.mubr.msk.bf16.mxu1 %vm981_vm3, %v5423_v60  ;;  %6302 = vmatpush3.bf16.msra.mxu0 %v6785_v45  ;;  %v8048_v45 = vsel %vm7523_vm6, %v5477_v6, %v1661_v56  ;;  %v8061_v60 = vsel %vm7523_vm6, %v5449_v13, %v1549_v28  ;;  %v8070_v6 = vsel %vm7523_vm6, %v5450_v57, %v1553_v25  ;;  %v8081_v28 = vld [vmem:[%s7082_s12 + $0x110] sm:$0xf]  ;;  %v5452_v57 = vrot.slane %v7810_v43, 9  ;;  %v6846_v25 = vld [vmem:[%s7082_s12 + $0x54] sm:$0x1] }
  0xde   : > { %6303 = vmatprep.subr.bf16.mxu0 %v6791_v37  ;;  %v5700_v13 = vcombine.low %v7930_v59, %v7937_v23  ;;  %v1561_v36 = vrot.slane %v6846_v25, 5  ;;  %v5453_v56 = vrot.slane %v7861_v31, 9  ;;  %v6847_v43 = vld [vmem:[%s7082_s12 + $0x64] sm:$0x1]  ;;  %v5456_v25 = vrot.slane %v7873_v20, 9 }
  0xdf   : > { %v1565_v26 = vrot.slane %v6847_v43, 5  ;;  %v6849_v31 = vld [vmem:[%s7082_s12 + $0xb4] sm:$0x1]  ;;  %v6850_v43 = vld [vmem:[%s7082_s12 + $0x44] sm:$0x1] }
  0xe0   : > { %6272 = vmatmul.mubr.msk.bf16.gmra.mrb[4].mxu0 %vm981_vm3, %v5698_v16  ;;  %v8064_v16 = vld [vmem:[%s7087_s15 + $0x100] sm:$0xff]   ;;  %v1581_v0 = vrot.slane %v6849_v31, 5  ;;  %v1557_v20 = vrot.slane %v6850_v43, 5 }
  0xe1   : > { %6275 = vmatprep.mubr.msk.bf16.mxu0 %vm981_vm3, %v5699_v24  ;;  %6304 = vmatpush3.bf16.msra.mxu0 %v6791_v37  ;;  %9336 = vst [vmem:[#allocation18_spill] sm:$0xff] %v8064_v16  ;;  %v1577_v37 = vrot.slane %v6848_v18, 5  ;;  %v5451_v24 = vrot.slane %v7807_v54, 9  ;;  %v8108_v18 = vsel %vm7523_vm6, %v5452_v57, %v1561_v36  ;;  %v5703_v54 = vcombine.low %v8111_v8, %v8114_v27  ;;  %v6853_v31 = vld [vmem:[%s7082_s12 + $0xc4] sm:$0x1] }
  0xe2   : > { %6305 = vmatprep.subr.bf16.mxu0 %v6797_v40  ;;  %9337 = vst [vmem:[#allocation17_spill] sm:$0xff] %v8108_v18  ;;  %v1585_v43 = vrot.slane %v6853_v31, 5  ;;  %v5459_v57 = vrot.slane %v7937_v23, 9  ;;  %v6854_v36 = vld [vmem:[%s7082_s12 + $0xd4] sm:$0x1]  ;;  %v8126_v49 = vsel %vm7523_vm6, %v5453_v56, %v1565_v26  ;;  %v5460_v23 = vrot.slane %v7940_v52, 9 }
  0xe3   : > { %v1589_v21 = vrot.slane %v6854_v36, 5  ;;  %v6856_v31 = vld [vmem:[%s7082_s12 + $0xe4] sm:$0x1]  ;;  %v6857_v56 = vld [vmem:[%s7082_s12 + $0xf4] sm:$0x1] }
  0xe4   : > { %6092 = vmatmul.mubr.msk.bf16.gmra.mrb[24].mxu1 %vm981_vm3, %v5424_v48  ;;  %v5701_v48 = vcombine.low %v7940_v52, %v7984_v42  ;;  %v1593_v36 = vrot.slane %v6856_v31, 5  ;;  %v1597_v26 = vrot.slane %v6857_v56, 5  ;;  %v9338_v52 = vcombine.low %v7968_v9, %v7972_v46 }
  0xe5   : > { %6095 = vmatprep.mubr.msk.bf16.mxu1 %vm981_vm3, %v5425_v34  ;;  %6306 = vmatpush3.bf16.msra.mxu0 %v6797_v40  ;;  %v5702_v34 = vcombine.low %v7987_v47, %v8081_v28  ;;  %v5457_v40 = vrot.slane %v7927_v44, 9  ;;  %v5454_v44 = vrot.slane %v7864_v58, 9  ;;  %v8131_v58 = vsel %vm7523_vm6, %v5456_v25, %v1577_v37 }
  0xe6   : > { %6339 = vmatprep.subr.bf16.mxu0 %v8064_v16  ;;  %v8142_v16 = vld [vmem:[%s7082_s12 + $0x84] sm:$0x1]  ;;  %v5461_v37 = vrot.slane %v7984_v42, 9  ;;  %v5775_v25 = vrot.slane %v8024_v50, 9  ;;  %v8165_v42 = vsel %vm7523_vm6, %v5459_v57, %v1589_v21  ;;  %v9339_v9 = vshll.u32 %v7831_v33, 16 }
  0xe8   : > { %6276 = vmatmul.mubr.msk.bf16.gmra.mrb[8].mxu0 %vm981_vm3, %v5700_v13  ;;  %v5458_v13 = vrot.slane %v7930_v59, 9  ;;  %v2671_v56 = vrot.slane %v9339_v9, 5  ;;  %v6859_v9 = vld [vmem:[%s7082_s12 + $0x160] sm:$0xf] }
  0xe9   : > { %6279 = vmatprep.mubr.msk.bf16.mxu0 %vm981_vm3, %v5701_v48  ;;  %v8137_v48 = vsel %vm7523_vm6, %v5457_v40, %v1581_v0  ;;  %v4249_v0 = vrot.slane %v8142_v16, 5  ;;  %v8157_v40 = vsel %vm7523_vm6, %v5451_v24, %v1557_v20  ;;  %v8173_v24 = vsel %vm7523_vm6, %v5454_v44, %v1569_v63 }
  0xea   : > { %v9342_v63 = vshll.u32 %v7834_v29, 16  ;;  %v6858_v29 = vld [vmem:[%s7082_s12 + $0x150] sm:$0xf]  ;;  %v2672_v59 = vor.u32 %v2671_v56, %v8087_v19 }
  0xeb   : > { %v8177_v20 = vsel %vm7523_vm6, %v5775_v25, %v4249_v0  ;;  %v5489_v25 = vcombine.low %v8157_v40, %v8108_v18  ;;  %v8194_v0 = vsel %vm7523_vm6, %v5460_v23, %v1593_v36  ;;  %v5462_v23 = vrot.slane %v7987_v47, 9  ;;  %v6861_v36 = vld [vmem:[%s7082_s12 + $0x104] sm:$0x1]  ;;  %v6864_v19 = vld [vmem:[%s7082_s12 + $0x170] sm:$0xf] }
  0xec   : > { %6096 = vmatmul.mubr.msk.bf16.gmra.mrb[28].mxu1 %vm981_vm3, %v5426_v5  ;;  %v8161_v5 = vsel %vm7523_vm6, %v5458_v13, %v1585_v43  ;;  %9340 = vst [vmem:[#allocation25_spill] sm:$0xff] %v8177_v20  ;;  %v5488_v13 = vcombine.low %v8061_v60, %v8070_v6  ;;  %v9341_v43 = vshll.u32 %v7823_v11, 16  ;;  %v2677_v44 = vrot.slane %v9342_v63, 5  ;;  %v6860_v63 = vld [vmem:[%s7082_s12 + $0x94] sm:$0x1] }
  0xed   : > { %6107 = vmatprep.mubr.msk.bf16.mxu1 %vm981_vm3, %v9338_v52  ;;  %v8198_v11 = vsel %vm7523_vm6, %v5461_v37, %v1597_v26  ;;  %v1573_v21 = vrot.slane %v6860_v63, 5  ;;  %v1601_v52 = vrot.slane %v6861_v36, 5  ;;  %v6799_v37 = vld [vmem:[%s7087_s15 + $0x68] sm:$0xff]   ;;  %v8211_v26 = vld [vmem:[%s7082_s12 + $0x114] sm:$0x1]  ;;  %v5776_v20 = vrot.slane %v8081_v28, 9 }
  0xee   : > { %v2663_v57 = vrot.slane %v9341_v43, 5  ;;  %v5704_v43 = vcombine.low %v6858_v29, %v6859_v9  ;;  %v6862_v63 = vld [vmem:[%s7082_s12 + $0x134] sm:$0x1]  ;;  %v4253_v31 = vrot.slane %v8211_v26, 5  ;;  %v5465_v47 = vrot.slane %v8114_v27, 9 }
  0xef   : > { %v1609_v55 = vrot.slane %v6862_v63, 5  ;;  %v6863_v36 = vld [vmem:[%s7082_s12 + $0x144] sm:$0x1]  ;;  %v2673_v18 = vrot.slane %v2672_v59, 4  ;;  %v8237_v59 = vsel %vm7523_vm6, %v5462_v23, %v1601_v52  ;;  %v6802_v56 = vld [vmem:[%s7087_s15 + $0x70] sm:$0xff]   ;;  %v5467_v52 = vrot.slane %v6859_v9, 9 }
  0xf0   : > { %6280 = vmatmul.mubr.msk.bf16.gmra.mrb[12].mxu0 %vm981_vm3, %v5702_v34  ;;  %v5455_v34 = vrot.slane %v7870_v35, 9  ;;  %v5464_v35 = vrot.slane %v8111_v8, 9  ;;  %v1613_v33 = vrot.slane %v6863_v36, 5  ;;  %v5490_v8 = vcombine.low %v8126_v49, %v8173_v24  ;;  %v8269_v9 = vld [vmem:[%s7082_s12 + $0x190] sm:$0xf] }
  0xf1   : > { %6283 = vmatprep.mubr.msk.bf16.mxu0 %vm981_vm3, %v5703_v54  ;;  %v2658_v54 = vor.u32 %v8085_v10, %v8075_v61  ;;  %v5705_v61 = vcombine.low %v6864_v19, %v7519_v22  ;;  %v8231_v10 = vsel %vm7523_vm6, %v5776_v20, %v4253_v31  ;;  %v5466_v20 = vrot.slane %v6858_v29, 9  ;;  %v8262_v29 = vld [vmem:[%s7082_s12 + $0x1a0] sm:$0xf] }
  0xf2   : > { %v1574_v27 = vsel %vm7523_vm6, %v5455_v34, %v1573_v21  ;;  %v8246_v31 = vsel %vm7523_vm6, %v5464_v35, %v1609_v55  ;;  %v5706_v34 = vcombine.low %v8269_v9, %v8262_v29  ;;  %v5468_v63 = vrot.slane %v6864_v19, 9 }
  0xf3   : > { %v2659_v53 = vrot.slane %v2658_v54, 4  ;;  %v5707_v54 = vcombine.low %v7575_v14, %v7598_v7  ;;  %v5493_v19 = vcombine.low %v8165_v42, %v8194_v0 }
  0xf4   : > { %6108 = vmatmul.mubr.msk.bf16.vlgmr.msra.gmra.mrb[0].mxu1 %vm981_vm3, %v5488_v13  ;;  %v5794_v13 = vcombine.low %v8237_v59, %v8231_v10 }
  0xf5   : > { %6111 = vmatprep.mubr.msk.bf16.mxu1 %vm981_vm3, %v5489_v25  ;;  %6140 = vmatpush3.bf16.msra.mxu1 %v7924_v3  ;;  %v2664_v22 = vsel %vm7109_vm2, %v2659_v53, %v2663_v57  ;;  %v2678_v3 = vsel %vm7109_vm2, %v2673_v18, %v2677_v44  ;;  %v8255_v53 = vsel %vm7523_vm6, %v5465_v47, %v1613_v33  ;;  %v6865_v57 = vld [vmem:[%s7082_s12 + $0x154] sm:$0x1]  ;;  %v6866_v44 = vld [vmem:[%s7082_s12 + $0x164] sm:$0x1]  ;;  %v6804_v33 = vld [vmem:[%s7087_s15 + $0x78] sm:$0xff]  }
  0xf6   : > { %6141 = vmatprep.subr.bf16.mxu1 %v6799_v37  ;;  %v8248_v21 = vcombine.low %v2664_v22, %v2678_v3  ;;  %v1617_v18 = vrot.slane %v6865_v57, 5  ;;  %v1621_v55 = vrot.slane %v6866_v44, 5  ;;  %v5491_v25 = vcombine.low %v1574_v27, %v8131_v58  ;;  %v6868_v47 = vld [vmem:[%s7082_s12 + $0x174] sm:$0x1]  ;;  %v6870_v27 = vld [vmem:[%s7082_s12 + $0x184] sm:$0x1] }
  0xf7   : > { %v1625_v36 = vrot.slane %v6868_v47, 5  ;;  %v1629_v22 = vrot.slane %v6870_v27, 5  ;;  %v6871_v3 = vld [vmem:[%s7082_s12 + $0x120] sm:$0xf]  ;;  %v6872_v57 = vld [vmem:[%s7082_s12 + $0x124] sm:$0x1]  ;;  %v5709_v44 = vcombine.low %v7650_v4, %v7670_v17 }
  0xf8   : > { %6284 = vmatmul.mubr.msk.bf16.gmra.mrb[16].mxu0 %vm981_vm3, %v5704_v43  ;;  %v5795_v43 = vcombine.low %v8246_v31, %v8255_v53  ;;  %v8275_v23 = vsel %vm7523_vm6, %v5466_v20, %v1617_v18  ;;  %v5463_v20 = vrot.slane %v6871_v3, 9  ;;  %v1605_v18 = vrot.slane %v6872_v57, 5  ;;  %v8352_v57 = vld [vmem:[%s7082_s12 + $0x230] sm:$0xf] }
  0xf9   : > { %6287 = vmatprep.mubr.msk.bf16.mxu0 %vm981_vm3, %v5705_v61  ;;  %6142 = vmatpush3.bf16.msra.mxu1 %v6799_v37  ;;  %v8279_v37 = vsel %vm7523_vm6, %v5467_v52, %v1621_v55  ;;  %v5492_v52 = vcombine.low %v8137_v48, %v8161_v5  ;;  %v8303_v55 = vsel %vm7523_vm6, %v5468_v63, %v1625_v36  ;;  %v1641_v17 = vrot.slane %v7584_v39, 5 }
  0xfa   : > { %6143 = vmatprep.subr.bf16.mxu1 %v6802_v56  ;;  %v5796_v35 = vcombine.low %v8275_v23, %v8279_v37  ;;  %v5473_v47 = vrot.slane %v7598_v7, 9  ;;  %v1645_v36 = vrot.slane %v7603_v30, 5  ;;  %v1653_v39 = vrot.slane %v7638_v2, 5  ;;  %v6874_v7 = vld [vmem:[%s7082_s12 + $0x194] sm:$0x1] }
  0xfb   : > { %v5476_v27 = vrot.slane %v7650_v4, 9  ;;  %v5470_v3 = vrot.slane %v8269_v9, 9  ;;  %v3894_v30 = vshrl.u32 %v8024_v50, 16  ;;  %v5777_v2 = vrot.slane %v8262_v29, 9 }
  0xfc   : > { %6112 = vmatmul.mubr.msk.bf16.gmra.mrb[4].mxu1 %vm981_vm3, %v5490_v8  ;;  %v6869_v8 = vld [vmem:[%s7082_s12 + $0x180] sm:$0xf]  ;;  %v8347_v9 = vsel %vm7523_vm6, %v5473_v47, %v1645_v36 }
  0xfd   : > { %6115 = vmatprep.mubr.msk.bf16.mxu1 %vm981_vm3, %v5491_v25  ;;  %6144 = vmatpush3.bf16.msra.mxu1 %v6802_v56  ;;  %v5469_v61 = vrot.slane %v6869_v8, 9  ;;  %v5708_v56 = vcombine.low %v7612_v15, %v7633_v51  ;;  %v5474_v8 = vrot.slane %v7612_v15, 9  ;;  %v3897_v15 = vshll.u32 %v8024_v50, 16 }
  0xfe   : > { %6145 = vmatprep.subr.bf16.mxu1 %v6804_v33 }
  0xff   : > { %v8307_v25 = vsel %vm7523_vm6, %v5469_v61, %v1629_v22  ;;  %v1649_v61 = vrot.slane %v7621_v12, 5  ;;  %v1657_v22 = vrot.slane %v7656_v62, 5  ;;  %v5494_v12 = vcombine.low %v8198_v11, %v8237_v59  ;;  %v9403_v59 = vld [vmem:[#allocation57_spill] sm:$0xff] }
 0x100   : > { %6288 = vmatmul.mubr.msk.bf16.gmra.mrb[20].mxu0 %vm981_vm3, %v5706_v34  ;;  %v8310_v34 = vld [vmem:[%s7087_s15 + $0x80] sm:$0xff]   ;;  %v5797_v63 = vcombine.low %v8303_v55, %v8307_v25 }
 0x101   : > { %6291 = vmatprep.mubr.msk.bf16.mxu0 %vm981_vm3, %v5707_v54  ;;  %6146 = vmatpush3.bf16.msra.mxu1 %v6804_v33  ;;  %v1606_v33 = vsel %vm7523_vm6, %v5463_v20, %v1605_v18  ;;  %v5472_v54 = vrot.slane %v7575_v14, 9  ;;  %v5475_v14 = vrot.slane %v7633_v51, 9  ;;  %v1633_v20 = vrot.slane %v6874_v7, 5  ;;  %v8336_v51 = vld [vmem:[%s7082_s12 + $0x1a4] sm:$0x1] }
 0x102   : > { %6396 = vmatprep.subr.bf16.mxu1 %v8310_v34  ;;  %v5495_v4 = vcombine.low %v1606_v33, %v8246_v31  ;;  %v4257_v50 = vrot.slane %v8336_v51, 5  ;;  %v8356_v18 = vsel %vm7523_vm6, %v5474_v8, %v1649_v61  ;;  %v8373_v33 = vld [vmem:[%s7082_s12 + $0x234] sm:$0x1]  ;;  %v5778_v8 = vrot.slane %v8352_v57, 9 }
 0x103   : > { %v8343_v62 = vsel %vm7523_vm6, %v5472_v54, %v1641_v17  ;;  %v4261_v61 = vrot.slane %v8373_v33, 5  ;;  %v5496_v7 = vcombine.low %v8255_v53, %v8275_v23 }
 0x104   : > { %6116 = vmatmul.mubr.msk.bf16.gmra.mrb[8].mxu1 %vm981_vm3, %v5492_v52  ;;  %v8360_v52 = vsel %vm7523_vm6, %v5475_v14, %v1653_v39  ;;  %v8377_v54 = vsel %vm7523_vm6, %v5777_v2, %v4257_v50  ;;  %v5710_v14 = vcombine.low %v7693_v41, %v8352_v57  ;;  %v3896_v39 = vrot.slane %v3894_v30, 4 }
 0x105   : > { %6119 = vmatprep.mubr.msk.bf16.mxu1 %vm981_vm3, %v5493_v19  ;;  %v8364_v19 = vsel %vm7523_vm6, %v5476_v27, %v1657_v22  ;;  %v3899_v27 = vrot.slane %v3897_v15, 5  ;;  %v8393_v22 = vsel %vm7523_vm6, %v5778_v8, %v4261_v61  ;;  %v5497_v41 = vcombine.low %v8279_v37, %v8303_v55  ;;  %v6876_v8 = vld [vmem:[%s7082_s12 + $0x1b4] sm:$0x1] }
 0x106   : > { %v3903_v2 = vshll.u32 %v8142_v16, 16  ;;  %v1637_v61 = vrot.slane %v6876_v8, 5  ;;  %v9353_v8 = vld [vmem:[#allocation13_spill] sm:$0xff]  ;;  %v9406_v55 = vcombine.low %v8356_v18, %v8360_v52  ;;  %v9407_v38 = vcombine.low %v8364_v19, %v8048_v45 }
 0x107   : > { %v3900_v15 = vor.u32 %v3899_v27, %v3896_v39  ;;  %v6803_v39 = vld [vmem:[%s7087_s15 + $0x108] sm:$0xff]   ;;  %v9348_v27 = vld [vmem:[#allocation7_spill] sm:$0xff] }
 0x108   : > { %6292 = vmatmul.mubr.msk.bf16.gmra.mrb[24].mxu0 %vm981_vm3, %v5708_v56  ;;  %v3905_v56 = vrot.slane %v3903_v2, 5  ;;  %v6809_v2 = vld [vmem:[%s7087_s15 + $0x110] sm:$0xff]  }
 0x109   : > { %6295 = vmatprep.mubr.msk.bf16.mxu0 %vm981_vm3, %v5709_v44  ;;  %v8370_v44 = vsel %vm7523_vm6, %v5470_v3, %v1633_v20  ;;  %v9343_v20 = vld [vmem:[#allocation5_spill] sm:$0xff]  ;;  %v3901_v17 = vrot.slane %v3900_v15, 4 }
 0x10a   : > { %v5798_v36 = vcombine.low %v8370_v44, %v8377_v54  ;;  %v9347_v3 = vld [vmem:[#allocation9_spill] sm:$0xff]  ;;  %v5498_v16 = vcombine.low %v8307_v25, %v8370_v44  ;;  %v9408_v25 = vcombine.low %v8057_v32, %v8393_v22 }
 0x10b   : > { %v3906_v1 = vsel %vm7109_vm2, %v3901_v17, %v3905_v56  ;;  %v5501_v56 = vcombine.low %v8360_v52, %v8364_v19  ;;  %v6982_v52 = vmov 0.0  }
 0x10c   : > { %6120 = vmatmul.mubr.msk.bf16.gmra.mrb[12].mxu1 %vm981_vm3, %v5494_v12  ;;  %v9344_v12 = vld [vmem:[#allocation6_spill] sm:$0xff] }
 0x10d   : > { %6123 = vmatprep.mubr.msk.bf16.mxu1 %vm981_vm3, %v5495_v4  ;;  %v9345_v30 = vcombine.low %v9343_v20, %v9344_v12  ;;  %v6875_v4 = vld [vmem:[%s7082_s12 + $0x1b0] sm:$0xf]  ;;  %v9349_v12 = vld [vmem:[#allocation8_spill] sm:$0xff] }
 0x10e   : > { %v5471_v50 = vrot.slane %v6875_v4, 9  ;;  %v9352_v4 = vld [vmem:[#allocation11_spill] sm:$0xff] }
 0x110   : > { %6296 = vmatmul.mubr.msk.bf16.gmra.mrb[28].mxu0 %vm981_vm3, %v5710_v14  ;;  %v9346_v14 = vld [vmem:[#allocation10_spill] sm:$0xff]  ;;  %v1638_v20 = vsel %vm7523_vm6, %v5471_v50, %v1637_v61  ;;  %v5742_v50 = vcombine.low %v9352_v4, %v3906_v1  ;;  %v9354_v61 = vld [vmem:[#allocation12_spill] sm:$0xff]  ;;  %v6877_v4 = vld [vmem:[%s7082_s12 + $0x8] sm:$0xf] }
 0x111   : > { %6307 = vmatprep.mubr.msk.bf16.mxu0 %vm981_vm3, %v9345_v30  ;;  %v5741_v47 = vcombine.low %v9347_v3, %v9346_v14  ;;  %v9350_v30 = vcombine.low %v9348_v27, %v9349_v12  ;;  %v9351_v3 = vld [vmem:[#allocation18_spill] sm:$0xff]  ;;  %v5499_v15 = vcombine.low %v1638_v20, %v8343_v62  ;;  %v6814_v20 = vld [vmem:[%s7087_s15 + $0x118] sm:$0xff]  }
 0x112   : > { %v9356_v12 = vld [vmem:[#allocation14_spill] sm:$0xff] }
 0x114   : > { %6124 = vmatmul.mubr.msk.bf16.gmra.mrb[16].mxu1 %vm981_vm3, %v5496_v7  ;;  %v3908_v7 = vshrl.u32 %v8081_v28, 16 }
 0x115   : > { %6127 = vmatprep.mubr.msk.bf16.mxu1 %vm981_vm3, %v5497_v41  ;;  %v3911_v41 = vshll.u32 %v8081_v28, 16  ;;  %v5743_v28 = vcombine.low %v9354_v61, %v9353_v8 }
 0x116   : > { %v3910_v14 = vrot.slane %v3908_v7, 4  ;;  %v9357_v7 = vld [vmem:[#allocation19_spill] sm:$0xff] }
 0x117   : > { %v3913_v27 = vrot.slane %v3911_v41, 5  ;;  %v9358_v41 = vld [vmem:[#allocation16_spill] sm:$0xff] }
 0x118   : > { %6308 = vmatmul.mubr.msk.bf16.vlgmr.msra.gmra.mrb[0].mxu0 %vm981_vm3, %v9350_v30 }
 0x119   : > { %6340 = vmatpush3.bf16.msra.mxu0 %v9351_v3  ;;  %6311 = vmatprep.mubr.msk.bf16.mxu0 %vm981_vm3, %v5741_v47  ;;  %v5500_v47 = vcombine.low %v8347_v9, %v8356_v18  ;;  %v3914_v17 = vor.u32 %v3913_v27, %v3910_v14  ;;  %v5745_v3 = vcombine.low %v9358_v41, %v9357_v7  ;;  %v9360_v14 = vld [vmem:[#allocation20_spill] sm:$0xff]  ;;  %v6882_v7 = vld [vmem:[%s7082_s12 + $0x58] sm:$0xf] }
 0x11a   : > { %6341 = vmatprep.subr.bf16.mxu0 %v6803_v39 }
 0x11c   : > { %6128 = vmatmul.mubr.msk.bf16.gmra.mrb[20].mxu1 %vm981_vm3, %v5498_v16  ;;  %v3917_v16 = vshll.u32 %v8211_v26, 16  ;;  %v3922_v26 = vshrl.u32 %v8262_v29, 16 }
 0x11d   : > { %6131 = vmatprep.mubr.msk.bf16.mxu1 %vm981_vm3, %v5499_v15  ;;  %6342 = vmatpush3.bf16.msra.mxu0 %v6803_v39  ;;  %v9355_v39 = vld [vmem:[#allocation15_spill] sm:$0xff]  ;;  %v3915_v15 = vrot.slane %v3914_v17, 4 }
 0x11e   : > { %6343 = vmatprep.subr.bf16.mxu0 %v6809_v2  ;;  %v5744_v30 = vcombine.low %v9356_v12, %v9355_v39  ;;  %v3919_v1 = vrot.slane %v3917_v16, 5  ;;  %v6879_v16 = vld [vmem:[%s7082_s12 + $0x28] sm:$0xf]  ;;  %v6880_v39 = vld [vmem:[%s7082_s12 + $0x38] sm:$0xf] }
 0x11f   : > { %v5532_v12 = vcombine.low %v6879_v16, %v6880_v39  ;;  %v6888_v39 = vld [vmem:[%s7087_s15 + $0x90] sm:$0xff]  }
 0x120   : > { %6312 = vmatmul.mubr.msk.bf16.gmra.mrb[4].mxu0 %vm981_vm3, %v5742_v50  ;;  %v6878_v50 = vld [vmem:[%s7082_s12 + $0x18] sm:$0xf]  ;;  %v3920_v61 = vsel %vm7109_vm2, %v3915_v15, %v3919_v1  ;;  %v3931_v15 = vshll.u32 %v8336_v51, 16  ;;  %v9363_v1 = vld [vmem:[#allocation32_spill] sm:$0xff]  ;;  %v6884_v51 = vld [vmem:[%s7082_s12 + $0x68] sm:$0xf] }
 0x121   : > { %6315 = vmatprep.mubr.msk.bf16.mxu0 %vm981_vm3, %v5743_v28  ;;  %6344 = vmatpush3.bf16.msra.mxu0 %v6809_v2  ;;  %v3925_v2 = vshll.u32 %v8262_v29, 16  ;;  %v5531_v8 = vcombine.low %v6877_v4, %v6878_v50  ;;  %v9359_v28 = vcombine.low %v8048_v45, %v8057_v32  ;;  %v5746_v27 = vcombine.low %v9360_v14, %v3920_v61  ;;  %v9361_v29 = vld [vmem:[#allocation30_spill] sm:$0xff]  ;;  %v9366_v50 = vld [vmem:[#allocation33_spill] sm:$0xff]  ;;  %v4785_v32 = vld [vmem:[%s9177_s4 + $0x18] sm:$0xff] }
 0x122   : > { %6345 = vmatprep.subr.bf16.mxu0 %v6814_v20  ;;  %v9365_v4 = vld [vmem:[#allocation34_spill] sm:$0xff]  ;;  %v6883_v14 = vld [vmem:[%s7087_s15 + $0x88] sm:$0xff]   ;;  %v6980_v45 = vmov 0.0|0.0  }
 0x123   : > { %v3927_v17 = vrot.slane %v3925_v2, 5 }
 0x124   : > { %6132 = vmatmul.mubr.msk.bf16.gmra.mrb[24].mxu1 %vm981_vm3, %v5500_v47 }
 0x125   : > { %6135 = vmatprep.mubr.msk.bf16.mxu1 %vm981_vm3, %v5501_v56  ;;  %6346 = vmatpush3.bf16.msra.mxu0 %v6814_v20  ;;  %v9362_v20 = vld [vmem:[#allocation28_spill] sm:$0xff]  ;;  %v3924_v56 = vrot.slane %v3922_v26, 4  ;;  %v9364_v26 = vld [vmem:[#allocation31_spill] sm:$0xff] }
 0x126   : > { %v5747_v47 = vcombine.low %v9362_v20, %v9361_v29  ;;  %v5748_v2 = vcombine.low %v9364_v26, %v9363_v1  ;;  %v3936_v20 = vshrl.u32 %v8352_v57, 16  ;;  %v6889_v1 = vld [vmem:[%s7087_s15 + $0x98] sm:$0xff]   ;;  %s303_s15 = scalar_lea.vmem %s9176_s3, %s7075_s7 }
 0x127   : > { %v6890_v26 = vld [vmem:[%s7082_s12 + $0xb8] sm:$0xf] }
 0x128   : > { %6316 = vmatmul.mubr.msk.bf16.gmra.mrb[8].mxu0 %vm981_vm3, %v5744_v30  ;;  %v6881_v30 = vld [vmem:[%s7082_s12 + $0x48] sm:$0xf] }
 0x129   : > { %6319 = vmatprep.mubr.msk.bf16.mxu0 %vm981_vm3, %v5745_v3  ;;  %v5533_v41 = vcombine.low %v6881_v30, %v6882_v7  ;;  %v3928_v3 = vor.u32 %v3927_v17, %v3924_v56  ;;  %v6886_v56 = vld [vmem:[%s7082_s12 + $0x98] sm:$0xf]  ;;  %v6887_v17 = vld [vmem:[%s7082_s12 + $0xa8] sm:$0xf]  ;;  %v9369_v7 = vld [vmem:[#allocation36_spill] sm:$0xff] }
 0x12a   : > { %v5535_v16 = vcombine.low %v6886_v56, %v6887_v17  ;;  %v9368_v30 = vld [vmem:[#allocation37_spill] sm:$0xff] }
 0x12b   : > { %v3929_v61 = vrot.slane %v3928_v3, 4  ;;  %v3938_v3 = vrot.slane %v3936_v20, 4  ;;  %v9372_v20 = vld [vmem:[#allocation41_spill] sm:$0xff] }
 0x12c   : > { %6136 = vmatmul.mubr.msk.bf16.gmra.mrb[28].mxu1 %vm981_vm3, %v9359_v28  ;;  %v3933_v28 = vrot.slane %v3931_v15, 5 }
 0x12d   : > { %6147 = vmatprep.mubr.msk.bf16.mxu1 %vm981_vm3, %v5531_v8  ;;  %v5749_v8 = vcombine.low %v9366_v50, %v9365_v4  ;;  %v6892_v50 = vld [vmem:[%s7082_s12 + $0xd8] sm:$0xf] }
 0x130   : > { %6320 = vmatmul.mubr.msk.bf16.gmra.mrb[12].mxu0 %vm981_vm3, %v5746_v27  ;;  %v6885_v27 = vld [vmem:[%s7082_s12 + $0x78] sm:$0xf] }
 0x131   : > { %6323 = vmatprep.mubr.msk.bf16.mxu0 %vm981_vm3, %v5747_v47  ;;  %v5534_v29 = vcombine.low %v6884_v51, %v6885_v27  ;;  %v3939_v47 = vshll.u32 %v8352_v57, 16  ;;  %v9370_v51 = vld [vmem:[#allocation39_spill] sm:$0xff]  ;;  %v9371_v27 = vld [vmem:[#allocation38_spill] sm:$0xff] }
 0x133   : > { %v3941_v15 = vrot.slane %v3939_v47, 5  ;;  %v9373_v47 = vld [vmem:[#allocation40_spill] sm:$0xff] }
 0x134   : > { %6148 = vmatmul.mubr.msk.bf16.vlgmr.msra.gmra.mrb[0].mxu1 %vm981_vm3, %v5532_v12  ;;  %v9367_v12 = vld [vmem:[#allocation35_spill] sm:$0xff]  ;;  %v5753_v56 = vcombine.low %v9373_v47, %v9372_v20  ;;  %v9379_v20 = vld [vmem:[#allocation17_spill] sm:$0xff] }
 0x135   : > { %6151 = vmatprep.mubr.msk.bf16.mxu1 %vm981_vm3, %v5533_v41  ;;  %6400 = vmatpush3.bf16.msra.mxu1 %v8310_v34  ;;  %v3934_v34 = vsel %vm7109_vm2, %v3929_v61, %v3933_v28  ;;  %v5751_v41 = vcombine.low %v9369_v7, %v9368_v30  ;;  %v3942_v28 = vor.u32 %v3941_v15, %v3938_v3 }
 0x136   : > { %6397 = vmatprep.subr.bf16.mxu1 %v6883_v14  ;;  %v5750_v57 = vcombine.low %v9367_v12, %v3934_v34  ;;  %v6894_v34 = vld [vmem:[%s7082_s12 + $0xf8] sm:$0xf]  ;;  %v5787_v15 = vcombine.low %v7972_v46, %v8061_v60 }
 0x137   : > { %v3943_v17 = vrot.slane %v3942_v28, 4 }
 0x138   : > { %6324 = vmatmul.mubr.msk.bf16.gmra.mrb[16].mxu0 %vm981_vm3, %v5748_v2  ;;  %v6891_v2 = vld [vmem:[%s7082_s12 + $0xc8] sm:$0xf] }
 0x139   : > { %6327 = vmatprep.mubr.msk.bf16.mxu0 %vm981_vm3, %v5749_v8  ;;  %6401 = vmatpush3.bf16.msra.mxu1 %v6883_v14  ;;  %v5536_v4 = vcombine.low %v6890_v26, %v6891_v2  ;;  %v6893_v8 = vld [vmem:[%s7082_s12 + $0xe8] sm:$0xf]  ;;  %v3945_v14 = vshll.u32 %v8373_v33, 16  ;;  %v6899_v26 = vld [vmem:[%s7082_s12 + $0x158] sm:$0xf] }
 0x13a   : > { %6398 = vmatprep.subr.bf16.mxu1 %v6888_v39  ;;  %v5537_v61 = vcombine.low %v6892_v50, %v6893_v8  ;;  %v6896_v33 = vld [vmem:[%s7082_s12 + $0x128] sm:$0xf] }
 0x13b   : > { %v9376_v50 = vld [vmem:[#allocation21_spill] sm:$0xff] }
 0x13c   : > { %6152 = vmatmul.mubr.msk.bf16.gmra.mrb[4].mxu1 %vm981_vm3, %v5534_v29  ;;  %v5752_v29 = vcombine.low %v9371_v27, %v9370_v51  ;;  %v2624_v28 = vshrl.u32 %v9376_v50, 16  ;;  %v2627_v46 = vshll.u32 %v9376_v50, 16  ;;  %v9377_v51 = vld [vmem:[#allocation46_spill] sm:$0xff]  ;;  %v9378_v27 = vld [vmem:[#allocation44_spill] sm:$0xff] }
 0x13d   : > { %6155 = vmatprep.mubr.msk.bf16.mxu1 %vm981_vm3, %v5535_v16  ;;  %6402 = vmatpush3.bf16.msra.mxu1 %v6888_v39  ;;  %v3947_v16 = vrot.slane %v3945_v14, 5  ;;  %v6895_v39 = vld [vmem:[%s7082_s12 + $0x108] sm:$0xf] }
 0x13e   : > { %6399 = vmatprep.subr.bf16.mxu1 %v6889_v1  ;;  %v5538_v12 = vcombine.low %v6894_v34, %v6895_v39  ;;  %v2629_v47 = vrot.slane %v2627_v46, 5  ;;  %v2683_v34 = vshll.u32 %v9378_v27, 16  ;;  %v9381_v39 = vld [vmem:[#allocation27_spill] sm:$0xff]  ;;  %v9390_v46 = vld [vmem:[#allocation54_spill] sm:$0xff] }
 0x13f   : > { %v3948_v7 = vsel %vm7109_vm2, %v3943_v17, %v3947_v16  ;;  %v2680_v16 = vshrl.u32 %v9378_v27, 16 }
 0x140   : > { %6328 = vmatmul.mubr.msk.bf16.gmra.mrb[20].mxu0 %vm981_vm3, %v5750_v57  ;;  %v6897_v57 = vld [vmem:[%s7082_s12 + $0x138] sm:$0xf] }
 0x141   : > { %6331 = vmatprep.mubr.msk.bf16.mxu0 %vm981_vm3, %v5751_v41  ;;  %6403 = vmatpush3.bf16.msra.mxu1 %v6889_v1  ;;  %v5539_v30 = vcombine.low %v6896_v33, %v6897_v57  ;;  %v9374_v41 = vld [vmem:[#allocation42_spill] sm:$0xff]  ;;  %v6898_v1 = vld [vmem:[%s7082_s12 + $0x148] sm:$0xf]  ;;  %v2694_v57 = vshrl.u32 %v9377_v51, 16  ;;  %s300_s12 = scalar_lea.vmem %s9175_s2, %s7075_s7  ;;  %s6984_s7 = smov 96  }
 0x142   : > { %v5754_v3 = vcombine.low %v9374_v41, %v3948_v7  ;;  %v5540_v2 = vcombine.low %v6898_v1, %v6899_v26  ;;  %v9384_v7 = vld [vmem:[#allocation22_spill] sm:$0xff]  ;;  %v2682_v26 = vrot.slane %v2680_v16, 4  ;;  %6390 = vmatprep.subr.bf16.mxu1 %v6980_v45 }
 0x143   : > { %v2633_v41 = vshll.u32 %v9384_v7, 16 }
 0x144   : > { %6156 = vmatmul.mubr.msk.bf16.gmra.mrb[8].mxu1 %vm981_vm3, %v5536_v4  ;;  %v9375_v4 = vld [vmem:[#allocation23_spill] sm:$0xff] }
 0x145   : > { %6159 = vmatprep.mubr.msk.bf16.mxu1 %vm981_vm3, %v5537_v61  ;;  %v5541_v8 = vcombine.low %v9376_v50, %v9375_v4  ;;  %v5788_v61 = vcombine.low %v8070_v6, %v8157_v40  ;;  %v2638_v60 = vshrl.u32 %v9375_v4, 16  ;;  %v2641_v14 = vshll.u32 %v9375_v4, 16  ;;  %v9386_v4 = vld [vmem:[#allocation50_spill] sm:$0xff]  ;;  %v9387_v50 = vld [vmem:[#allocation48_spill] sm:$0xff] }
 0x146   : > { %v9380_v6 = vcombine.low %v9379_v20, %v8126_v49  ;;  %v2626_v40 = vrot.slane %v2624_v28, 4 }
 0x147   : > { %v2643_v17 = vrot.slane %v2641_v14, 5 }
 0x148   : > { %6332 = vmatmul.mubr.msk.bf16.gmra.mrb[24].mxu0 %vm981_vm3, %v5752_v29  ;;  %v5543_v29 = vcombine.low %v9378_v27, %v9377_v51  ;;  %v2630_v49 = vor.u32 %v2629_v47, %v2626_v40 }
 0x149   : > { %6335 = vmatprep.mubr.msk.bf16.mxu0 %vm981_vm3, %v5753_v56  ;;  %v2640_v56 = vrot.slane %v2638_v60, 4  ;;  %v9391_v60 = vld [vmem:[#allocation52_spill] sm:$0xff] }
 0x14a   : > { %v5545_v14 = vcombine.low %v9391_v60, %v9390_v46  ;;  %v2631_v20 = vrot.slane %v2630_v49, 4 }
 0x14c   : > { %6160 = vmatmul.mubr.msk.bf16.gmra.mrb[12].mxu1 %vm981_vm3, %v5538_v12  ;;  %v9382_v12 = vld [vmem:[#allocation43_spill] sm:$0xff] }
 0x14d   : > { %6163 = vmatprep.mubr.msk.bf16.mxu1 %vm981_vm3, %v5539_v30  ;;  %v9383_v33 = vcombine.low %v9381_v39, %v9382_v12  ;;  %v2697_v30 = vshll.u32 %v9377_v51, 16  ;;  %v2696_v51 = vrot.slane %v2694_v57, 4  ;;  %v2708_v39 = vshrl.u32 %v9387_v50, 16  ;;  %v9395_v57 = vld [vmem:[#allocation58_spill] sm:$0xff] }
 0x14f   : > { %v2699_v27 = vrot.slane %v2697_v30, 5  ;;  %v9396_v30 = vld [vmem:[#allocation56_spill] sm:$0xff] }
 0x150   : > { %6336 = vmatmul.mubr.msk.bf16.gmra.mrb[28].mxu0 %vm981_vm3, %v5754_v3  ;;  %v2644_v3 = vor.u32 %v2643_v17, %v2640_v56  ;;  %v9393_v17 = vld [vmem:[#allocation45_spill] sm:$0xff]  ;;  %v5546_v49 = vcombine.low %v9396_v30, %v9395_v57 }
 0x151   : > { %6347 = vmatprep.mubr.msk.bf16.mxu0 %vm981_vm3, %v5787_v15  ;;  %v9385_v15 = vld [vmem:[#allocation26_spill] sm:$0xff]  ;;  %v2689_v16 = vshll.u32 %v9393_v17, 16  ;;  %v2700_v12 = vor.u32 %v2699_v27, %v2696_v51  ;;  %v9400_v17 = vld [vmem:[#allocation51_spill] sm:$0xff] }
 0x152   : > { %v2647_v1 = vshll.u32 %v9385_v15, 16  ;;  %v2645_v40 = vrot.slane %v2644_v3, 4  ;;  %v2736_v3 = vshrl.u32 %v9391_v60, 16  ;;  %v2739_v15 = vshll.u32 %v9391_v60, 16 }
 0x153   : > { %v9398_v60 = vcombine.low %v8194_v0, %v8198_v11  ;;  %v2764_v11 = vshrl.u32 %v9396_v30, 16 }
 0x154   : > { %6164 = vmatmul.mubr.msk.bf16.gmra.mrb[16].mxu1 %vm981_vm3, %v5540_v2  ;;  %v2685_v2 = vrot.slane %v2683_v34, 5  ;;  %v2649_v47 = vrot.slane %v2647_v1, 5  ;;  %v2750_v1 = vshrl.u32 %v9390_v46, 16 }
 0x155   : > { %6167 = vmatprep.mubr.msk.bf16.mxu1 %vm981_vm3, %v5541_v8  ;;  %v5544_v8 = vcombine.low %v9387_v50, %v9386_v4 }
 0x156   : > { %v2686_v56 = vor.u32 %v2685_v2, %v2682_v26  ;;  %v2753_v26 = vshll.u32 %v9390_v46, 16  ;;  %v2738_v46 = vrot.slane %v2736_v3, 4 }
 0x158   : > { %6348 = vmatmul.mubr.msk.bf16.vlgmr.msra.gmra.mrb[0].mxu0 %vm981_vm3, %v5788_v61  ;;  %v9388_v61 = vld [vmem:[#allocation25_spill] sm:$0xff]  ;;  %v2687_v2 = vrot.slane %v2686_v56, 4 }
 0x159   : > { %6351 = vmatprep.mubr.msk.bf16.mxu0 %vm981_vm3, %v9380_v6  ;;  %v9389_v28 = vcombine.low %v8173_v24, %v9388_v61  ;;  %v2635_v6 = vrot.slane %v2633_v41, 5  ;;  %v9394_v24 = vld [vmem:[#allocation47_spill] sm:$0xff]  ;;  %v2650_v41 = vsel %vm7109_vm2, %v2645_v40, %v2649_v47  ;;  %v9397_v61 = vcombine.low %v8161_v5, %v8165_v42  ;;  %v9399_v47 = vld [vmem:[#allocation49_spill] sm:$0xff] }
 0x15a   : > { %v2703_v34 = vshll.u32 %v9394_v24, 16  ;;  %v2755_v40 = vrot.slane %v2753_v26, 5  ;;  %v2717_v56 = vshll.u32 %v9399_v47, 16  ;;  %v2731_v5 = vshll.u32 %v9400_v17, 16 }
 0x15b   : > { %v2636_v7 = vsel %vm7109_vm2, %v2631_v20, %v2635_v6  ;;  %v2741_v20 = vrot.slane %v2739_v15, 5  ;;  %v2752_v6 = vrot.slane %v2750_v1, 4 }
 0x15c   : > { %6168 = vmatmul.mubr.msk.bf16.gmra.mrb[20].mxu1 %vm981_vm3, %v9383_v33  ;;  %v2711_v33 = vshll.u32 %v9387_v50, 16  ;;  %v2705_v50 = vrot.slane %v2703_v34, 5  ;;  %v2767_v34 = vshll.u32 %v9396_v30, 16  ;;  %v2719_v3 = vrot.slane %v2717_v56, 5 }
 0x15d   : > { %6171 = vmatprep.mubr.msk.bf16.mxu1 %vm981_vm3, %v5543_v29  ;;  %v9392_v29 = vcombine.low %v8131_v58, %v8137_v48  ;;  %v2722_v58 = vshrl.u32 %v9386_v4, 16  ;;  %v2725_v48 = vshll.u32 %v9386_v4, 16  ;;  %v2691_v4 = vrot.slane %v2689_v16, 5 }
 0x15e   : > { %v2733_v30 = vrot.slane %v2731_v5, 5 }
 0x15f   : > { %v2724_v51 = vrot.slane %v2722_v58, 4  ;;  %v2727_v27 = vrot.slane %v2725_v48, 5  ;;  %v2692_v42 = vsel %vm7109_vm2, %v2687_v2, %v2691_v4  ;;  %v9401_v58 = vld [vmem:[#allocation53_spill] sm:$0xff]  ;;  %v2769_v2 = vrot.slane %v2767_v34, 5 }
 0x160   : > { %6352 = vmatmul.mubr.msk.bf16.gmra.mrb[4].mxu0 %vm981_vm3, %v9389_v28  ;;  %v2701_v28 = vrot.slane %v2700_v12, 4  ;;  %v2781_v12 = vshll.u32 %v9395_v57, 16  ;;  %v2745_v48 = vshll.u32 %v9401_v58, 16 }
 0x161   : > { %6355 = vmatprep.mubr.msk.bf16.mxu0 %vm981_vm3, %v9392_v29  ;;  %v5585_v29 = vcombine.low %v2636_v7, %v2650_v41  ;;  %v2728_v0 = vor.u32 %v2727_v27, %v2724_v51  ;;  %v9402_v7 = vld [vmem:[#allocation55_spill] sm:$0xff] }
 0x162   : > { %v2706_v16 = vsel %vm7109_vm2, %v2701_v28, %v2705_v50  ;;  %v2759_v41 = vshll.u32 %v9402_v7, 16  ;;  %v2783_v50 = vrot.slane %v2781_v12, 5  ;;  %v9404_v51 = vld [vmem:[#allocation59_spill] sm:$0xff] }
 0x163   : > { %v5587_v15 = vcombine.low %v2692_v42, %v2706_v16  ;;  %v2729_v26 = vrot.slane %v2728_v0, 4  ;;  %v2787_v27 = vshll.u32 %v9404_v51, 16 }
 0x164   : > { %6172 = vmatmul.mubr.msk.bf16.gmra.mrb[24].mxu1 %vm981_vm3, %v5544_v8  ;;  %v2710_v8 = vrot.slane %v2708_v39, 4  ;;  %v2778_v39 = vshrl.u32 %v9395_v57, 16  ;;  %v2766_v57 = vrot.slane %v2764_v11, 4 }
 0x165   : > { %6175 = vmatprep.mubr.msk.bf16.mxu1 %vm981_vm3, %v5545_v14  ;;  %v2713_v14 = vrot.slane %v2711_v33, 5  ;;  %v2742_v33 = vor.u32 %v2741_v20, %v2738_v46  ;;  %v2734_v31 = vsel %vm7109_vm2, %v2729_v26, %v2733_v30  ;;  %v2789_v47 = vrot.slane %v2787_v27, 5 }
 0x166   : > { %v2780_v4 = vrot.slane %v2778_v39, 4  ;;  %v2770_v53 = vor.u32 %v2769_v2, %v2766_v57 }
 0x167   : > { %v2714_v24 = vor.u32 %v2713_v14, %v2710_v8  ;;  %v2743_v8 = vrot.slane %v2742_v33, 4  ;;  %v2761_v14 = vrot.slane %v2759_v41, 5 }
 0x168   : > { %6356 = vmatmul.mubr.msk.bf16.gmra.mrb[8].mxu0 %vm981_vm3, %v9397_v61  ;;  %v2747_v61 = vrot.slane %v2745_v48, 5 }
 0x169   : > { %6359 = vmatprep.mubr.msk.bf16.mxu0 %vm981_vm3, %v9398_v60  ;;  %v2715_v1 = vrot.slane %v2714_v24, 4 }
 0x16b   : > { %v2720_v10 = vsel %vm7109_vm2, %v2715_v1, %v2719_v3 }
 0x16c   : > { %6176 = vmatmul.mubr.msk.bf16.gmra.mrb[28].mxu1 %vm981_vm3, %v5546_v49  ;;  %v2756_v49 = vor.u32 %v2755_v40, %v2752_v6  ;;  %v5588_v60 = vcombine.low %v2720_v10, %v2734_v31  ;;  %v2771_v6 = vrot.slane %v2770_v53, 4 }
 0x16d   : > { %6207 = vmatprep.mubr.msk.bf16.mxu1 %vm981_vm3, %v5585_v29  ;;  %v2748_v29 = vsel %vm7109_vm2, %v2743_v8, %v2747_v61 }
 0x16e   : > { %v2757_v28 = vrot.slane %v2756_v49, 4 }
 0x170   : > { %6360 = vmatmul.mubr.msk.bf16.gmra.mrb[12].mxu0 %vm981_vm3, %v5794_v13  ;;  %v2773_v13 = vshll.u32 %v9403_v59, 16 }
 0x171   : > { %6363 = vmatprep.mubr.msk.bf16.mxu0 %vm981_vm3, %v5795_v43  ;;  %v2784_v43 = vor.u32 %v2783_v50, %v2780_v4 }
 0x172   : > { %v2775_v46 = vrot.slane %v2773_v13, 5 }
 0x173   : > { %v2785_v40 = vrot.slane %v2784_v43, 4 }
 0x174   : > { %6208 = vmatmul.mubr.msk.bf16.vlgmr.msra.gmra.mrb[20].mxu1 %vm981_vm3, %v8248_v21  ;;  %v2762_v21 = vsel %vm7109_vm2, %v2757_v28, %v2761_v14  ;;  %v2776_v56 = vsel %vm7109_vm2, %v2771_v6, %v2775_v46 }
 0x175   : > { %6211 = vmatprep.mubr.msk.bf16.mxu1 %vm981_vm3, %v5587_v15  ;;  %v5589_v20 = vcombine.low %v2748_v29, %v2762_v21  ;;  %v2790_v23 = vsel %vm7109_vm2, %v2785_v40, %v2789_v47 }
 0x176   : > { %v5590_v37 = vcombine.low %v2776_v56, %v2790_v23 }
 0x178   : > { %6364 = vmatmul.mubr.msk.bf16.gmra.mrb[16].mxu0 %vm981_vm3, %v5796_v35  ;;  %v9405_v35 = vcombine.low %v8343_v62, %v8347_v9  ;;  %v4783_v62 = vld [vmem:[%s9177_s4 + $0x8] sm:$0xff]  ;;  %v4784_v9 = vld [vmem:[%s9177_s4 + $0x10] sm:$0xff] }
 0x179   : > { %6367 = vmatprep.mubr.msk.bf16.mxu0 %vm981_vm3, %v5797_v63  ;;  %v4782_v63 = vld [vmem:[%s9177_s4] sm:$0xff]  ;;  %v6394_v19 = vpack.c.bf16 %v4785_v32, %v4784_v9 }
 0x17a   : > { %v6391_v18 = vpack.c.bf16 %v4783_v62, %v4782_v63 }
 0x17c   : > { %6212 = vmatmul.mubr.msk.bf16.gmra.mrb[24].mxu1 %vm981_vm3, %v5588_v60 }
 0x17d   : > { %6215 = vmatprep.mubr.msk.bf16.mxu1 %vm981_vm3, %v5589_v20  ;;  %6392 = vmatpush3.bf16.msra.mxu1 %v6391_v18 }
 0x17e   : > { %6393 = vmatprep.subr.bf16.mxu1 %v6980_v45 }
 0x180   : > { %6368 = vmatmul.mubr.msk.bf16.gmra.mrb[20].mxu0 %vm981_vm3, %v5798_v36 }
 0x181   : > { %6371 = vmatprep.mubr.msk.bf16.mxu0 %vm981_vm3, %v9405_v35  ;;  %6395 = vmatpush3.bf16.msra.mxu1 %v6394_v19 }
 0x184   : > { %6216 = vmatmul.mubr.msk.bf16.gmra.mrb[28].mxu1 %vm981_vm3, %v5590_v37 }
 0x185   : > { %6387 = vmatprep.mubr.msk.f32.mxu1 %vm6981_vm7, %v6982_v52 }
 0x188   : > { %6372 = vmatmul.mubr.msk.bf16.gmra.mrb[24].mxu0 %vm981_vm3, %v9406_v55 }
 0x189   : > { %6375 = vmatprep.mubr.msk.bf16.mxu0 %vm981_vm3, %v9407_v38 }
 0x190   : > { %6376 = vmatmul.mubr.msk.bf16.gmra.mrb[28].mxu0 %vm981_vm3, %v9408_v25 }
 0x207   : > { %v6149_v44 = vpop.f32.mrb[0].mxu1 }
 0x208   : > { %v2184_v54 = vpop.f32.mrb[1].mxu1 }
 0x209   : > { %v6150_v36 = vpop.f32.mrb[2].mxu1 }
 0x20a   : > { %v2187_v22 = vpop.f32.mrb[3].mxu1 }
 0x20f   : > { %v6153_v17 = vpop.f32.mrb[4].mxu1 }
 0x210   : > { %v2200_v5 = vpop.f32.mrb[5].mxu1 }
 0x211   : > { %v6154_v42 = vpop.f32.mrb[6].mxu1 }
 0x212   : > { %v2203_v16 = vpop.f32.mrb[7].mxu1 }
 0x217   : > { %v6157_v24 = vpop.f32.mrb[8].mxu1 }
 0x218   : > { %v2216_v0 = vpop.f32.mrb[9].mxu1 }
 0x219   : > { %v6158_v11 = vpop.f32.mrb[10].mxu1 }
 0x21a   : > { %v2219_v34 = vpop.f32.mrb[11].mxu1 }
 0x21f   : > { %v6161_v39 = vpop.f32.mrb[12].mxu1 }
 0x220   : > { %v2232_v12 = vpop.f32.mrb[13].mxu1 }
 0x221   : > { %v8675_v33 = vpop.f32.mrb[14].mxu1 }
 0x222   : > { %v8677_v58 = vpop.f32.mrb[15].mxu1 }
 0x227   : > { %v8679_v48 = vpop.f32.mrb[16].mxu1 }
 0x228   : > { %v8681_v49 = vpop.f32.mrb[17].mxu1 }
 0x229   : > { %v8683_v7 = vpop.f32.mrb[18].mxu1 }
 0x22a   : > { %v8685_v41 = vpop.f32.mrb[19].mxu1 }
 0x22b   : > { %v6349_v3 = vpop.f32.mrb[0].mxu0 }
 0x22c   : > { %v8687_v15 = vadd.f32 %v6349_v3, %v6149_v44  ;;  %v4398_v1 = vpop.f32.mrb[1].mxu0 }
 0x22d   : > { %v8689_v26 = vadd.f32 %v4398_v1, %v2184_v54  ;;  %v6350_v30 = vpop.f32.mrb[2].mxu0 }
 0x22e   : > { %v8691_v57 = vadd.f32 %v6350_v30, %v6150_v36  ;;  %v4401_v2 = vpop.f32.mrb[3].mxu0  ;;  %v4561_v56 = vsel %vm4557_vm8, %v8687_v15, 0.0  ;;  %v4644_v63 = vmul.f32 %v8687_v15, %v8687_v15 }
 0x22f   : > { %v8693_v4 = vadd.f32 %v4401_v2, %v2187_v22  ;;  %v4558_v43 = vsel %vm4557_vm8, %v8689_v26, 0.0  ;;  %v4642_v40 = vmul.f32 %v8689_v26, %v8689_v26 }
 0x230   : > { %v4563_v32 = vsel %vm4557_vm8, %v8691_v57, 0.0 }
 0x231   : > { %v4559_v31 = vsel %vm4557_vm8, %v8693_v4, 0.0  ;;  %v4643_v51 = vmul.f32 %v8693_v4, %v8693_v4  ;;  %v4674_v62 = vsel %vm4557_vm8, %v4642_v40, 0.0 }
 0x232   : > { %v4560_v21 = vadd.f32 %v4559_v31, %v4558_v43 }
 0x233   : > { %v6353_v50 = vpop.f32.mrb[4].mxu0  ;;  %v4675_v23 = vsel %vm4557_vm8, %v4643_v51, 0.0 }
 0x234   : > { %v8695_v8 = vadd.f32 %v6353_v50, %v6153_v17  ;;  %v4414_v61 = vpop.f32.mrb[5].mxu0  ;;  %v4562_v37 = vadd.f32 %v4561_v56, %v4560_v21  ;;  %v4676_v52 = vadd.f32 %v4675_v23, %v4674_v62 }
 0x235   : > { %v8697_v28 = vadd.f32 %v4414_v61, %v2200_v5  ;;  %v6354_v14 = vpop.f32.mrb[6].mxu0 }
 0x236   : > { %v4417_v10 = vpop.f32.mrb[7].mxu0  ;;  %v8699_v59 = vadd.f32 %v6354_v14, %v6154_v42  ;;  %v4564_v54 = vadd.f32 %v4563_v32, %v4562_v37 }
 0x237   : > { %v8701_v13 = vadd.f32 %v4417_v10, %v2203_v16  ;;  %v4565_v42 = vsel %vm4557_vm8, %v8697_v28, 0.0  ;;  %v4646_v31 = vmul.f32 %v8697_v28, %v8697_v28 }
 0x238   : > { %v4566_v2 = vadd.f32 %v4565_v42, %v4564_v54 }
 0x239   : > { %v4681_v62 = vsel %vm4557_vm8, %v4646_v31, 0.0 }
 0x23b   : > { %v6357_v53 = vpop.f32.mrb[8].mxu0 }
 0x23c   : > { %v8709_v27 = vadd.f32 %v6357_v53, %v6157_v24  ;;  %v4430_v29 = vpop.f32.mrb[9].mxu0  ;;  %v4567_v53 = vsel %vm4557_vm8, %v8701_v13, 0.0 }
 0x23d   : > { %v8711_v60 = vadd.f32 %v4430_v29, %v2216_v0  ;;  %v6358_v46 = vpop.f32.mrb[10].mxu0 }
 0x23e   : > { %v8713_v20 = vadd.f32 %v6358_v46, %v6158_v11  ;;  %v4433_v6 = vpop.f32.mrb[11].mxu0  ;;  %v4652_v36 = vmul.f32 %v8709_v27, %v8709_v27  ;;  %v4582_v16 = vsel %vm4557_vm8, %v8709_v27, 0.0  ;;  %v4677_v11 = vsel %vm4557_vm8, %v4644_v63, 0.0 }
 0x23f   : > { %v8717_v47 = vadd.f32 %v4433_v6, %v2219_v34  ;;  %v4650_v35 = vmul.f32 %v8711_v60, %v8711_v60  ;;  %v4579_v25 = vsel %vm4557_vm8, %v8711_v60, 0.0  ;;  %v4645_v34 = vmul.f32 %v8691_v57, %v8691_v57 }
 0x240   : > { %v4678_v1 = vadd.f32 %v4677_v11, %v4676_v52  ;;  %v4698_v50 = vsel %vm4557_vm8, %v4652_v36, 0.0  ;;  %v4653_v61 = vmul.f32 %v8713_v20, %v8713_v20  ;;  %v4569_v63 = vsel %vm4557_vm8, %v8695_v8, 0.0 }
 0x241   : > { %v4580_v55 = vsel %vm4557_vm8, %v8717_v47, 0.0  ;;  %v4651_v38 = vmul.f32 %v8717_v47, %v8717_v47  ;;  %v4695_v22 = vsel %vm4557_vm8, %v4650_v35, 0.0  ;;  %v4679_v29 = vsel %vm4557_vm8, %v4645_v34, 0.0 }
 0x242   : > { %v4581_v9 = vadd.f32 %v4580_v55, %v4579_v25  ;;  %v4680_v37 = vadd.f32 %v4679_v29, %v4678_v1  ;;  %v4568_v35 = vadd.f32 %v4567_v53, %v4566_v2  ;;  %v4700_v55 = vsel %vm4557_vm8, %v4653_v61, 0.0 }
 0x243   : > { %v4696_v45 = vsel %vm4557_vm8, %v4651_v38, 0.0  ;;  %v6361_v18 = vpop.f32.mrb[12].mxu0 }
 0x244   : > { %v8736_v19 = vadd.f32 %v6361_v18, %v6161_v39  ;;  %v4446_v44 = vpop.f32.mrb[13].mxu0  ;;  %v4697_v24 = vadd.f32 %v4696_v45, %v4695_v22  ;;  %v4583_v39 = vadd.f32 %v4582_v16, %v4581_v9  ;;  %v4647_v9 = vmul.f32 %v8701_v13, %v8701_v13 }
 0x245   : > { %v8741_v17 = vadd.f32 %v4446_v44, %v2232_v12  ;;  %v6362_v5 = vpop.f32.mrb[14].mxu0  ;;  %v4682_v16 = vadd.f32 %v4681_v62, %v4680_v37 }
 0x246   : > { %v4449_v0 = vpop.f32.mrb[15].mxu0  ;;  %v8755_v30 = vadd.f32 %v6362_v5, %v8675_v33  ;;  %v4584_v33 = vsel %vm4557_vm8, %v8713_v20, 0.0  ;;  %v4699_v43 = vadd.f32 %v4698_v50, %v4697_v24  ;;  %v4570_v24 = vadd.f32 %v4569_v63, %v4568_v35 }
 0x247   : > { %v8750_v3 = vpop.f32.mrb[20].mxu1  ;;  %v8763_v10 = vadd.f32 %v4449_v0, %v8677_v58  ;;  %v4585_v21 = vadd.f32 %v4584_v33, %v4583_v39  ;;  %v4648_v58 = vmul.f32 %v8695_v8, %v8695_v8  ;;  %v4586_v6 = vsel %vm4557_vm8, %v8741_v17, 0.0 }
 0x248   : > { %v8752_v12 = vpop.f32.mrb[21].mxu1  ;;  %v4654_v40 = vmul.f32 %v8741_v17, %v8741_v17  ;;  %v4701_v45 = vadd.f32 %v4700_v55, %v4699_v43  ;;  %v4683_v11 = vsel %vm4557_vm8, %v4647_v9, 0.0 }
 0x249   : > { %v8760_v14 = vpop.f32.mrb[22].mxu1  ;;  %v4587_v18 = vadd.f32 %v4586_v6, %v4585_v21  ;;  %v4655_v32 = vmul.f32 %v8763_v10, %v8763_v10  ;;  %v4685_v54 = vsel %vm4557_vm8, %v4648_v58, 0.0  ;;  %v4588_v22 = vsel %vm4557_vm8, %v8763_v10, 0.0 }
 0x24a   : > { %v8771_v51 = vpop.f32.mrb[23].mxu1  ;;  %v4702_v36 = vsel %vm4557_vm8, %v4654_v40, 0.0  ;;  %v4684_v55 = vadd.f32 %v4683_v11, %v4682_v16  ;;  %v4649_v16 = vmul.f32 %v8699_v59, %v8699_v59 }
 0x24b   : > { %v6365_v46 = vpop.f32.mrb[16].mxu0  ;;  %v4703_v50 = vadd.f32 %v4702_v36, %v4701_v45  ;;  %v4589_v61 = vadd.f32 %v4588_v22, %v4587_v18  ;;  %v4704_v31 = vsel %vm4557_vm8, %v4655_v32, 0.0  ;;  %v4571_v45 = vsel %vm4557_vm8, %v8699_v59, 0.0 }
 0x24c   : > { %v8781_v56 = vadd.f32 %v6365_v46, %v8679_v48  ;;  %v4462_v23 = vpop.f32.mrb[17].mxu0  ;;  %v4590_v32 = vsel %vm4557_vm8, %v8736_v19, 0.0 }
 0x24d   : > { %v8785_v38 = vadd.f32 %v4462_v23, %v8681_v49  ;;  %v6366_v25 = vpop.f32.mrb[18].mxu0  ;;  %v4705_v36 = vadd.f32 %v4704_v31, %v4703_v50 }
 0x24e   : > { %v4465_v48 = vpop.f32.mrb[19].mxu0  ;;  %v8797_v49 = vadd.f32 %v6366_v25, %v8683_v7  ;;  %v4660_v34 = vmul.f32 %v8781_v56, %v8781_v56  ;;  %v4603_v53 = vsel %vm4557_vm8, %v8781_v56, 0.0 }
 0x24f   : > { %v8794_v52 = vpop.f32.mrb[24].mxu1  ;;  %v8800_v44 = vadd.f32 %v4465_v48, %v8685_v41  ;;  %v4658_v42 = vmul.f32 %v8785_v38, %v8785_v38  ;;  %v4600_v7 = vsel %vm4557_vm8, %v8785_v38, 0.0  ;;  %v4656_v48 = vmul.f32 %v8736_v19, %v8736_v19 }
 0x250   : > { %v8806_v5 = vpop.f32.mrb[25].mxu1  ;;  %v4661_v29 = vmul.f32 %v8797_v49, %v8797_v49  ;;  %v4605_v6 = vsel %vm4557_vm8, %v8797_v49, 0.0  ;;  %v4719_v25 = vsel %vm4557_vm8, %v4660_v34, 0.0 }
 0x251   : > { %v8812_v0 = vpop.f32.mrb[26].mxu1  ;;  %v4601_v41 = vsel %vm4557_vm8, %v8800_v44, 0.0  ;;  %v4659_v2 = vmul.f32 %v8800_v44, %v8800_v44  ;;  %v4716_v43 = vsel %vm4557_vm8, %v4658_v42, 0.0 }
 0x252   : > { %v8819_v39 = vpop.f32.mrb[27].mxu1  ;;  %v4602_v1 = vadd.f32 %v4601_v41, %v4600_v7  ;;  %v4721_v22 = vsel %vm4557_vm8, %v4661_v29, 0.0  ;;  %v4591_v7 = vadd.f32 %v4590_v32, %v4589_v61  ;;  %v4657_v61 = vmul.f32 %v8755_v30, %v8755_v30 }
 0x253   : > { %v6369_v33 = vpop.f32.mrb[20].mxu0  ;;  %v4717_v46 = vsel %vm4557_vm8, %v4659_v2, 0.0  ;;  %v4686_v2 = vadd.f32 %v4685_v54, %v4684_v55 }
 0x254   : > { %v4604_v21 = vadd.f32 %v4603_v53, %v4602_v1  ;;  %v4478_v58 = vpop.f32.mrb[21].mxu0  ;;  %v4718_v40 = vadd.f32 %v4717_v46, %v4716_v43  ;;  %v8833_v23 = vadd.f32 %v6369_v33, %v8750_v3  ;;  %v8857_v1 = vadd.f32 %v4571_v45, %v4570_v24 }
 0x255   : > { %v8836_v37 = vadd.f32 %v4478_v58, %v8752_v12  ;;  %v6370_v35 = vpop.f32.mrb[22].mxu0  ;;  %v4706_v33 = vsel %vm4557_vm8, %v4656_v48, 0.0  ;;  %v4592_v43 = vsel %vm4557_vm8, %v8755_v30, 0.0 }
 0x256   : > { %v4606_v63 = vadd.f32 %v4605_v6, %v4604_v21  ;;  %v8840_v62 = vadd.f32 %v6370_v35, %v8760_v14  ;;  %v4481_v9 = vpop.f32.mrb[23].mxu0  ;;  %v4720_v3 = vadd.f32 %v4719_v25, %v4718_v40  ;;  %v4707_v24 = vadd.f32 %v4706_v33, %v4705_v36 }
 0x257   : > { %v6217_v18 = vpop.f32.mrb[28].mxu1  ;;  %v4607_v12 = vsel %vm4557_vm8, %v8836_v37, 0.0  ;;  %v4662_v42 = vmul.f32 %v8836_v37, %v8836_v37  ;;  %v8863_v31 = vadd.f32 %v4481_v9, %v8771_v51  ;;  %v4664_v54 = vmul.f32 %v8833_v23, %v8833_v23 }
 0x258   : > { %v3066_v14 = vpop.f32.mrb[29].mxu1  ;;  %v4608_v41 = vadd.f32 %v4607_v12, %v4606_v63  ;;  %v4722_v11 = vadd.f32 %v4721_v22, %v4720_v3  ;;  %v4593_v6 = vadd.f32 %v4592_v43, %v4591_v7  ;;  %v4611_v63 = vsel %vm4557_vm8, %v8833_v23, 0.0 }
 0x259   : > { %v8855_v34 = vpop.f32.mrb[30].mxu1  ;;  %v4723_v53 = vsel %vm4557_vm8, %v4662_v42, 0.0  ;;  %v4609_v46 = vsel %vm4557_vm8, %v8863_v31, 0.0  ;;  %v4663_v51 = vmul.f32 %v8863_v31, %v8863_v31  ;;  %v4665_v9 = vmul.f32 %v8840_v62, %v8840_v62 }
 0x25a   : > { %v8860_v50 = vpop.f32.mrb[31].mxu1  ;;  %v4724_v29 = vadd.f32 %v4723_v53, %v4722_v11  ;;  %v4610_v40 = vadd.f32 %v4609_v46, %v4608_v41  ;;  %v4687_v12 = vsel %vm4557_vm8, %v4649_v16, 0.0  ;;  %v4573_v36 = vrot.slane %v8857_v1, 4 }
 0x25b   : > { %v6373_v21 = vpop.f32.mrb[24].mxu0  ;;  %v4725_v45 = vsel %vm4557_vm8, %v4663_v51, 0.0  ;;  %v4688_v22 = vadd.f32 %v4687_v12, %v4686_v2  ;;  %v4727_v7 = vsel %vm4557_vm8, %v4664_v54, 0.0  ;;  %v4613_v41 = vsel %vm4557_vm8, %v8840_v62, 0.0 }
 0x25c   : > { %v4494_v58 = vpop.f32.mrb[25].mxu0  ;;  %v8877_v35 = vadd.f32 %v6373_v21, %v8794_v52  ;;  %v4708_v52 = vsel %vm4557_vm8, %v4657_v61, 0.0  ;;  %v4612_v32 = vadd.f32 %v4611_v63, %v4610_v40  ;;  %v4594_v16 = vrot.slane %v4593_v6, 4 }
 0x25d   : > { %v8880_v55 = vadd.f32 %v4494_v58, %v8806_v5  ;;  %v6374_v25 = vpop.f32.mrb[26].mxu0  ;;  %v4726_v5 = vadd.f32 %v4725_v45, %v4724_v29  ;;  %v4709_v42 = vadd.f32 %v4708_v52, %v4707_v24  ;;  %v4729_v33 = vsel %vm4557_vm8, %v4665_v9, 0.0 }
 0x25e   : > { %v8888_v48 = vadd.f32 %v6374_v25, %v8812_v0  ;;  %v4497_v3 = vpop.f32.mrb[27].mxu0  ;;  %v4614_v43 = vadd.f32 %v4613_v41, %v4612_v32  ;;  %v4668_v2 = vmul.f32 %v8877_v35, %v8877_v35  ;;  %v4624_v46 = vsel %vm4557_vm8, %v8877_v35, 0.0 }
 0x25f   : > { %v4728_v11 = vadd.f32 %v4727_v7, %v4726_v5  ;;  %v4666_v0 = vmul.f32 %v8880_v55, %v8880_v55  ;;  %v8899_v53 = vadd.f32 %v4497_v3, %v8819_v39  ;;  %v4621_v29 = vsel %vm4557_vm8, %v8880_v55, 0.0 }
 0x260   : > { %9409 = vst [vmem:[#allocation24_spill] sm:$0xff] %v8888_v48  ;;  %v4710_v39 = vrot.slane %v4709_v42, 4  ;;  %v4669_v63 = vmul.f32 %v8888_v48, %v8888_v48  ;;  %v4615_v12 = vrot.slane %v4614_v43, 4  ;;  %v4626_v52 = vsel %vm4557_vm8, %v8888_v48, 0.0 }
 0x261   : > { %v4730_v61 = vadd.f32 %v4729_v33, %v4728_v11  ;;  %v4622_v21 = vsel %vm4557_vm8, %v8899_v53, 0.0  ;;  %v4667_v24 = vmul.f32 %v8899_v53, %v8899_v53  ;;  %v4737_v25 = vsel %vm4557_vm8, %v4666_v0, 0.0 }
 0x262   : > { %v4623_v51 = vadd.f32 %v4622_v21, %v4621_v29  ;;  %v4740_v41 = vsel %vm4557_vm8, %v4668_v2, 0.0  ;;  %v4689_v33 = vrot.slane %v4688_v22, 4  ;;  %v4711_v2 = vadd.f32 %v4710_v39, %v4709_v42 }
 0x263   : > { %v6377_v54 = vpop.f32.mrb[28].mxu0  ;;  %v4738_v9 = vsel %vm4557_vm8, %v4667_v24, 0.0  ;;  %v4595_v24 = vadd.f32 %v4594_v16, %v4593_v6  ;;  %v4574_v16 = vadd.f32 %v4573_v36, %v8857_v1 }
 0x264   : > { %v8912_v58 = vadd.f32 %v6377_v54, %v6217_v18  ;;  %v4510_v40 = vpop.f32.mrb[29].mxu0  ;;  %v4625_v32 = vadd.f32 %v4624_v46, %v4623_v51  ;;  %v4739_v5 = vadd.f32 %v4738_v9, %v4737_v25  ;;  %v4731_v18 = vrot.slane %v4730_v61, 4 }
 0x265   : > { %v8918_v45 = vadd.f32 %v4510_v40, %v3066_v14  ;;  %v6378_v3 = vpop.f32.mrb[30].mxu0  ;;  %v4742_v54 = vsel %vm4557_vm8, %v4669_v63, 0.0  ;;  %v4616_v40 = vadd.f32 %v4615_v12, %v4614_v43  ;;  %v4690_v63 = vadd.f32 %v4689_v33, %v4688_v22 }
 0x266   : > { %9410 = vst [vmem:[#allocation29_spill] sm:$0xff] %v8912_v58  ;;  %v4513_v7 = vpop.f32.mrb[31].mxu0  ;;  %v4741_v14 = vadd.f32 %v4740_v41, %v4739_v5  ;;  %v4627_v29 = vadd.f32 %v4626_v52, %v4625_v32  ;;  %v8928_v21 = vadd.f32 %v6378_v3, %v8855_v34  ;;  %v4732_v48 = vadd.f32 %v4731_v18, %v4730_v61 }
 0x267   : > { %v4628_v11 = vsel %vm4557_vm8, %v8918_v45, 0.0  ;;  %v4670_v0 = vmul.f32 %v8918_v45, %v8918_v45  ;;  %v8933_v51 = vadd.f32 %v4513_v7, %v8860_v50  ;;  %v4672_v5 = vmul.f32 %v8912_v58, %v8912_v58 }
 0x268   : > { %9411 = vst [vmem:[#allocation5_spill] sm:$0xff] %v8928_v21  ;;  %v4629_v25 = vadd.f32 %v4628_v11, %v4627_v29  ;;  %v4743_v9 = vadd.f32 %v4742_v54, %v4741_v14  ;;  %v4632_v42 = vsel %vm4557_vm8, %v8912_v58, 0.0  ;;  %v4673_v43 = vmul.f32 %v8928_v21, %v8928_v21 }
 0x269   : > { %v4744_v46 = vsel %vm4557_vm8, %v4670_v0, 0.0  ;;  %9412 = vst [vmem:[#allocation6_spill] sm:$0xff] %v8933_v51  ;;  %v4630_v34 = vsel %vm4557_vm8, %v8933_v51, 0.0  ;;  %v4671_v6 = vmul.f32 %v8933_v51, %v8933_v51  ;;  %v4596_v39 = vrot.slane %v4595_v24, 2 }
 0x26a   : > { %v4745_v3 = vadd.f32 %v4744_v46, %v4743_v9  ;;  %v4631_v50 = vadd.f32 %v4630_v34, %v4629_v25  ;;  %v4712_v12 = vrot.slane %v4711_v2, 2  ;;  %v4617_v7 = vrot.slane %v4616_v40, 2 }
 0x26b   : > { %v4746_v61 = vsel %vm4557_vm8, %v4671_v6, 0.0  ;;  %v4733_v18 = vrot.slane %v4732_v48, 2  ;;  %v4748_v41 = vsel %vm4557_vm8, %v4672_v5, 0.0  ;;  %v4634_v1 = vsel %vm4557_vm8, %v8928_v21, 0.0 }
 0x26c   : > { %v4633_v52 = vadd.f32 %v4632_v42, %v4631_v50  ;;  %v4747_v32 = vadd.f32 %v4746_v61, %v4745_v3  ;;  %v4575_v36 = vrot.slane %v4574_v16, 2  ;;  %v4691_v22 = vrot.slane %v4690_v63, 2 }
 0x26d   : > { %v4750_v33 = vsel %vm4557_vm8, %v4673_v43, 0.0  ;;  %v4597_v14 = vadd.f32 %v4596_v39, %v4595_v24  ;;  %v4713_v29 = vadd.f32 %v4712_v12, %v4711_v2  ;;  %v4618_v25 = vadd.f32 %v4617_v7, %v4616_v40 }
 0x26e   : > { %v4635_v11 = vadd.f32 %v4634_v1, %v4633_v52  ;;  %v4749_v0 = vadd.f32 %v4748_v41, %v4747_v32  ;;  %v4734_v9 = vadd.f32 %v4733_v18, %v4732_v48  ;;  %v4576_v34 = vadd.f32 %v4575_v36, %v4574_v16 }
 0x26f   : > { %v4692_v6 = vadd.f32 %v4691_v22, %v4690_v63  ;;  %v4598_v5 = vrot.slane %v4597_v14, 1  ;;  %v4714_v42 = vrot.slane %v4713_v29, 1  ;;  %v4619_v58 = vrot.slane %v4618_v25, 1 }
 0x270   : > { %v4636_v54 = vrot.slane %v4635_v11, 4  ;;  %v4751_v46 = vadd.f32 %v4750_v33, %v4749_v0  ;;  %v4735_v51 = vrot.slane %v4734_v9, 1  ;;  %v4577_v52 = vrot.slane %v4576_v34, 1 }
 0x271   : > { %v4693_v32 = vrot.slane %v4692_v6, 1  ;;  %v4599_v24 = vadd.f32 %v4598_v5, %v4597_v14  ;;  %v4715_v2 = vadd.f32 %v4714_v42, %v4713_v29  ;;  %v4620_v16 = vadd.f32 %v4619_v58, %v4618_v25  ;;  %v5824_v5 = vld [vmem:[%s300_s12] ss:$0 sm:$0xff]  ;;  %s6900_s12 = scalar_lea.vmem %s9128_s8, 64 }
 0x272   : > { %v4637_v3 = vadd.f32 %v4636_v54, %v4635_v11  ;;  %v4752_v50 = vrot.slane %v4751_v46, 4  ;;  %v4736_v63 = vadd.f32 %v4735_v51, %v4734_v9  ;;  %v4578_v39 = vadd.f32 %v4577_v52, %v4576_v34  ;;  %p6901_p12 = scmp.ne.s32.totalorder %s9128_s8, %s6900_s12 }
 0x273   : > { %v4694_v12 = vadd.f32 %v4693_v32, %v4692_v6  ;;  %v6983_v9 = vmov 1966171168   ;;  %v4890_v6 = vlaneseq }
 0x274   : > { %v4638_v61 = vrot.slane %v4637_v3, 2  ;;  %v4753_v21 = vadd.f32 %v4752_v50, %v4751_v46  ;;  %v4763_v36 = vsel %vm4762_vm9, %v4599_v24, %v4578_v39  ;;  %v4888_v34 = vunpack.c.l.s4 %v6983_v9  ;;  %p6902_p13 = pnand %p6901_p12, %p7058_p4 }
 0x275   : > { %v4774_v22 = vsel %vm4773_vm10, %v4715_v2, %v4694_v12  ;;  %v4765_v11 = vsel %vm4764_vm11, %v4620_v16, %v4763_v36  ;;  %v4891_v50 = vshrl.u32 %v4890_v6, 7  ;;  %v5825_v2 = vld [vmem:[%s303_s15] ss:$0 sm:$0xff]  ;;  %s6906_s15 = scalar_lea.vmem %s6905_s14, 128 }
 0x276   : > { %v4639_v41 = vadd.f32 %v4638_v61, %v4637_v3  ;;  %v4754_v43 = vrot.slane %v4753_v21, 2  ;;  %v4889_v3 = vunpack.c.0.s8 %v4888_v34  ;;  %p6903_p0 = pneg %p6902_p13  ;;  %p6908_p2 = scmp.lt.s32.totalorder %s6906_s15, %s6900_s12 }
 0x278   : > { %v4640_v40 = vrot.slane %v4639_v41, 1  ;;  %v4755_v48 = vadd.f32 %v4754_v43, %v4753_v21  ;;  %v4776_v21 = vsel %vm4775_vm12, %v4736_v63, %v4774_v22  ;;  %v4892_v52 = vsub.s32 %v4889_v3, %v4891_v50  ;;  %p6909_p3 = por %p6908_p2, %p6907_p1 }
 0x27a   : > { %v4641_v7 = vadd.f32 %v4640_v40, %v4639_v41  ;;  %v4756_v18 = vrot.slane %v4755_v48, 1  ;;  %v4913_v40 = vsub.s32 0, %v4891_v50  ;;  %p6910_p5 = pnand %p6909_p3, %p6903_p0 }
 0x27c   : > { %v4757_v1 = vadd.f32 %v4756_v18, %v4755_v48  ;;  %v4767_v58 = vsel %vm4766_vm13, %v4641_v7, %v4765_v11 }
 0x27e   : > { %v4778_v51 = vsel %vm4777_vm14, %v4757_v1, %v4776_v21 }
 0x27f   : > { %v4781_v0 = vsel %vm4780_vm15, %v4767_v58, %v4778_v51 }
 0x280   : > { %6388 = vmatmul.mubr.msk.f32.vlgmr.msra.gmra.mrb[32].mxu1 %vm4557_vm8, %v4781_v0 }
 0x353   : > { %v4855_v33 = vpop.f32.mrb[32].mxu1 }
 0x354   : > { %v4859_v14 = vmul.f32 %v4855_v33, %v4855_v33  ;;  %v6389_v29 = vpop.f32.mrb[33].mxu1 }
 0x356   : > { %v4861_v54 = vrot.slane %v4859_v14, 4 }
 0x358   : > { %v4863_v46 = vsub.f32 %v4855_v33, %v4861_v54 }
 0x35a   : > { %v4864_v25 = vadd.f32 1e-05, %v4863_v46 }
 0x35c   : > { %6823 = vrsqrt.f32 %v4864_v25 }
 0x366   : > { %v6824_v42 = vpop.eup %6823 }
 0x367   : > { %v4873_v61 = vmul.f32 %v6824_v42, %v5824_v5 }
 0x369   : > { %v4876_v32 = vrot.slane %v4873_v61, 4  ;;  %v4886_v41 = vcombine.high %v4873_v61, %v4873_v61 }
 0x36b   : > { %v4878_v43 = vmul.f32 %v4876_v32, %v4855_v33  ;;  %v4893_v24 = vrot.slane %v4886_v41, %v4892_v52 }
 0x36d   : > { %v4894_v48 = vcombine.high %v4893_v24, %v4893_v24  ;;  %v4901_v16 = vrot.slane %v4893_v24, %v4892_v52  ;;  %v4885_v63 = vsub.f32 %v5825_v2, %v4878_v43 }
 0x36f   : > { %v4908_v39 = vrot.slane %v4894_v48, %v4892_v52  ;;  %v4909_v12 = vcombine.high %v4901_v16, %v4901_v16  ;;  %v4914_v7 = vrot.slane %v4901_v16, %v4913_v40  ;;  %v4970_v36 = vrot.slane %v4885_v63, %v4892_v52 }
 0x371   : > { %v4910_v18 = vcombine.high %v4908_v39, %v4908_v39  ;;  %v4918_v1 = vrot.slane %v4908_v39, %v4913_v40  ;;  %v4922_v22 = vrot.slane %v4909_v12, %v4913_v40  ;;  %v4931_v11 = vmul.f32 %v8689_v26, %v4914_v7 }
 0x372   : > { %v4932_v21 = vmul.f32 %v8693_v4, %v4914_v7  ;;  %v4933_v58 = vmul.f32 %v8687_v15, %v4914_v7  ;;  %v4934_v0 = vmul.f32 %v8691_v57, %v4914_v7  ;;  %v4935_v33 = vmul.f32 %v8697_v28, %v4914_v7 }
 0x373   : > { %v4926_v51 = vrot.slane %v4910_v18, %v4913_v40  ;;  %v4936_v14 = vmul.f32 %v8701_v13, %v4914_v7  ;;  %v4937_v29 = vmul.f32 %v8695_v8, %v4914_v7  ;;  %v4938_v54 = vmul.f32 %v8699_v59, %v4914_v7 }
 0x374   : > { %v4939_v46 = vmul.f32 %v8711_v60, %v4918_v1  ;;  %v4940_v25 = vmul.f32 %v8717_v47, %v4918_v1  ;;  %v4941_v26 = vmul.f32 %v8709_v27, %v4918_v1  ;;  %v4942_v4 = vmul.f32 %v8713_v20, %v4918_v1 }
 0x375   : > { %v4943_v15 = vmul.f32 %v8741_v17, %v4918_v1  ;;  %v4944_v57 = vmul.f32 %v8763_v10, %v4918_v1  ;;  %v4945_v28 = vmul.f32 %v8736_v19, %v4918_v1  ;;  %v4946_v13 = vmul.f32 %v8755_v30, %v4918_v1 }
 0x376   : > { %v4971_v9 = vcombine.high %v4970_v36, %v4970_v36  ;;  %v4978_v8 = vrot.slane %v4970_v36, %v4892_v52  ;;  %v4947_v59 = vmul.f32 %v8785_v38, %v4922_v22  ;;  %v4948_v60 = vmul.f32 %v8800_v44, %v4922_v22 }
 0x377   : > { %v4949_v47 = vmul.f32 %v8781_v56, %v4922_v22  ;;  %v4950_v27 = vmul.f32 %v8797_v49, %v4922_v22  ;;  %v4951_v20 = vmul.f32 %v8836_v37, %v4922_v22  ;;  %v4952_v10 = vmul.f32 %v8863_v31, %v4922_v22  ;;  %v9413_v49 = vld [vmem:[#allocation24_spill] sm:$0xff]  ;;  %v9414_v31 = vld [vmem:[#allocation6_spill] sm:$0xff] }
 0x378   : > { %v4985_v34 = vrot.slane %v4971_v9, %v4892_v52  ;;  %v4986_v17 = vcombine.high %v4978_v8, %v4978_v8  ;;  %v4991_v6 = vrot.slane %v4978_v8, %v4913_v40  ;;  %v4953_v19 = vmul.f32 %v8833_v23, %v4922_v22  ;;  %v9415_v23 = vld [vmem:[#allocation29_spill] sm:$0xff] }
 0x379   : > { %v4955_v30 = vmul.f32 %v8880_v55, %v4926_v51  ;;  %v4956_v3 = vmul.f32 %v8899_v53, %v4926_v51  ;;  %v4957_v38 = vmul.f32 %v8877_v35, %v4926_v51  ;;  %v8991_v56 = vmul.f32 %v8840_v62, %v4922_v22  ;;  %v9416_v52 = vld [vmem:[#allocation5_spill] sm:$0xff] }
 0x37a   : > { %v4987_v44 = vcombine.high %v4985_v34, %v4985_v34  ;;  %v4995_v50 = vrot.slane %v4985_v34, %v4913_v40  ;;  %v8994_v37 = vmul.f32 %v9413_v49, %v4926_v51  ;;  %v8997_v5 = vmul.f32 %v8918_v45, %v4926_v51 }
 0x37b   : > { %v9000_v42 = vmul.f32 %v9414_v31, %v4926_v51  ;;  %v9003_v55 = vmul.f32 %v9415_v23, %v4926_v51  ;;  %v9005_v53 = vrot.slane %v4986_v17, %v4913_v40  ;;  %v5008_v35 = vadd.f32 %v4991_v6, %v4931_v11 }
 0x37c   : > { %v5009_v61 = vadd.f32 %v4991_v6, %v4932_v21  ;;  %v9008_v32 = vmul.f32 %v9416_v52, %v4926_v51  ;;  %v9010_v62 = vrot.slane %v4987_v44, %v4913_v40  ;;  %v5010_v41 = vadd.f32 %v4991_v6, %v4933_v58 }
 0x37d   : > { %v5011_v43 = vadd.f32 %v4991_v6, %v4934_v0  ;;  %v5012_v24 = vadd.f32 %v4991_v6, %v4935_v33  ;;  %v5013_v45 = vadd.f32 %v4991_v6, %v4936_v14  ;;  %v5014_v2 = vadd.f32 %v4991_v6, %v4937_v29 }
 0x37e   : > { %v9012_v48 = vadd.f32 %v4991_v6, %v4938_v54  ;;  %v5016_v16 = vadd.f32 %v4995_v50, %v4939_v46  ;;  %v5017_v63 = vadd.f32 %v4995_v50, %v4940_v25  ;;  %v5018_v39 = vadd.f32 %v4995_v50, %v4941_v26 }
 0x37f   : > { %v5019_v12 = vadd.f32 %v4995_v50, %v4942_v4  ;;  %v5020_v7 = vadd.f32 %v4995_v50, %v4943_v15  ;;  %v9014_v18 = vadd.f32 %v4995_v50, %v4944_v57  ;;  %v9016_v1 = vadd.f32 %v4995_v50, %v4945_v28 }
 0x380   : > { %v9018_v36 = vadd.f32 %v4995_v50, %v4946_v13  ;;  %v5024_v40 = vadd.f32 %v9005_v53, %v4947_v59  ;;  %v5025_v22 = vadd.f32 %v9005_v53, %v4948_v60  ;;  %v5026_v11 = vadd.f32 %v9005_v53, %v4949_v47 }
 0x381   : > { %v5027_v21 = vadd.f32 %v9005_v53, %v4950_v27  ;;  %v5028_v58 = vadd.f32 %v9005_v53, %v4951_v20  ;;  %v9026_v51 = vadd.f32 %v9005_v53, %v4952_v10  ;;  %v9029_v0 = vadd.f32 %v9005_v53, %v4953_v19 }
 0x382   : > { %v9032_v33 = vadd.f32 %v9010_v62, %v4955_v30  ;;  %v9035_v14 = vadd.f32 %v9010_v62, %v4956_v3  ;;  %v9038_v29 = vadd.f32 %v9010_v62, %v4957_v38  ;;  %v5040_v54 = vmax.f32 %v5008_v35, 0.0 }
 0x383   : > { %v5041_v46 = vmax.f32 %v5009_v61, 0.0  ;;  %v5042_v25 = vmax.f32 %v5010_v41, 0.0  ;;  %v5043_v26 = vmax.f32 %v5011_v43, 0.0  ;;  %v5044_v4 = vmax.f32 %v5012_v24, 0.0 }
 0x384   : > { %v5045_v15 = vmax.f32 %v5013_v45, 0.0  ;;  %v5046_v57 = vmax.f32 %v5014_v2, 0.0  ;;  %v5047_v28 = vmax.f32 %v9012_v48, 0.0  ;;  %v5048_v13 = vmax.f32 %v5016_v16, 0.0 }
 0x385   : > { %v5049_v9 = vmax.f32 %v5017_v63, 0.0  ;;  %v5050_v8 = vmax.f32 %v5018_v39, 0.0  ;;  %v5051_v59 = vmax.f32 %v5019_v12, 0.0  ;;  %v5052_v60 = vmax.f32 %v5020_v7, 0.0 }
 0x386   : > { %v5053_v47 = vmax.f32 %v9014_v18, 0.0  ;;  %v5054_v27 = vmax.f32 %v9016_v1, 0.0  ;;  %v5055_v20 = vmax.f32 %v9018_v36, 0.0  ;;  %v5056_v34 = vmax.f32 %v5024_v40, 0.0 }
 0x387   : > { %v5057_v17 = vmax.f32 %v5025_v22, 0.0  ;;  %v5072_v6 = vsel %vm4557_vm8, %v5040_v54, 0.0  ;;  %v5058_v10 = vmax.f32 %v5026_v11, 0.0  ;;  %v5059_v19 = vmax.f32 %v5027_v21, 0.0 }
 0x388   : > { %v5060_v30 = vmax.f32 %v5028_v58, 0.0  ;;  %v5073_v3 = vsel %vm4557_vm8, %v5041_v46, 0.0  ;;  %v5061_v38 = vmax.f32 %v9026_v51, 0.0  ;;  %v5062_v44 = vmax.f32 %v9029_v0, 0.0 }
 0x389   : > { %v5074_v50 = vadd.f32 %v5073_v3, %v5072_v6  ;;  %v5087_v49 = vsel %vm4557_vm8, %v5048_v13, 0.0  ;;  %v5064_v31 = vmax.f32 %v9032_v33, 0.0  ;;  %v5065_v23 = vmax.f32 %v9035_v14, 0.0 }
 0x38a   : > { %v5075_v35 = vsel %vm4557_vm8, %v5042_v25, 0.0  ;;  %v5088_v61 = vsel %vm4557_vm8, %v5049_v9, 0.0  ;;  %v5077_v41 = vsel %vm4557_vm8, %v5043_v26, 0.0  ;;  %v5102_v24 = vsel %vm4557_vm8, %v5056_v34, 0.0 }
 0x38b   : > { %v5076_v52 = vadd.f32 %v5075_v35, %v5074_v50  ;;  %v5089_v43 = vadd.f32 %v5088_v61, %v5087_v49  ;;  %v5079_v45 = vsel %vm4557_vm8, %v5044_v4, 0.0  ;;  %v5081_v2 = vsel %vm4557_vm8, %v5045_v15, 0.0 }
 0x38c   : > { %v5090_v48 = vsel %vm4557_vm8, %v5050_v8, 0.0  ;;  %v5103_v16 = vsel %vm4557_vm8, %v5057_v17, 0.0  ;;  %v5083_v39 = vsel %vm4557_vm8, %v5046_v57, 0.0  ;;  %v5092_v18 = vsel %vm4557_vm8, %v5051_v59, 0.0 }
 0x38d   : > { %v5078_v63 = vadd.f32 %v5077_v41, %v5076_v52  ;;  %v5091_v12 = vadd.f32 %v5090_v48, %v5089_v43  ;;  %v5104_v7 = vadd.f32 %v5103_v16, %v5102_v24  ;;  %v5094_v1 = vsel %vm4557_vm8, %v5052_v60, 0.0 }
 0x38e   : > { %v5105_v36 = vsel %vm4557_vm8, %v5058_v10, 0.0  ;;  %v5031_v40 = vadd.f32 %v9005_v53, %v8991_v56  ;;  %v5035_v58 = vadd.f32 %v9010_v62, %v8994_v37  ;;  %v5096_v51 = vsel %vm4557_vm8, %v5053_v47, 0.0 }
 0x38f   : > { %v5080_v22 = vadd.f32 %v5079_v45, %v5078_v63  ;;  %v5093_v11 = vadd.f32 %v5092_v18, %v5091_v12  ;;  %v5106_v21 = vadd.f32 %v5105_v36, %v5104_v7  ;;  %v5107_v0 = vsel %vm4557_vm8, %v5059_v19, 0.0 }
 0x390   : > { %v5109_v33 = vsel %vm4557_vm8, %v5060_v30, 0.0  ;;  %v5036_v14 = vadd.f32 %v9010_v62, %v8997_v5  ;;  %v5037_v56 = vadd.f32 %v9010_v62, %v9000_v42  ;;  %v5038_v53 = vadd.f32 %v9010_v62, %v9003_v55 }
 0x391   : > { %v5082_v54 = vadd.f32 %v5081_v2, %v5080_v22  ;;  %v5095_v46 = vadd.f32 %v5094_v1, %v5093_v11  ;;  %v5108_v25 = vadd.f32 %v5107_v0, %v5106_v21  ;;  %v5039_v37 = vadd.f32 %v9010_v62, %v9008_v32 }
 0x392   : > { %v5063_v26 = vmax.f32 %v5031_v40, 0.0  ;;  %v5066_v4 = vmax.f32 %v9038_v29, 0.0  ;;  %v5067_v15 = vmax.f32 %v5035_v58, 0.0  ;;  %v5085_v5 = vsel %vm4557_vm8, %v5047_v28, 0.0 }
 0x393   : > { %v5084_v57 = vadd.f32 %v5083_v39, %v5082_v54  ;;  %v5097_v13 = vadd.f32 %v5096_v51, %v5095_v46  ;;  %v5110_v9 = vadd.f32 %v5109_v33, %v5108_v25  ;;  %v5098_v8 = vsel %vm4557_vm8, %v5054_v27, 0.0 }
 0x394   : > { %v5111_v59 = vsel %vm4557_vm8, %v5061_v38, 0.0  ;;  %v5117_v42 = vsel %vm4557_vm8, %v5064_v31, 0.0  ;;  %v5118_v32 = vsel %vm4557_vm8, %v5065_v23, 0.0  ;;  %v5068_v62 = vmax.f32 %v5036_v14, 0.0 }
 0x395   : > { %v5086_v60 = vadd.f32 %v5085_v5, %v5084_v57  ;;  %v5099_v55 = vadd.f32 %v5098_v8, %v5097_v13  ;;  %v5112_v47 = vadd.f32 %v5111_v59, %v5110_v9  ;;  %v5100_v29 = vsel %vm4557_vm8, %v5055_v20, 0.0 }
 0x396   : > { %v5113_v34 = vsel %vm4557_vm8, %v5062_v44, 0.0  ;;  %v5119_v17 = vadd.f32 %v5118_v32, %v5117_v42  ;;  %v5069_v6 = vmax.f32 %v5037_v56, 0.0  ;;  %v5120_v27 = vsel %vm4557_vm8, %v5066_v4, 0.0 }
 0x397   : > { %v5101_v10 = vadd.f32 %v5100_v29, %v5099_v55  ;;  %v5114_v28 = vadd.f32 %v5113_v34, %v5112_v47  ;;  %v5070_v19 = vmax.f32 %v5038_v53, 0.0  ;;  %v5115_v30 = vsel %vm4557_vm8, %v5063_v26, 0.0 }
 0x398   : > { %v5121_v3 = vadd.f32 %v5120_v27, %v5119_v17  ;;  %v5132_v38 = vmul.f32 0.125, %v5086_v60  ;;  %v5071_v50 = vmax.f32 %v5039_v37, 0.0  ;;  %v5122_v31 = vsel %vm4557_vm8, %v5067_v15, 0.0 }
 0x399   : > { %v5116_v49 = vadd.f32 %v5115_v30, %v5114_v28  ;;  %v5133_v23 = vmul.f32 0.125, %v5101_v10  ;;  %v5124_v20 = vsel %vm4557_vm8, %v5068_v62, 0.0  ;;  %v5126_v61 = vsel %vm4557_vm8, %v5069_v6, 0.0 }
 0x39a   : > { %v5123_v35 = vadd.f32 %v5122_v31, %v5121_v3  ;;  %v5147_v44 = vrot.slane %v5132_v38, 1  ;;  %v5128_v45 = vsel %vm4557_vm8, %v5070_v19, 0.0  ;;  %v5165_v2 = vrot.slane %v5132_v38, 3 }
 0x39b   : > { %v5134_v52 = vmul.f32 0.125, %v5116_v49  ;;  %v5166_v41 = vrot.slane %v5133_v23, 2  ;;  %v5203_v43 = vrot.slane %v5133_v23, 6  ;;  %v5183_v48 = vrot.slane %v5133_v23, 4 }
 0x39c   : > { %v5125_v24 = vadd.f32 %v5124_v20, %v5123_v35  ;;  %v5130_v16 = vsel %vm4557_vm8, %v5071_v50, 0.0  ;;  %v5202_v63 = vrot.slane %v5132_v38, 7  ;;  %v5148_v39 = vsel %vm4762_vm9, %v5133_v23, %v5147_v44 }
 0x39d   : > { %v5182_v12 = vrot.slane %v5132_v38, 5  ;;  %v5167_v18 = vsel %vm4762_vm9, %v5166_v41, %v5165_v2  ;;  %v5168_v1 = vrot.slane %v5134_v52, 1  ;;  %v5156_v36 = vrot.slane %v5132_v38, 2 }
 0x39e   : > { %v5127_v7 = vadd.f32 %v5126_v61, %v5125_v24  ;;  %v5204_v40 = vsel %vm4762_vm9, %v5203_v43, %v5202_v63  ;;  %v5205_v22 = vrot.slane %v5134_v52, 5  ;;  %v5149_v11 = vrot.slane %v5134_v52, 7 }
 0x39f   : > { %v5157_v21 = vrot.slane %v5133_v23, 1  ;;  %v5184_v51 = vsel %vm4762_vm9, %v5183_v48, %v5182_v12  ;;  %v5192_v0 = vrot.slane %v5132_v38, 6  ;;  %v5193_v33 = vrot.slane %v5133_v23, 5 }
 0x3a0   : > { %v5129_v58 = vadd.f32 %v5128_v45, %v5127_v7  ;;  %v5185_v14 = vrot.slane %v5134_v52, 3  ;;  %v5195_v54 = vrot.slane %v5134_v52, 4  ;;  %v5140_v46 = vrot.slane %v5133_v23, 7 }
 0x3a1   : > { %v5142_v25 = vrot.slane %v5134_v52, 6  ;;  %v5169_v53 = vsel %vm4764_vm11, %v5168_v1, %v5167_v18  ;;  %v5158_v37 = vsel %vm4762_vm9, %v5157_v21, %v5156_v36  ;;  %v5194_v26 = vsel %vm4762_vm9, %v5193_v33, %v5192_v0 }
 0x3a2   : > { %v5131_v56 = vadd.f32 %v5130_v16, %v5129_v58  ;;  %v5141_v4 = vsel %vm4762_vm9, %v5140_v46, %v5132_v38  ;;  %v5174_v15 = vrot.slane %v5132_v38, 4  ;;  %v5175_v57 = vrot.slane %v5133_v23, 3 }
 0x3a3   : > { %v5177_v13 = vrot.slane %v5134_v52, 2  ;;  %v5206_v5 = vsel %vm4764_vm11, %v5205_v22, %v5204_v40  ;;  %v5150_v8 = vsel %vm4764_vm11, %v5149_v11, %v5148_v39  ;;  %v5143_v59 = vsel %vm4764_vm11, %v5142_v25, %v5141_v4 }
 0x3a4   : > { %v5135_v9 = vmul.f32 0.125, %v5131_v56  ;;  %v5186_v42 = vsel %vm4764_vm11, %v5185_v14, %v5184_v51  ;;  %v5159_v60 = vsel %vm4764_vm11, %v5134_v52, %v5158_v37  ;;  %v5196_v55 = vsel %vm4764_vm11, %v5195_v54, %v5194_v26 }
 0x3a5   : > { %v5176_v47 = vsel %vm4762_vm9, %v5175_v57, %v5174_v15 }
 0x3a6   : > { %v5170_v32 = vsel %vm4766_vm13, %v5135_v9, %v5169_v53  ;;  %v5207_v62 = vrot.slane %v5135_v9, 4  ;;  %v5151_v29 = vrot.slane %v5135_v9, 6  ;;  %v5187_v34 = vrot.slane %v5135_v9, 2 }
 0x3a7   : > { %v5160_v17 = vrot.slane %v5135_v9, 7  ;;  %v5197_v6 = vrot.slane %v5135_v9, 3  ;;  %v5178_v10 = vsel %vm4764_vm11, %v5177_v13, %v5176_v47  ;;  %v5179_v28 = vrot.slane %v5135_v9, 1 }
 0x3a8   : > { %v5208_v27 = vsel %vm4766_vm13, %v5207_v62, %v5206_v5  ;;  %v5152_v19 = vsel %vm4766_vm13, %v5151_v29, %v5150_v8  ;;  %v5188_v30 = vsel %vm4766_vm13, %v5187_v34, %v5186_v42  ;;  %v5144_v3 = vrot.slane %v5135_v9, 5 }
 0x3a9   : > { %v6734_v38 = vpack.i.bf16 %v5208_v27, %v5170_v32  ;;  %v6724_v50 = vpack.i.bf16 %v5188_v30, %v5152_v19  ;;  %v5161_v49 = vsel %vm4766_vm13, %v5160_v17, %v5159_v60  ;;  %v5198_v31 = vsel %vm4766_vm13, %v5197_v6, %v5196_v55 }
 0x3aa   : > { %v5180_v23 = vsel %vm4766_vm13, %v5179_v28, %v5178_v10  ;;  %v5145_v35 = vsel %vm4766_vm13, %v5144_v3, %v5143_v59  ;;  %v6729_v20 = vpack.i.bf16 %v5198_v31, %v5161_v49 }
 0x3ab   : > { %6735 = vrot.lane.b32.xlu1 %v6734_v38, %s6984_s7  ;;  %6725 = vrot.lane.b32.xlu0 %v6724_v50, %s6985_s16 }
 0x3af   : > { %6730 = vrot.lane.b32.xlu0 %v6729_v20, %s6986_s17 }
 0x41d   : > { %v6726_v44 = vpop.permute.xlu0 %6725  ;;  %v6736_v41 = vpop.permute.xlu1 %6735 }
 0x41e   : > { %v6728_v61 = vunpack.i.h.bf16 %v6726_v44  ;;  %v6727_v52 = vunpack.i.l.bf16 %v6726_v44  ;;  %v6738_v2 = vunpack.i.h.bf16 %v6736_v41  ;;  %v6737_v48 = vunpack.i.l.bf16 %v6736_v41 }
 0x420   : > { %v5216_v16 = vsel %vm4557_vm8, %v5180_v23, %v6728_v61  ;;  %v5212_v63 = vsel %vm4557_vm8, %v5145_v35, %v6727_v52 }
 0x421   : > { %v6731_v43 = vpop.permute.xlu0 %6730 }
 0x422   : > { %v6733_v24 = vunpack.i.h.bf16 %v6731_v43  ;;  %v6732_v45 = vunpack.i.l.bf16 %v6731_v43 }
 0x424   : > { %v5213_v39 = vsel %vm981_vm3, %v5212_v63, %v6732_v45  ;;  %v5217_v12 = vsel %vm981_vm3, %v5216_v16, %v6733_v24 }
 0x425   : > { %v5215_v7 = vsel %vm5214_vm0, %v5213_v39, %v6737_v48  ;;  %v5218_v18 = vsel %vm5214_vm0, %v5217_v12, %v6738_v2 }
 0x426   : > { %v5826_v1 = vpack.c.bf16 %v5218_v18, %v5215_v7 }
 0x428   : > { %5827 = vst.sshfl [vmem:[%s281_s29] sm:$0x33 pattern:$0x76325410] %v5826_v1 }
 0x429   : > { %6913 = shalt.err (!%p6910_p5)
}
 0x42a   : > { %s6914_s7 = scalar_lea.hbm %s9126_s11, 64  ;;  %s6918_s24 = scalar_lea.hbm %s9178_s5, 128 }
 0x42b   : > { %p6915_p6 = scmp.ne.s32.totalorder %s9126_s11, %s6914_s7  ;;  %p6919_p10 = scmp.lt.u32.totalorder %s9126_s11, %s9178_s5 }
 0x42c   : > { %p6920_p11 = scmp.lt.u32.totalorder %s6918_s24, %s6914_s7  ;;  %p6922_p13 = scmp.lt.u32.totalorder %s6914_s7, %s9126_s11 }
 0x42d   : > { %p6916_p7 = pnand %p6915_p6, %p7058_p4 }
 0x42e   : > { %p6921_p12 = por %p6920_p11, %p6919_p10 }
 0x42f   : > { %p6917_p9 = pneg %p6916_p7 }
 0x430   : > { %p6923_p0 = por %p6922_p13, %p6921_p12 }
 0x432   : > { %p6924_p1 = pnand %p6923_p0, %p6917_p9 }
 0x434   : > { %6927 = shalt.err (!%p6924_p1)
}
 0x435   : > { %6662 = dma.vmem_to_hbm [thread:$0]  (%p7058_p4), %s9128_s8, 64, %s9126_s11, %s5234_s21  }
 0x436 PF: > { %p6668_p2 = scmp.ge.s32.totalorder %s6978_s23, 2  ;;  %s5262_s29 = sand.u32 1, %s6958_s18  }
 0x437   : > { %s5263_s9 = scalar_lea.sflag [#allocation3], %s5262_s29 }
 0x438   : > { %p6665_p3 = pnand %p6668_p2, %p7065_p8 }
 0x43a   : > { %6953 = dma.done.wait (!%p6665_p3), %s5263_s9, 64  }
 0x43b   : > { %6955 = vsyncadd (!%p6665_p3), %s5263_s9, 4294967232  ;;  %s18_s23 = sadd.s32 1, %s6978_s23   ;;  %s9417_s18 = smov %s6962_s19 }
 0x43c   : > { %p15_p5 = scmp.ge.s32.totalorder %s18_s23, 4   ;;  %s9418_s19 = smov %s6966_s20 }
 0x43d   : > { %s9419_s20 = smov %s7071_s6  ;;  %s9420_s21 = smov %s6974_s22 }
 0x43e   : > { %s9421_s22 = smov %s9423_s26  ;;  %17 = sbr.rel (!%p15_p5) target bundleno = 4 (0x4), region = 92 }
 0x445   :  { %5268 = vsyncpa [#allocation3], 1 }
 0x446   :  { %5270 = vsyncpa [#allocation3 + $0x1], 1 }

</bundles_post_ra>
